<compile_context>
chip_gen: v7x
topology: tpu7x:2x2x1
jax: 0.10.0
libtpu: 0.0.40
codegen_flags: <defaults>
</compile_context>

<pallas_src>
import functools

import jax
import jax.numpy as jnp
from jax.experimental import pallas as pl
from jax.experimental.pallas import tpu as pltpu

_LN_EPS = 1e-5                           # torch nn.LayerNorm default


def _layernorm(v, w, b):
    mu = jnp.mean(v, axis=-1, keepdims=True)
    var = jnp.mean((v - mu) ** 2, axis=-1, keepdims=True)
    return (v - mu) * jax.lax.rsqrt(var + _LN_EPS) * w + b


def _default_vmem_limit():
    """Per-generation scoped-VMEM budget (v5e/v6e: 128 MiB phys, v7x: 64 MiB)."""
    try:
        kind = jax.devices()[0].device_kind.lower()
    except Exception:  # pragma: no cover - fall back to the conservative cap
        kind = ""
    if any(tag in kind for tag in ("v4", "v5", "v6")):
        return 96 * 1024 * 1024
    return 48 * 1024 * 1024                      # safe on v7x (64 MiB/TC)


def _pick_hidden_tile(D, H4, vmem_limit):
    """Largest 4D-hidden tile whose double-buffered bf16 w1/w2 tiles fit."""
    budget = vmem_limit // 3                     # leave room for attn weights/acts
    tn = H4
    # bytes of (w1 tile + w2 tile), bf16, double-buffered:  2 * 2 * (tn*D*2)
    while (8 * tn * D > budget) and (tn % 2 == 0) and ((tn // 2) % 128 == 0):
        tn //= 2
    return tn


# ---------------------------------------------------------------------------
# 1) Embedding: per-batch manual DMA row-gather (table stays in HBM) + pos add
# ---------------------------------------------------------------------------
def embed_kernel(ids_ref, table_ref, pos_ref, out_ref, buf_ref, sem_ref):
    b = pl.program_id(0)
    S = buf_ref.shape[0]
    # Issue all S row gathers for this batch element concurrently, then wait.
    for s in range(S):                                   # static unroll
        pltpu.make_async_copy(table_ref.at[ids_ref[b, s]],
                              buf_ref.at[s], sem_ref.at[0]).start()
    for s in range(S):
        pltpu.make_async_copy(table_ref.at[0],            # shape-only for wait
                              buf_ref.at[s], sem_ref.at[0]).wait()
    out_ref[...] = (buf_ref[...] + pos_ref[...])[None]


def embed_forward(ids, table, pos):
    B, S = ids.shape
    _, D = table.shape
    grid_spec = pltpu.PrefetchScalarGridSpec(
        num_scalar_prefetch=1,                            # ids -> SMEM
        grid=(B,),
        in_specs=[
            pl.BlockSpec(memory_space=pl.ANY),            # table stays in HBM
            pl.BlockSpec((S, D), lambda b, ids: (0, 0)),  # positional encoding
        ],
        out_specs=pl.BlockSpec((1, S, D), lambda b, ids: (b, 0, 0)),
        scratch_shapes=[pltpu.VMEM((S, D), jnp.float32),
                        pltpu.SemaphoreType.DMA((1,))],
    )
    return pl.pallas_call(
        embed_kernel,
        grid_spec=grid_spec,
        out_shape=jax.ShapeDtypeStruct((B, S, D), jnp.float32),
        compiler_params=pltpu.CompilerParams(
            dimension_semantics=("arbitrary",)),
    )(ids, table, pos)


# ---------------------------------------------------------------------------
# 2) Fused CLIP layer: LN1 + MHA + res1 + LN2 + MLP (streamed hidden tiles)
#    + res2 (+ optional final LayerNorm).  Grid = (n_hidden_tiles,).
#    Attention runs once at tile 0; the f32 accumulator is seeded with the
#    attention residual and collects the MLP partial products.
# ---------------------------------------------------------------------------
def clip_layer_kernel(x_ref, ln1w_ref, ln1b_ref, w_in_ref, b_in_ref,
                      w_out_ref, b_out_ref, ln2w_ref, ln2b_ref,
                      b2_ref, flnw_ref, flnb_ref,
                      w1_ref, b1_ref, w2_ref,
                      out_ref, h_ref, acc_ref,
                      *, num_heads, s_valid, apply_final_ln):
    n = pl.program_id(0)
    B, S, D = x_ref.shape
    H = num_heads
    Dh = D // H
    scale = 1.0 / (Dh ** 0.5)

    @pl.when(n == 0)
    def _attention_block():
        x = x_ref[...].reshape(B * S, D)                          # fold batch
        hx = _layernorm(x, ln1w_ref[...], ln1b_ref[...])          # f32
        qkv = jnp.dot(hx.astype(jnp.bfloat16), w_in_ref[...],
                      preferred_element_type=jnp.float32) + b_in_ref[...]

        def heads(t):                                    # (B*S,D) -> (B*H,S,Dh)
            return jnp.transpose(t.reshape(B, S, H, Dh), (0, 2, 1, 3)
                                 ).reshape(B * H, S, Dh).astype(jnp.bfloat16)

        q = heads(qkv[:, 0 * D:1 * D])
        k = heads(qkv[:, 1 * D:2 * D])
        v = heads(qkv[:, 2 * D:3 * D])

        # TODO(synk): no causal mask — matches the default SelfAttention call.
        scores = jnp.einsum("bqd,bkd->bqk", q, k,
                            preferred_element_type=jnp.float32) * scale
        if s_valid < S:                                  # mask padded key rows
            key_pos = jax.lax.broadcasted_iota(jnp.int32, (1, 1, S), 2)
            scores = jnp.where(key_pos >= s_valid, -1e30, scores)
        scores = scores - jnp.max(scores, axis=-1, keepdims=True)
        p = jnp.exp(scores)
        p = p * pl.reciprocal(jnp.sum(p, axis=-1, keepdims=True), approx=True)

        ctx = jnp.einsum("bqk,bkd->bqd", p.astype(jnp.bfloat16), v,
                         preferred_element_type=jnp.float32)      # (B*H,S,Dh)
        ctx = jnp.transpose(ctx.reshape(B, H, S, Dh),
                            (0, 2, 1, 3)).reshape(B * S, D)
        attn = jnp.dot(ctx.astype(jnp.bfloat16), w_out_ref[...],
                       preferred_element_type=jnp.float32) + b_out_ref[...]

        res = x + attn                                            # residual 1
        h_ref[...] = _layernorm(res, ln2w_ref[...],
                                ln2b_ref[...]).astype(jnp.bfloat16)
        acc_ref[...] = res                                        # seed res2

    # MLP over the current hidden tile (shared by every grid step).
    u = jnp.dot(h_ref[...], w1_ref[...],
                preferred_element_type=jnp.float32) + b1_ref[...]  # (B*S, tn)
    u = u * jax.nn.sigmoid(1.702 * u)                              # quick-GELU
    acc_ref[...] += jnp.dot(u.astype(jnp.bfloat16), w2_ref[...],
                            preferred_element_type=jnp.float32)    # (B*S, D)

    @pl.when(n == pl.num_programs(0) - 1)
    def _finalize():
        y = acc_ref[...] + b2_ref[...]                             # + lin2 bias
        if apply_final_ln:                                         # static flag
            y = _layernorm(y, flnw_ref[...], flnb_ref[...])
        out_ref[...] = y.reshape(B, S, D)


def clip_layer_forward(x, layer, num_heads, s_valid, final_ln=None,
                       *, vmem_limit, tile_n=None):
    (ln1_w, ln1_b, w_in, b_in, w_out, b_out,
     ln2_w, ln2_b, w1, b1, w2, b2) = layer
    B, S, D = x.shape
    H4 = w1.shape[1]
    tn = _pick_hidden_tile(D, H4, vmem_limit) if tile_n is None else tile_n
    assert H4 % tn == 0, "4*D must be divisible by the hidden tile"
    nt = H4 // tn

    apply_final_ln = final_ln is not None
    if final_ln is None:
        fln_w = jnp.ones((1, D), jnp.float32)             # unused (static gate)
        fln_b = jnp.zeros((1, D), jnp.float32)
    else:
        fln_w, fln_b = final_ln

    kernel = functools.partial(clip_layer_kernel, num_heads=num_heads,
                               s_valid=s_valid, apply_final_ln=apply_final_ln)
    grid_spec = pltpu.PrefetchScalarGridSpec(
        num_scalar_prefetch=0,
        grid=(nt,),
        in_specs=[
            pl.BlockSpec((B, S, D), lambda n: (0, 0, 0)),     # x (resident)
            pl.BlockSpec((1, D), lambda n: (0, 0)),           # ln1 w
            pl.BlockSpec((1, D), lambda n: (0, 0)),           # ln1 b
            pl.BlockSpec((D, 3 * D), lambda n: (0, 0)),       # w_in  (bf16)
            pl.BlockSpec((1, 3 * D), lambda n: (0, 0)),       # b_in
            pl.BlockSpec((D, D), lambda n: (0, 0)),           # w_out (bf16)
            pl.BlockSpec((1, D), lambda n: (0, 0)),           # b_out
            pl.BlockSpec((1, D), lambda n: (0, 0)),           # ln2 w
            pl.BlockSpec((1, D), lambda n: (0, 0)),           # ln2 b
            pl.BlockSpec((1, D), lambda n: (0, 0)),           # b2
            pl.BlockSpec((1, D), lambda n: (0, 0)),           # final ln w
            pl.BlockSpec((1, D), lambda n: (0, 0)),           # final ln b
            pl.BlockSpec((D, tn), lambda n: (0, n)),          # w1 tile (bf16)
            pl.BlockSpec((1, tn), lambda n: (0, n)),          # b1 tile
            pl.BlockSpec((tn, D), lambda n: (n, 0)),          # w2 tile (bf16)
        ],
        out_specs=pl.BlockSpec((B, S, D), lambda n: (0, 0, 0)),
        scratch_shapes=[pltpu.VMEM((B * S, D), jnp.bfloat16),  # LN2(res), once
                        pltpu.VMEM((B * S, D), jnp.float32)],  # res + MLP acc
    )
    return pl.pallas_call(
        kernel,
        grid_spec=grid_spec,
        out_shape=jax.ShapeDtypeStruct((B, S, D), jnp.float32),
        compiler_params=pltpu.CompilerParams(
            dimension_semantics=("arbitrary",),
            vmem_limit_bytes=vmem_limit),
    )(x, ln1_w, ln1_b, w_in, b_in, w_out, b_out, ln2_w, ln2_b,
      b2, fln_w, fln_b, w1, b1, w2)


# ---------------------------------------------------------------------------
# 3) Standalone LayerNorm (only used if there are zero transformer layers)
# ---------------------------------------------------------------------------
def layernorm_kernel(x_ref, w_ref, b_ref, out_ref):
    out_ref[...] = _layernorm(x_ref[...], w_ref[...], b_ref[...])


def final_ln_forward(x, w, b):
    return pl.pallas_call(
        layernorm_kernel,
        out_shape=jax.ShapeDtypeStruct(x.shape, jnp.float32),
        in_specs=[pl.BlockSpec(memory_space=pltpu.MemorySpace.VMEM)] * 3,
        out_specs=pl.BlockSpec(memory_space=pltpu.MemorySpace.VMEM),
    )(x, w, b)


# ---------------------------------------------------------------------------
# Full forward
# ---------------------------------------------------------------------------
def clip_forward(ids, params, num_heads):
    x = embed_forward(ids.astype(jnp.int32), params["embedding_table"],
                      params["position_encoding"])
    B, S, D = x.shape
    s_pad = ((S + 7) // 8) * 8                       # sublane-aligned sequence
    if s_pad != S:
        x = jnp.pad(x, ((0, 0), (0, s_pad - S), (0, 0)))

    vmem_limit = _default_vmem_limit()
    layers = params["layers"]
    n_layers = len(layers)
    for i, layer in enumerate(layers):
        fin = ((params["final_ln_w"], params["final_ln_b"])
               if i == n_layers - 1 else None)       # fuse final LN in last layer
        x = clip_layer_forward(x, layer, num_heads, S, final_ln=fin,
                               vmem_limit=vmem_limit)
    if n_layers == 0:
        x = final_ln_forward(x, params["final_ln_w"], params["final_ln_b"])
    return x[:, :S, :] if s_pad != S else x


# ---------------------------------------------------------------------------
# Deterministic parameter init (weights bf16, biases / LN / embeddings f32)
# ---------------------------------------------------------------------------
def init_params(key, vocab_size, embedding_dim, max_seq_len, num_layers):
    D = embedding_dim
    keys = iter(jax.random.split(key, 4 + num_layers * 8))

    def rnd(shape, dtype=jnp.float32, scale=0.02):
        return (scale * jax.random.normal(next(keys), shape,
                                          jnp.float32)).astype(dtype)

    params = {
        "embedding_table": rnd((vocab_size, D)),
        "position_encoding": rnd((max_seq_len, D)),
        "final_ln_w": jnp.ones((1, D), jnp.float32),
        "final_ln_b": jnp.zeros((1, D), jnp.float32),
        "layers": [],
    }
    for _ in range(num_layers):
        layer = (
            jnp.ones((1, D), jnp.float32),              # ln1 weight
            jnp.zeros((1, D), jnp.float32),             # ln1 bias
            rnd((D, 3 * D), jnp.bfloat16),              # attention in_proj W
            rnd((1, 3 * D)),                            # attention in_proj b
            rnd((D, D), jnp.bfloat16),                  # attention out_proj W
            rnd((1, D)),                                # attention out_proj b
            jnp.ones((1, D), jnp.float32),              # ln2 weight
            jnp.zeros((1, D), jnp.float32),             # ln2 bias
            rnd((D, 4 * D), jnp.bfloat16),              # lin1 W
            rnd((1, 4 * D)),                            # lin1 b
            rnd((4 * D, D), jnp.bfloat16),              # lin2 W
            rnd((1, D)),                                # lin2 b
        )
        params["layers"].append(layer)
    return params


# ---------------------------------------------------------------------------
if __name__ == "__main__":
    # Small shapes consistent with the module's forward.
    vocab_size, embedding_dim, max_seq_len = 100, 32, 8
    atn_num_heads, num_layers = 4, 2
    batch = 2

    key = jax.random.PRNGKey(0)
    k_ids, k_params = jax.random.split(key)

    token_ids = jax.random.randint(
        k_ids, (batch, max_seq_len), 0, vocab_size).astype(jnp.int32)
    params = init_params(k_params, vocab_size, embedding_dim,
                         max_seq_len, num_layers)

    fwd = jax.jit(functools.partial(clip_forward, num_heads=atn_num_heads))
    out = jax.block_until_ready(fwd(token_ids, params))

    assert out.shape == (batch, max_seq_len, embedding_dim)
    assert bool(jnp.all(jnp.isfinite(out)))
    print("KERNEL_OK")
</pallas_src>

<mosaic_0001>
module attributes {stable_mosaic.version = 11 : i64} {
  func.func @embed_kernel(%arg0: i32, %arg1: memref<2x8xi32, #tpu.memory_space<smem>>, %arg2: memref<100x32xf32, #tpu.memory_space<any>>, %arg3: memref<8x32xf32, #tpu.memory_space<vmem>>, %arg4: memref<1x8x32xf32, #tpu.memory_space<vmem>>, %arg5: memref<8x32xf32, #tpu.memory_space<vmem>>, %arg6: memref<1x!tpu.dma_semaphore, #tpu.memory_space<semaphore_mem>>) attributes {dimension_semantics = [#tpu.dimension_semantics<arbitrary>], iteration_bounds = array<i64: 2>, scalar_prefetch = 1 : i64, scratch_operands = 2 : i64, tpu.core_type = #tpu.core_type<tc>, window_params = [{}, {pipeline_mode = #tpu.pipeline_mode<synchronous>, transform_indices = @transform_1, window_bounds = array<i64: 8, 32>}, {transform_indices = @transform_2, window_bounds = array<i64: 1, 8, 32>}]} {
    %0 = arith.index_cast %arg0 : i32 to index
    %c0 = arith.constant 0 : index
    %1 = memref.load %arg1[%0, %c0] : memref<2x8xi32, #tpu.memory_space<smem>>
    %c0_i32 = arith.constant 0 : i32
    %c0_i32_0 = arith.constant 0 : i32
    %c0_i32_1 = arith.constant 0 : i32
    %2 = tpu.memref_slice %arg2[%1, %c0_i32_1] : memref<100x32xf32, #tpu.memory_space<any>> -> memref<1x32xf32, #tpu.memory_space<any>>
    %3 = tpu.memref_squeeze %2 : memref<1x32xf32, #tpu.memory_space<any>> -> memref<32xf32, #tpu.memory_space<any>>
    %c0_i32_2 = arith.constant 0 : i32
    %4 = tpu.memref_slice %arg5[%c0_i32, %c0_i32_2] : memref<8x32xf32, #tpu.memory_space<vmem>> -> memref<1x32xf32, #tpu.memory_space<vmem>>
    %5 = tpu.memref_squeeze %4 : memref<1x32xf32, #tpu.memory_space<vmem>> -> memref<32xf32, #tpu.memory_space<vmem>>
    %6 = tpu.memref_slice %arg6[%c0_i32_0] : memref<1x!tpu.dma_semaphore, #tpu.memory_space<semaphore_mem>> -> memref<1x!tpu.dma_semaphore, #tpu.memory_space<semaphore_mem>>
    %7 = tpu.memref_squeeze %6 : memref<1x!tpu.dma_semaphore, #tpu.memory_space<semaphore_mem>> -> memref<!tpu.dma_semaphore, #tpu.memory_space<semaphore_mem>>
    tpu.enqueue_dma source(%3 : memref<32xf32, #tpu.memory_space<any>>) target(%5 : memref<32xf32, #tpu.memory_space<vmem>>) target_semaphore(%7 : memref<!tpu.dma_semaphore, #tpu.memory_space<semaphore_mem>>)
    %8 = arith.index_cast %arg0 : i32 to index
    %c1 = arith.constant 1 : index
    %9 = memref.load %arg1[%8, %c1] : memref<2x8xi32, #tpu.memory_space<smem>>
    %c1_i32 = arith.constant 1 : i32
    %c0_i32_3 = arith.constant 0 : i32
    %c0_i32_4 = arith.constant 0 : i32
    %10 = tpu.memref_slice %arg2[%9, %c0_i32_4] : memref<100x32xf32, #tpu.memory_space<any>> -> memref<1x32xf32, #tpu.memory_space<any>>
    %11 = tpu.memref_squeeze %10 : memref<1x32xf32, #tpu.memory_space<any>> -> memref<32xf32, #tpu.memory_space<any>>
    %c0_i32_5 = arith.constant 0 : i32
    %12 = tpu.memref_slice %arg5[%c1_i32, %c0_i32_5] : memref<8x32xf32, #tpu.memory_space<vmem>> -> memref<1x32xf32, #tpu.memory_space<vmem>>
    %13 = tpu.memref_squeeze %12 : memref<1x32xf32, #tpu.memory_space<vmem>> -> memref<32xf32, #tpu.memory_space<vmem>>
    %14 = tpu.memref_slice %arg6[%c0_i32_3] : memref<1x!tpu.dma_semaphore, #tpu.memory_space<semaphore_mem>> -> memref<1x!tpu.dma_semaphore, #tpu.memory_space<semaphore_mem>>
    %15 = tpu.memref_squeeze %14 : memref<1x!tpu.dma_semaphore, #tpu.memory_space<semaphore_mem>> -> memref<!tpu.dma_semaphore, #tpu.memory_space<semaphore_mem>>
    tpu.enqueue_dma source(%11 : memref<32xf32, #tpu.memory_space<any>>) target(%13 : memref<32xf32, #tpu.memory_space<vmem>>) target_semaphore(%15 : memref<!tpu.dma_semaphore, #tpu.memory_space<semaphore_mem>>)
    %16 = arith.index_cast %arg0 : i32 to index
    %c2 = arith.constant 2 : index
    %17 = memref.load %arg1[%16, %c2] : memref<2x8xi32, #tpu.memory_space<smem>>
    %c2_i32 = arith.constant 2 : i32
    %c0_i32_6 = arith.constant 0 : i32
    %c0_i32_7 = arith.constant 0 : i32
    %18 = tpu.memref_slice %arg2[%17, %c0_i32_7] : memref<100x32xf32, #tpu.memory_space<any>> -> memref<1x32xf32, #tpu.memory_space<any>>
    %19 = tpu.memref_squeeze %18 : memref<1x32xf32, #tpu.memory_space<any>> -> memref<32xf32, #tpu.memory_space<any>>
    %c0_i32_8 = arith.constant 0 : i32
    %20 = tpu.memref_slice %arg5[%c2_i32, %c0_i32_8] : memref<8x32xf32, #tpu.memory_space<vmem>> -> memref<1x32xf32, #tpu.memory_space<vmem>>
    %21 = tpu.memref_squeeze %20 : memref<1x32xf32, #tpu.memory_space<vmem>> -> memref<32xf32, #tpu.memory_space<vmem>>
    %22 = tpu.memref_slice %arg6[%c0_i32_6] : memref<1x!tpu.dma_semaphore, #tpu.memory_space<semaphore_mem>> -> memref<1x!tpu.dma_semaphore, #tpu.memory_space<semaphore_mem>>
    %23 = tpu.memref_squeeze %22 : memref<1x!tpu.dma_semaphore, #tpu.memory_space<semaphore_mem>> -> memref<!tpu.dma_semaphore, #tpu.memory_space<semaphore_mem>>
    tpu.enqueue_dma source(%19 : memref<32xf32, #tpu.memory_space<any>>) target(%21 : memref<32xf32, #tpu.memory_space<vmem>>) target_semaphore(%23 : memref<!tpu.dma_semaphore, #tpu.memory_space<semaphore_mem>>)
    %24 = arith.index_cast %arg0 : i32 to index
    %c3 = arith.constant 3 : index
    %25 = memref.load %arg1[%24, %c3] : memref<2x8xi32, #tpu.memory_space<smem>>
    %c3_i32 = arith.constant 3 : i32
    %c0_i32_9 = arith.constant 0 : i32
    %c0_i32_10 = arith.constant 0 : i32
    %26 = tpu.memref_slice %arg2[%25, %c0_i32_10] : memref<100x32xf32, #tpu.memory_space<any>> -> memref<1x32xf32, #tpu.memory_space<any>>
    %27 = tpu.memref_squeeze %26 : memref<1x32xf32, #tpu.memory_space<any>> -> memref<32xf32, #tpu.memory_space<any>>
    %c0_i32_11 = arith.constant 0 : i32
    %28 = tpu.memref_slice %arg5[%c3_i32, %c0_i32_11] : memref<8x32xf32, #tpu.memory_space<vmem>> -> memref<1x32xf32, #tpu.memory_space<vmem>>
    %29 = tpu.memref_squeeze %28 : memref<1x32xf32, #tpu.memory_space<vmem>> -> memref<32xf32, #tpu.memory_space<vmem>>
    %30 = tpu.memref_slice %arg6[%c0_i32_9] : memref<1x!tpu.dma_semaphore, #tpu.memory_space<semaphore_mem>> -> memref<1x!tpu.dma_semaphore, #tpu.memory_space<semaphore_mem>>
    %31 = tpu.memref_squeeze %30 : memref<1x!tpu.dma_semaphore, #tpu.memory_space<semaphore_mem>> -> memref<!tpu.dma_semaphore, #tpu.memory_space<semaphore_mem>>
    tpu.enqueue_dma source(%27 : memref<32xf32, #tpu.memory_space<any>>) target(%29 : memref<32xf32, #tpu.memory_space<vmem>>) target_semaphore(%31 : memref<!tpu.dma_semaphore, #tpu.memory_space<semaphore_mem>>)
    %32 = arith.index_cast %arg0 : i32 to index
    %c4 = arith.constant 4 : index
    %33 = memref.load %arg1[%32, %c4] : memref<2x8xi32, #tpu.memory_space<smem>>
    %c4_i32 = arith.constant 4 : i32
    %c0_i32_12 = arith.constant 0 : i32
    %c0_i32_13 = arith.constant 0 : i32
    %34 = tpu.memref_slice %arg2[%33, %c0_i32_13] : memref<100x32xf32, #tpu.memory_space<any>> -> memref<1x32xf32, #tpu.memory_space<any>>
    %35 = tpu.memref_squeeze %34 : memref<1x32xf32, #tpu.memory_space<any>> -> memref<32xf32, #tpu.memory_space<any>>
    %c0_i32_14 = arith.constant 0 : i32
    %36 = tpu.memref_slice %arg5[%c4_i32, %c0_i32_14] : memref<8x32xf32, #tpu.memory_space<vmem>> -> memref<1x32xf32, #tpu.memory_space<vmem>>
    %37 = tpu.memref_squeeze %36 : memref<1x32xf32, #tpu.memory_space<vmem>> -> memref<32xf32, #tpu.memory_space<vmem>>
    %38 = tpu.memref_slice %arg6[%c0_i32_12] : memref<1x!tpu.dma_semaphore, #tpu.memory_space<semaphore_mem>> -> memref<1x!tpu.dma_semaphore, #tpu.memory_space<semaphore_mem>>
    %39 = tpu.memref_squeeze %38 : memref<1x!tpu.dma_semaphore, #tpu.memory_space<semaphore_mem>> -> memref<!tpu.dma_semaphore, #tpu.memory_space<semaphore_mem>>
    tpu.enqueue_dma source(%35 : memref<32xf32, #tpu.memory_space<any>>) target(%37 : memref<32xf32, #tpu.memory_space<vmem>>) target_semaphore(%39 : memref<!tpu.dma_semaphore, #tpu.memory_space<semaphore_mem>>)
    %40 = arith.index_cast %arg0 : i32 to index
    %c5 = arith.constant 5 : index
    %41 = memref.load %arg1[%40, %c5] : memref<2x8xi32, #tpu.memory_space<smem>>
    %c5_i32 = arith.constant 5 : i32
    %c0_i32_15 = arith.constant 0 : i32
    %c0_i32_16 = arith.constant 0 : i32
    %42 = tpu.memref_slice %arg2[%41, %c0_i32_16] : memref<100x32xf32, #tpu.memory_space<any>> -> memref<1x32xf32, #tpu.memory_space<any>>
    %43 = tpu.memref_squeeze %42 : memref<1x32xf32, #tpu.memory_space<any>> -> memref<32xf32, #tpu.memory_space<any>>
    %c0_i32_17 = arith.constant 0 : i32
    %44 = tpu.memref_slice %arg5[%c5_i32, %c0_i32_17] : memref<8x32xf32, #tpu.memory_space<vmem>> -> memref<1x32xf32, #tpu.memory_space<vmem>>
    %45 = tpu.memref_squeeze %44 : memref<1x32xf32, #tpu.memory_space<vmem>> -> memref<32xf32, #tpu.memory_space<vmem>>
    %46 = tpu.memref_slice %arg6[%c0_i32_15] : memref<1x!tpu.dma_semaphore, #tpu.memory_space<semaphore_mem>> -> memref<1x!tpu.dma_semaphore, #tpu.memory_space<semaphore_mem>>
    %47 = tpu.memref_squeeze %46 : memref<1x!tpu.dma_semaphore, #tpu.memory_space<semaphore_mem>> -> memref<!tpu.dma_semaphore, #tpu.memory_space<semaphore_mem>>
    tpu.enqueue_dma source(%43 : memref<32xf32, #tpu.memory_space<any>>) target(%45 : memref<32xf32, #tpu.memory_space<vmem>>) target_semaphore(%47 : memref<!tpu.dma_semaphore, #tpu.memory_space<semaphore_mem>>)
    %48 = arith.index_cast %arg0 : i32 to index
    %c6 = arith.constant 6 : index
    %49 = memref.load %arg1[%48, %c6] : memref<2x8xi32, #tpu.memory_space<smem>>
    %c6_i32 = arith.constant 6 : i32
    %c0_i32_18 = arith.constant 0 : i32
    %c0_i32_19 = arith.constant 0 : i32
    %50 = tpu.memref_slice %arg2[%49, %c0_i32_19] : memref<100x32xf32, #tpu.memory_space<any>> -> memref<1x32xf32, #tpu.memory_space<any>>
    %51 = tpu.memref_squeeze %50 : memref<1x32xf32, #tpu.memory_space<any>> -> memref<32xf32, #tpu.memory_space<any>>
    %c0_i32_20 = arith.constant 0 : i32
    %52 = tpu.memref_slice %arg5[%c6_i32, %c0_i32_20] : memref<8x32xf32, #tpu.memory_space<vmem>> -> memref<1x32xf32, #tpu.memory_space<vmem>>
    %53 = tpu.memref_squeeze %52 : memref<1x32xf32, #tpu.memory_space<vmem>> -> memref<32xf32, #tpu.memory_space<vmem>>
    %54 = tpu.memref_slice %arg6[%c0_i32_18] : memref<1x!tpu.dma_semaphore, #tpu.memory_space<semaphore_mem>> -> memref<1x!tpu.dma_semaphore, #tpu.memory_space<semaphore_mem>>
    %55 = tpu.memref_squeeze %54 : memref<1x!tpu.dma_semaphore, #tpu.memory_space<semaphore_mem>> -> memref<!tpu.dma_semaphore, #tpu.memory_space<semaphore_mem>>
    tpu.enqueue_dma source(%51 : memref<32xf32, #tpu.memory_space<any>>) target(%53 : memref<32xf32, #tpu.memory_space<vmem>>) target_semaphore(%55 : memref<!tpu.dma_semaphore, #tpu.memory_space<semaphore_mem>>)
    %56 = arith.index_cast %arg0 : i32 to index
    %c7 = arith.constant 7 : index
    %57 = memref.load %arg1[%56, %c7] : memref<2x8xi32, #tpu.memory_space<smem>>
    %c7_i32 = arith.constant 7 : i32
    %c0_i32_21 = arith.constant 0 : i32
    %c0_i32_22 = arith.constant 0 : i32
    %58 = tpu.memref_slice %arg2[%57, %c0_i32_22] : memref<100x32xf32, #tpu.memory_space<any>> -> memref<1x32xf32, #tpu.memory_space<any>>
    %59 = tpu.memref_squeeze %58 : memref<1x32xf32, #tpu.memory_space<any>> -> memref<32xf32, #tpu.memory_space<any>>
    %c0_i32_23 = arith.constant 0 : i32
    %60 = tpu.memref_slice %arg5[%c7_i32, %c0_i32_23] : memref<8x32xf32, #tpu.memory_space<vmem>> -> memref<1x32xf32, #tpu.memory_space<vmem>>
    %61 = tpu.memref_squeeze %60 : memref<1x32xf32, #tpu.memory_space<vmem>> -> memref<32xf32, #tpu.memory_space<vmem>>
    %62 = tpu.memref_slice %arg6[%c0_i32_21] : memref<1x!tpu.dma_semaphore, #tpu.memory_space<semaphore_mem>> -> memref<1x!tpu.dma_semaphore, #tpu.memory_space<semaphore_mem>>
    %63 = tpu.memref_squeeze %62 : memref<1x!tpu.dma_semaphore, #tpu.memory_space<semaphore_mem>> -> memref<!tpu.dma_semaphore, #tpu.memory_space<semaphore_mem>>
    tpu.enqueue_dma source(%59 : memref<32xf32, #tpu.memory_space<any>>) target(%61 : memref<32xf32, #tpu.memory_space<vmem>>) target_semaphore(%63 : memref<!tpu.dma_semaphore, #tpu.memory_space<semaphore_mem>>)
    %c0_i32_24 = arith.constant 0 : i32
    %c0_i32_25 = arith.constant 0 : i32
    %c0_i32_26 = arith.constant 0 : i32
    %c0_i32_27 = arith.constant 0 : i32
    %64 = tpu.memref_slice %arg2[%c0_i32_24, %c0_i32_27] : memref<100x32xf32, #tpu.memory_space<any>> -> memref<1x32xf32, #tpu.memory_space<any>>
    %65 = tpu.memref_squeeze %64 : memref<1x32xf32, #tpu.memory_space<any>> -> memref<32xf32, #tpu.memory_space<any>>
    %c0_i32_28 = arith.constant 0 : i32
    %66 = tpu.memref_slice %arg5[%c0_i32_25, %c0_i32_28] : memref<8x32xf32, #tpu.memory_space<vmem>> -> memref<1x32xf32, #tpu.memory_space<vmem>>
    %67 = tpu.memref_squeeze %66 : memref<1x32xf32, #tpu.memory_space<vmem>> -> memref<32xf32, #tpu.memory_space<vmem>>
    %68 = tpu.memref_slice %arg6[%c0_i32_26] : memref<1x!tpu.dma_semaphore, #tpu.memory_space<semaphore_mem>> -> memref<1x!tpu.dma_semaphore, #tpu.memory_space<semaphore_mem>>
    %69 = tpu.memref_squeeze %68 : memref<1x!tpu.dma_semaphore, #tpu.memory_space<semaphore_mem>> -> memref<!tpu.dma_semaphore, #tpu.memory_space<semaphore_mem>>
    tpu.wait_dma2 semaphore(%69 : memref<!tpu.dma_semaphore, #tpu.memory_space<semaphore_mem>>) src(%65 : memref<32xf32, #tpu.memory_space<any>>) dst(%67 : memref<32xf32, #tpu.memory_space<vmem>>)
    %c0_i32_29 = arith.constant 0 : i32
    %c1_i32_30 = arith.constant 1 : i32
    %c0_i32_31 = arith.constant 0 : i32
    %c0_i32_32 = arith.constant 0 : i32
    %70 = tpu.memref_slice %arg2[%c0_i32_29, %c0_i32_32] : memref<100x32xf32, #tpu.memory_space<any>> -> memref<1x32xf32, #tpu.memory_space<any>>
    %71 = tpu.memref_squeeze %70 : memref<1x32xf32, #tpu.memory_space<any>> -> memref<32xf32, #tpu.memory_space<any>>
    %c0_i32_33 = arith.constant 0 : i32
    %72 = tpu.memref_slice %arg5[%c1_i32_30, %c0_i32_33] : memref<8x32xf32, #tpu.memory_space<vmem>> -> memref<1x32xf32, #tpu.memory_space<vmem>>
    %73 = tpu.memref_squeeze %72 : memref<1x32xf32, #tpu.memory_space<vmem>> -> memref<32xf32, #tpu.memory_space<vmem>>
    %74 = tpu.memref_slice %arg6[%c0_i32_31] : memref<1x!tpu.dma_semaphore, #tpu.memory_space<semaphore_mem>> -> memref<1x!tpu.dma_semaphore, #tpu.memory_space<semaphore_mem>>
    %75 = tpu.memref_squeeze %74 : memref<1x!tpu.dma_semaphore, #tpu.memory_space<semaphore_mem>> -> memref<!tpu.dma_semaphore, #tpu.memory_space<semaphore_mem>>
    tpu.wait_dma2 semaphore(%75 : memref<!tpu.dma_semaphore, #tpu.memory_space<semaphore_mem>>) src(%71 : memref<32xf32, #tpu.memory_space<any>>) dst(%73 : memref<32xf32, #tpu.memory_space<vmem>>)
    %c0_i32_34 = arith.constant 0 : i32
    %c2_i32_35 = arith.constant 2 : i32
    %c0_i32_36 = arith.constant 0 : i32
    %c0_i32_37 = arith.constant 0 : i32
    %76 = tpu.memref_slice %arg2[%c0_i32_34, %c0_i32_37] : memref<100x32xf32, #tpu.memory_space<any>> -> memref<1x32xf32, #tpu.memory_space<any>>
    %77 = tpu.memref_squeeze %76 : memref<1x32xf32, #tpu.memory_space<any>> -> memref<32xf32, #tpu.memory_space<any>>
    %c0_i32_38 = arith.constant 0 : i32
    %78 = tpu.memref_slice %arg5[%c2_i32_35, %c0_i32_38] : memref<8x32xf32, #tpu.memory_space<vmem>> -> memref<1x32xf32, #tpu.memory_space<vmem>>
    %79 = tpu.memref_squeeze %78 : memref<1x32xf32, #tpu.memory_space<vmem>> -> memref<32xf32, #tpu.memory_space<vmem>>
    %80 = tpu.memref_slice %arg6[%c0_i32_36] : memref<1x!tpu.dma_semaphore, #tpu.memory_space<semaphore_mem>> -> memref<1x!tpu.dma_semaphore, #tpu.memory_space<semaphore_mem>>
    %81 = tpu.memref_squeeze %80 : memref<1x!tpu.dma_semaphore, #tpu.memory_space<semaphore_mem>> -> memref<!tpu.dma_semaphore, #tpu.memory_space<semaphore_mem>>
    tpu.wait_dma2 semaphore(%81 : memref<!tpu.dma_semaphore, #tpu.memory_space<semaphore_mem>>) src(%77 : memref<32xf32, #tpu.memory_space<any>>) dst(%79 : memref<32xf32, #tpu.memory_space<vmem>>)
    %c0_i32_39 = arith.constant 0 : i32
    %c3_i32_40 = arith.constant 3 : i32
    %c0_i32_41 = arith.constant 0 : i32
    %c0_i32_42 = arith.constant 0 : i32
    %82 = tpu.memref_slice %arg2[%c0_i32_39, %c0_i32_42] : memref<100x32xf32, #tpu.memory_space<any>> -> memref<1x32xf32, #tpu.memory_space<any>>
    %83 = tpu.memref_squeeze %82 : memref<1x32xf32, #tpu.memory_space<any>> -> memref<32xf32, #tpu.memory_space<any>>
    %c0_i32_43 = arith.constant 0 : i32
    %84 = tpu.memref_slice %arg5[%c3_i32_40, %c0_i32_43] : memref<8x32xf32, #tpu.memory_space<vmem>> -> memref<1x32xf32, #tpu.memory_space<vmem>>
    %85 = tpu.memref_squeeze %84 : memref<1x32xf32, #tpu.memory_space<vmem>> -> memref<32xf32, #tpu.memory_space<vmem>>
    %86 = tpu.memref_slice %arg6[%c0_i32_41] : memref<1x!tpu.dma_semaphore, #tpu.memory_space<semaphore_mem>> -> memref<1x!tpu.dma_semaphore, #tpu.memory_space<semaphore_mem>>
    %87 = tpu.memref_squeeze %86 : memref<1x!tpu.dma_semaphore, #tpu.memory_space<semaphore_mem>> -> memref<!tpu.dma_semaphore, #tpu.memory_space<semaphore_mem>>
    tpu.wait_dma2 semaphore(%87 : memref<!tpu.dma_semaphore, #tpu.memory_space<semaphore_mem>>) src(%83 : memref<32xf32, #tpu.memory_space<any>>) dst(%85 : memref<32xf32, #tpu.memory_space<vmem>>)
    %c0_i32_44 = arith.constant 0 : i32
    %c4_i32_45 = arith.constant 4 : i32
    %c0_i32_46 = arith.constant 0 : i32
    %c0_i32_47 = arith.constant 0 : i32
    %88 = tpu.memref_slice %arg2[%c0_i32_44, %c0_i32_47] : memref<100x32xf32, #tpu.memory_space<any>> -> memref<1x32xf32, #tpu.memory_space<any>>
    %89 = tpu.memref_squeeze %88 : memref<1x32xf32, #tpu.memory_space<any>> -> memref<32xf32, #tpu.memory_space<any>>
    %c0_i32_48 = arith.constant 0 : i32
    %90 = tpu.memref_slice %arg5[%c4_i32_45, %c0_i32_48] : memref<8x32xf32, #tpu.memory_space<vmem>> -> memref<1x32xf32, #tpu.memory_space<vmem>>
    %91 = tpu.memref_squeeze %90 : memref<1x32xf32, #tpu.memory_space<vmem>> -> memref<32xf32, #tpu.memory_space<vmem>>
    %92 = tpu.memref_slice %arg6[%c0_i32_46] : memref<1x!tpu.dma_semaphore, #tpu.memory_space<semaphore_mem>> -> memref<1x!tpu.dma_semaphore, #tpu.memory_space<semaphore_mem>>
    %93 = tpu.memref_squeeze %92 : memref<1x!tpu.dma_semaphore, #tpu.memory_space<semaphore_mem>> -> memref<!tpu.dma_semaphore, #tpu.memory_space<semaphore_mem>>
    tpu.wait_dma2 semaphore(%93 : memref<!tpu.dma_semaphore, #tpu.memory_space<semaphore_mem>>) src(%89 : memref<32xf32, #tpu.memory_space<any>>) dst(%91 : memref<32xf32, #tpu.memory_space<vmem>>)
    %c0_i32_49 = arith.constant 0 : i32
    %c5_i32_50 = arith.constant 5 : i32
    %c0_i32_51 = arith.constant 0 : i32
    %c0_i32_52 = arith.constant 0 : i32
    %94 = tpu.memref_slice %arg2[%c0_i32_49, %c0_i32_52] : memref<100x32xf32, #tpu.memory_space<any>> -> memref<1x32xf32, #tpu.memory_space<any>>
    %95 = tpu.memref_squeeze %94 : memref<1x32xf32, #tpu.memory_space<any>> -> memref<32xf32, #tpu.memory_space<any>>
    %c0_i32_53 = arith.constant 0 : i32
    %96 = tpu.memref_slice %arg5[%c5_i32_50, %c0_i32_53] : memref<8x32xf32, #tpu.memory_space<vmem>> -> memref<1x32xf32, #tpu.memory_space<vmem>>
    %97 = tpu.memref_squeeze %96 : memref<1x32xf32, #tpu.memory_space<vmem>> -> memref<32xf32, #tpu.memory_space<vmem>>
    %98 = tpu.memref_slice %arg6[%c0_i32_51] : memref<1x!tpu.dma_semaphore, #tpu.memory_space<semaphore_mem>> -> memref<1x!tpu.dma_semaphore, #tpu.memory_space<semaphore_mem>>
    %99 = tpu.memref_squeeze %98 : memref<1x!tpu.dma_semaphore, #tpu.memory_space<semaphore_mem>> -> memref<!tpu.dma_semaphore, #tpu.memory_space<semaphore_mem>>
    tpu.wait_dma2 semaphore(%99 : memref<!tpu.dma_semaphore, #tpu.memory_space<semaphore_mem>>) src(%95 : memref<32xf32, #tpu.memory_space<any>>) dst(%97 : memref<32xf32, #tpu.memory_space<vmem>>)
    %c0_i32_54 = arith.constant 0 : i32
    %c6_i32_55 = arith.constant 6 : i32
    %c0_i32_56 = arith.constant 0 : i32
    %c0_i32_57 = arith.constant 0 : i32
    %100 = tpu.memref_slice %arg2[%c0_i32_54, %c0_i32_57] : memref<100x32xf32, #tpu.memory_space<any>> -> memref<1x32xf32, #tpu.memory_space<any>>
    %101 = tpu.memref_squeeze %100 : memref<1x32xf32, #tpu.memory_space<any>> -> memref<32xf32, #tpu.memory_space<any>>
    %c0_i32_58 = arith.constant 0 : i32
    %102 = tpu.memref_slice %arg5[%c6_i32_55, %c0_i32_58] : memref<8x32xf32, #tpu.memory_space<vmem>> -> memref<1x32xf32, #tpu.memory_space<vmem>>
    %103 = tpu.memref_squeeze %102 : memref<1x32xf32, #tpu.memory_space<vmem>> -> memref<32xf32, #tpu.memory_space<vmem>>
    %104 = tpu.memref_slice %arg6[%c0_i32_56] : memref<1x!tpu.dma_semaphore, #tpu.memory_space<semaphore_mem>> -> memref<1x!tpu.dma_semaphore, #tpu.memory_space<semaphore_mem>>
    %105 = tpu.memref_squeeze %104 : memref<1x!tpu.dma_semaphore, #tpu.memory_space<semaphore_mem>> -> memref<!tpu.dma_semaphore, #tpu.memory_space<semaphore_mem>>
    tpu.wait_dma2 semaphore(%105 : memref<!tpu.dma_semaphore, #tpu.memory_space<semaphore_mem>>) src(%101 : memref<32xf32, #tpu.memory_space<any>>) dst(%103 : memref<32xf32, #tpu.memory_space<vmem>>)
    %c0_i32_59 = arith.constant 0 : i32
    %c7_i32_60 = arith.constant 7 : i32
    %c0_i32_61 = arith.constant 0 : i32
    %c0_i32_62 = arith.constant 0 : i32
    %106 = tpu.memref_slice %arg2[%c0_i32_59, %c0_i32_62] : memref<100x32xf32, #tpu.memory_space<any>> -> memref<1x32xf32, #tpu.memory_space<any>>
    %107 = tpu.memref_squeeze %106 : memref<1x32xf32, #tpu.memory_space<any>> -> memref<32xf32, #tpu.memory_space<any>>
    %c0_i32_63 = arith.constant 0 : i32
    %108 = tpu.memref_slice %arg5[%c7_i32_60, %c0_i32_63] : memref<8x32xf32, #tpu.memory_space<vmem>> -> memref<1x32xf32, #tpu.memory_space<vmem>>
    %109 = tpu.memref_squeeze %108 : memref<1x32xf32, #tpu.memory_space<vmem>> -> memref<32xf32, #tpu.memory_space<vmem>>
    %110 = tpu.memref_slice %arg6[%c0_i32_61] : memref<1x!tpu.dma_semaphore, #tpu.memory_space<semaphore_mem>> -> memref<1x!tpu.dma_semaphore, #tpu.memory_space<semaphore_mem>>
    %111 = tpu.memref_squeeze %110 : memref<1x!tpu.dma_semaphore, #tpu.memory_space<semaphore_mem>> -> memref<!tpu.dma_semaphore, #tpu.memory_space<semaphore_mem>>
    tpu.wait_dma2 semaphore(%111 : memref<!tpu.dma_semaphore, #tpu.memory_space<semaphore_mem>>) src(%107 : memref<32xf32, #tpu.memory_space<any>>) dst(%109 : memref<32xf32, #tpu.memory_space<vmem>>)
    %c0_64 = arith.constant 0 : index
    %c0_65 = arith.constant 0 : index
    %112 = vector.load %arg5[%c0_64, %c0_65] : memref<8x32xf32, #tpu.memory_space<vmem>>, vector<8x32xf32>
    %c0_66 = arith.constant 0 : index
    %c0_67 = arith.constant 0 : index
    %113 = vector.load %arg3[%c0_66, %c0_67] : memref<8x32xf32, #tpu.memory_space<vmem>>, vector<8x32xf32>
    %114 = arith.addf %112, %113 : vector<8x32xf32>
    %115 = vector.shape_cast %114 : vector<8x32xf32> to vector<1x8x32xf32>
    %c0_68 = arith.constant 0 : index
    %c0_69 = arith.constant 0 : index
    %c0_70 = arith.constant 0 : index
    %116 = vector.load %arg4[%c0_68, %c0_69, %c0_70] : memref<1x8x32xf32, #tpu.memory_space<vmem>>, vector<1x8x32xf32>
    tpu.vector_store %arg4[%c0_68, %c0_69, %c0_70], %115 {strides = array<i32>} : memref<1x8x32xf32, #tpu.memory_space<vmem>>, vector<1x8x32xf32>,
    return
  }
  func.func @transform_1(%arg0: i32, %arg1: memref<2x8xi32, #tpu.memory_space<smem>>) -> (i32, i32) {
    %c0_i32 = arith.constant 0 : i32
    %c0_i32_0 = arith.constant 0 : i32
    %c0_i32_1 = arith.constant 0 : i32
    return %c0_i32, %c0_i32_0 : i32, i32
  }
  func.func @transform_2(%arg0: i32, %arg1: memref<2x8xi32, #tpu.memory_space<smem>>) -> (i32, i32, i32) {
    %c0_i32 = arith.constant 0 : i32
    %c0_i32_0 = arith.constant 0 : i32
    %c0_i32_1 = arith.constant 0 : i32
    return %arg0, %c0_i32, %c0_i32_0 : i32, i32, i32
  }
}

module attributes {stable_mosaic.version = 11 : i64} {
  func.func @clip_layer_kernel(%arg0: i32, %arg1: memref<2x8x32xf32, #tpu.memory_space<vmem>>, %arg2: memref<1x32xf32, #tpu.memory_space<vmem>>, %arg3: memref<1x32xf32, #tpu.memory_space<vmem>>, %arg4: memref<32x96xbf16, #tpu.memory_space<vmem>>, %arg5: memref<1x96xf32, #tpu.memory_space<vmem>>, %arg6: memref<32x32xbf16, #tpu.memory_space<vmem>>, %arg7: memref<1x32xf32, #tpu.memory_space<vmem>>, %arg8: memref<1x32xf32, #tpu.memory_space<vmem>>, %arg9: memref<1x32xf32, #tpu.memory_space<vmem>>, %arg10: memref<1x32xf32, #tpu.memory_space<vmem>>, %arg11: memref<1x32xf32, #tpu.memory_space<vmem>>, %arg12: memref<1x32xf32, #tpu.memory_space<vmem>>, %arg13: memref<32x128xbf16, #tpu.memory_space<vmem>>, %arg14: memref<1x128xf32, #tpu.memory_space<vmem>>, %arg15: memref<128x32xbf16, #tpu.memory_space<vmem>>, %arg16: memref<2x8x32xf32, #tpu.memory_space<vmem>>, %arg17: memref<16x32xbf16, #tpu.memory_space<vmem>>, %arg18: memref<16x32xf32, #tpu.memory_space<vmem>>) attributes {dimension_semantics = [#tpu.dimension_semantics<arbitrary>], iteration_bounds = array<i64: 1>, scalar_prefetch = 0 : i64, scratch_operands = 2 : i64, tpu.core_type = #tpu.core_type<tc>, window_params = [{pipeline_mode = #tpu.pipeline_mode<synchronous>, transform_indices = @transform_0, window_bounds = array<i64: 2, 8, 32>}, {pipeline_mode = #tpu.pipeline_mode<synchronous>, transform_indices = @transform_1, window_bounds = array<i64: 1, 32>}, {pipeline_mode = #tpu.pipeline_mode<synchronous>, transform_indices = @transform_2, window_bounds = array<i64: 1, 32>}, {pipeline_mode = #tpu.pipeline_mode<synchronous>, transform_indices = @transform_3, window_bounds = array<i64: 32, 96>}, {pipeline_mode = #tpu.pipeline_mode<synchronous>, transform_indices = @transform_4, window_bounds = array<i64: 1, 96>}, {pipeline_mode = #tpu.pipeline_mode<synchronous>, transform_indices = @transform_5, window_bounds = array<i64: 32, 32>}, {pipeline_mode = #tpu.pipeline_mode<synchronous>, transform_indices = @transform_6, window_bounds = array<i64: 1, 32>}, {pipeline_mode = #tpu.pipeline_mode<synchronous>, transform_indices = @transform_7, window_bounds = array<i64: 1, 32>}, {pipeline_mode = #tpu.pipeline_mode<synchronous>, transform_indices = @transform_8, window_bounds = array<i64: 1, 32>}, {pipeline_mode = #tpu.pipeline_mode<synchronous>, transform_indices = @transform_9, window_bounds = array<i64: 1, 32>}, {pipeline_mode = #tpu.pipeline_mode<synchronous>, transform_indices = @transform_10, window_bounds = array<i64: 1, 32>}, {pipeline_mode = #tpu.pipeline_mode<synchronous>, transform_indices = @transform_11, window_bounds = array<i64: 1, 32>}, {transform_indices = @transform_12, window_bounds = array<i64: 32, 128>}, {transform_indices = @transform_13, window_bounds = array<i64: 1, 128>}, {transform_indices = @transform_14, window_bounds = array<i64: 128, 32>}, {pipeline_mode = #tpu.pipeline_mode<synchronous>, transform_indices = @transform_15, window_bounds = array<i64: 2, 8, 32>}]} {
    %c0_i32 = arith.constant 0 : i32
    %0 = arith.cmpi eq, %arg0, %c0_i32 : i32
    %1 = arith.extui %0 : i1 to i32
    %c0_i32_0 = arith.constant 0 : i32
    %2 = arith.cmpi ne, %1, %c0_i32_0 : i32
    scf.if %2 {
      %c0_17 = arith.constant 0 : index
      %c0_18 = arith.constant 0 : index
      %c0_19 = arith.constant 0 : index
      %26 = vector.load %arg1[%c0_17, %c0_18, %c0_19] : memref<2x8x32xf32, #tpu.memory_space<vmem>>, vector<2x8x32xf32>
      %27 = vector.shape_cast %26 : vector<2x8x32xf32> to vector<16x32xf32>
      %c0_20 = arith.constant 0 : index
      %c0_21 = arith.constant 0 : index
      %28 = vector.load %arg2[%c0_20, %c0_21] : memref<1x32xf32, #tpu.memory_space<vmem>>, vector<1x32xf32>
      %c0_22 = arith.constant 0 : index
      %c0_23 = arith.constant 0 : index
      %29 = vector.load %arg3[%c0_22, %c0_23] : memref<1x32xf32, #tpu.memory_space<vmem>>, vector<1x32xf32>
      %cst_24 = arith.constant dense<0.000000e+00> : vector<16xf32>
      %30 = vector.multi_reduction <add>, %27, %cst_24 [1] : vector<16x32xf32> to vector<16xf32>
      %31 = vector.shape_cast %30 : vector<16xf32> to vector<16x1xf32>
      %cst_25 = arith.constant 3.200000e+01 : f32
      %32 = vector.broadcast %cst_25 : f32 to vector<16x1xf32>
      %33 = arith.divf %31, %32 : vector<16x1xf32>
      %34 = vector.broadcast %33 : vector<16x1xf32> to vector<16x32xf32>
      %35 = arith.subf %27, %34 : vector<16x32xf32>
      %36 = arith.mulf %35, %35 : vector<16x32xf32>
      %cst_26 = arith.constant dense<0.000000e+00> : vector<16xf32>
      %37 = vector.multi_reduction <add>, %36, %cst_26 [1] : vector<16x32xf32> to vector<16xf32>
      %38 = vector.shape_cast %37 : vector<16xf32> to vector<16x1xf32>
      %cst_27 = arith.constant 3.200000e+01 : f32
      %39 = vector.broadcast %cst_27 : f32 to vector<16x1xf32>
      %40 = arith.divf %38, %39 : vector<16x1xf32>
      %41 = vector.broadcast %33 : vector<16x1xf32> to vector<16x32xf32>
      %42 = arith.subf %27, %41 : vector<16x32xf32>
      %cst_28 = arith.constant 9.99999974E-6 : f32
      %43 = vector.broadcast %cst_28 : f32 to vector<16x1xf32>
      %44 = arith.addf %40, %43 : vector<16x1xf32>
      %45 = math.rsqrt %44 : vector<16x1xf32>
      %46 = vector.broadcast %45 : vector<16x1xf32> to vector<16x32xf32>
      %47 = arith.mulf %42, %46 : vector<16x32xf32>
      %48 = vector.broadcast %28 : vector<1x32xf32> to vector<16x32xf32>
      %49 = arith.mulf %47, %48 : vector<16x32xf32>
      %50 = vector.broadcast %29 : vector<1x32xf32> to vector<16x32xf32>
      %51 = arith.addf %49, %50 : vector<16x32xf32>
      %52 = arith.truncf %51 : vector<16x32xf32> to vector<16x32xbf16>
      %c0_29 = arith.constant 0 : index
      %c0_30 = arith.constant 0 : index
      %53 = vector.load %arg4[%c0_29, %c0_30] : memref<32x96xbf16, #tpu.memory_space<vmem>>, vector<32x96xbf16>
      %cst_31 = arith.constant dense<0.000000e+00> : vector<16x96xf32>
      %54 = tpu.matmul %52, %53, %cst_31 {dimension_numbers = #tpu.dot_dimension_numbers<[1], [0], [0], [1], [0, 0, 1, 1], [], []>} : vector<16x32xbf16>, vector<32x96xbf16>, vector<16x96xf32> -> vector<16x96xf32>
      %c0_32 = arith.constant 0 : index
      %c0_33 = arith.constant 0 : index
      %55 = vector.load %arg5[%c0_32, %c0_33] : memref<1x96xf32, #tpu.memory_space<vmem>>, vector<1x96xf32>
      %56 = vector.broadcast %55 : vector<1x96xf32> to vector<16x96xf32>
      %57 = arith.addf %54, %56 : vector<16x96xf32>
      %58 = vector.extract_strided_slice %57 {offsets = [0, 0], sizes = [16, 32], strides = [1, 1]} : vector<16x96xf32> to vector<16x32xf32>
      %59 = vector.shape_cast %58 : vector<16x32xf32> to vector<2x8x4x8xf32>
      %60 = tpu.transpose %59, [0, 2, 1, 3] : vector<2x8x4x8xf32> -> vector<2x4x8x8xf32>
      %61 = vector.shape_cast %60 : vector<2x4x8x8xf32> to vector<8x8x8xf32>
      %62 = arith.truncf %61 : vector<8x8x8xf32> to vector<8x8x8xbf16>
      %63 = vector.extract_strided_slice %57 {offsets = [0, 32], sizes = [16, 32], strides = [1, 1]} : vector<16x96xf32> to vector<16x32xf32>
      %64 = vector.shape_cast %63 : vector<16x32xf32> to vector<2x8x4x8xf32>
      %65 = tpu.transpose %64, [0, 2, 1, 3] : vector<2x8x4x8xf32> -> vector<2x4x8x8xf32>
      %66 = vector.shape_cast %65 : vector<2x4x8x8xf32> to vector<8x8x8xf32>
      %67 = arith.truncf %66 : vector<8x8x8xf32> to vector<8x8x8xbf16>
      %68 = vector.extract_strided_slice %57 {offsets = [0, 64], sizes = [16, 32], strides = [1, 1]} : vector<16x96xf32> to vector<16x32xf32>
      %69 = vector.shape_cast %68 : vector<16x32xf32> to vector<2x8x4x8xf32>
      %70 = tpu.transpose %69, [0, 2, 1, 3] : vector<2x8x4x8xf32> -> vector<2x4x8x8xf32>
      %71 = vector.shape_cast %70 : vector<2x4x8x8xf32> to vector<8x8x8xf32>
      %72 = arith.truncf %71 : vector<8x8x8xf32> to vector<8x8x8xbf16>
      "tpu.trace_start"() <{level = 10 : i32, message = "bqd,bkd->bqk"}> : () -> ()
      %cst_34 = arith.constant dense<0.000000e+00> : vector<8x8x8xf32>
      %73 = tpu.matmul %62, %67, %cst_34 {dimension_numbers = #tpu.dot_dimension_numbers<[2], [2], [1], [1], [0, 0, 0, 1, 1, 1], [0], [0]>} : vector<8x8x8xbf16>, vector<8x8x8xbf16>, vector<8x8x8xf32> -> vector<8x8x8xf32>
      "tpu.trace_stop"() : () -> ()
      %cst_35 = arith.constant 0.353553385 : f32
      %74 = vector.broadcast %cst_35 : f32 to vector<8x8x8xf32>
      %75 = arith.mulf %73, %74 : vector<8x8x8xf32>
      %cst_36 = arith.constant dense<0xFF800000> : vector<8x8xf32>
      %76 = vector.multi_reduction <maximumf>, %75, %cst_36 [2] : vector<8x8x8xf32> to vector<8x8xf32>
      %77 = vector.shape_cast %76 : vector<8x8xf32> to vector<8x8x1xf32>
      %78 = vector.broadcast %77 : vector<8x8x1xf32> to vector<8x8x8xf32>
      %79 = arith.subf %75, %78 : vector<8x8x8xf32>
      %80 = math.exp %79 : vector<8x8x8xf32>
      %cst_37 = arith.constant dense<0.000000e+00> : vector<8x8xf32>
      %81 = vector.multi_reduction <add>, %80, %cst_37 [2] : vector<8x8x8xf32> to vector<8x8xf32>
      %82 = vector.shape_cast %81 : vector<8x8xf32> to vector<8x8x1xf32>
      %83 = tpu.reciprocal %82 {approx = true} : vector<8x8x1xf32> -> vector<8x8x1xf32>
      %84 = vector.broadcast %83 : vector<8x8x1xf32> to vector<8x8x8xf32>
      %85 = arith.mulf %80, %84 : vector<8x8x8xf32>
      %86 = arith.truncf %85 : vector<8x8x8xf32> to vector<8x8x8xbf16>
      "tpu.trace_start"() <{level = 10 : i32, message = "bqk,bkd->bqd"}> : () -> ()
      %cst_38 = arith.constant dense<0.000000e+00> : vector<8x8x8xf32>
      %87 = tpu.matmul %86, %72, %cst_38 {dimension_numbers = #tpu.dot_dimension_numbers<[2], [1], [1], [2], [0, 0, 0, 1, 1, 2], [0], [0]>} : vector<8x8x8xbf16>, vector<8x8x8xbf16>, vector<8x8x8xf32> -> vector<8x8x8xf32>
      "tpu.trace_stop"() : () -> ()
      %88 = vector.shape_cast %87 : vector<8x8x8xf32> to vector<2x4x8x8xf32>
      %89 = tpu.transpose %88, [0, 2, 1, 3] : vector<2x4x8x8xf32> -> vector<2x8x4x8xf32>
      %90 = vector.shape_cast %89 : vector<2x8x4x8xf32> to vector<16x32xf32>
      %91 = arith.truncf %90 : vector<16x32xf32> to vector<16x32xbf16>
      %c0_39 = arith.constant 0 : index
      %c0_40 = arith.constant 0 : index
      %92 = vector.load %arg6[%c0_39, %c0_40] : memref<32x32xbf16, #tpu.memory_space<vmem>>, vector<32x32xbf16>
      %cst_41 = arith.constant dense<0.000000e+00> : vector<16x32xf32>
      %93 = tpu.matmul %91, %92, %cst_41 {dimension_numbers = #tpu.dot_dimension_numbers<[1], [0], [0], [1], [0, 0, 1, 1], [], []>} : vector<16x32xbf16>, vector<32x32xbf16>, vector<16x32xf32> -> vector<16x32xf32>
      %c0_42 = arith.constant 0 : index
      %c0_43 = arith.constant 0 : index
      %94 = vector.load %arg7[%c0_42, %c0_43] : memref<1x32xf32, #tpu.memory_space<vmem>>, vector<1x32xf32>
      %95 = vector.broadcast %94 : vector<1x32xf32> to vector<16x32xf32>
      %96 = arith.addf %93, %95 : vector<16x32xf32>
      %97 = arith.addf %27, %96 : vector<16x32xf32>
      %c0_44 = arith.constant 0 : index
      %c0_45 = arith.constant 0 : index
      %98 = vector.load %arg8[%c0_44, %c0_45] : memref<1x32xf32, #tpu.memory_space<vmem>>, vector<1x32xf32>
      %c0_46 = arith.constant 0 : index
      %c0_47 = arith.constant 0 : index
      %99 = vector.load %arg9[%c0_46, %c0_47] : memref<1x32xf32, #tpu.memory_space<vmem>>, vector<1x32xf32>
      %cst_48 = arith.constant dense<0.000000e+00> : vector<16xf32>
      %100 = vector.multi_reduction <add>, %97, %cst_48 [1] : vector<16x32xf32> to vector<16xf32>
      %101 = vector.shape_cast %100 : vector<16xf32> to vector<16x1xf32>
      %cst_49 = arith.constant 3.200000e+01 : f32
      %102 = vector.broadcast %cst_49 : f32 to vector<16x1xf32>
      %103 = arith.divf %101, %102 : vector<16x1xf32>
      %104 = vector.broadcast %103 : vector<16x1xf32> to vector<16x32xf32>
      %105 = arith.subf %97, %104 : vector<16x32xf32>
      %106 = arith.mulf %105, %105 : vector<16x32xf32>
      %cst_50 = arith.constant dense<0.000000e+00> : vector<16xf32>
      %107 = vector.multi_reduction <add>, %106, %cst_50 [1] : vector<16x32xf32> to vector<16xf32>
      %108 = vector.shape_cast %107 : vector<16xf32> to vector<16x1xf32>
      %cst_51 = arith.constant 3.200000e+01 : f32
      %109 = vector.broadcast %cst_51 : f32 to vector<16x1xf32>
      %110 = arith.divf %108, %109 : vector<16x1xf32>
      %111 = vector.broadcast %103 : vector<16x1xf32> to vector<16x32xf32>
      %112 = arith.subf %97, %111 : vector<16x32xf32>
      %cst_52 = arith.constant 9.99999974E-6 : f32
      %113 = vector.broadcast %cst_52 : f32 to vector<16x1xf32>
      %114 = arith.addf %110, %113 : vector<16x1xf32>
      %115 = math.rsqrt %114 : vector<16x1xf32>
      %116 = vector.broadcast %115 : vector<16x1xf32> to vector<16x32xf32>
      %117 = arith.mulf %112, %116 : vector<16x32xf32>
      %118 = vector.broadcast %98 : vector<1x32xf32> to vector<16x32xf32>
      %119 = arith.mulf %117, %118 : vector<16x32xf32>
      %120 = vector.broadcast %99 : vector<1x32xf32> to vector<16x32xf32>
      %121 = arith.addf %119, %120 : vector<16x32xf32>
      %122 = arith.truncf %121 : vector<16x32xf32> to vector<16x32xbf16>
      %c0_53 = arith.constant 0 : index
      %c0_54 = arith.constant 0 : index
      %123 = vector.load %arg17[%c0_53, %c0_54] : memref<16x32xbf16, #tpu.memory_space<vmem>>, vector<16x32xbf16>
      tpu.vector_store %arg17[%c0_53, %c0_54], %122 {strides = array<i32>} : memref<16x32xbf16, #tpu.memory_space<vmem>>, vector<16x32xbf16>,
      %c0_55 = arith.constant 0 : index
      %c0_56 = arith.constant 0 : index
      %124 = vector.load %arg18[%c0_55, %c0_56] : memref<16x32xf32, #tpu.memory_space<vmem>>, vector<16x32xf32>
      tpu.vector_store %arg18[%c0_55, %c0_56], %97 {strides = array<i32>} : memref<16x32xf32, #tpu.memory_space<vmem>>, vector<16x32xf32>,
    } else {
    }
    %c0 = arith.constant 0 : index
    %c0_1 = arith.constant 0 : index
    %3 = vector.load %arg17[%c0, %c0_1] : memref<16x32xbf16, #tpu.memory_space<vmem>>, vector<16x32xbf16>
    %c0_2 = arith.constant 0 : index
    %c0_3 = arith.constant 0 : index
    %4 = vector.load %arg13[%c0_2, %c0_3] : memref<32x128xbf16, #tpu.memory_space<vmem>>, vector<32x128xbf16>
    %cst = arith.constant dense<0.000000e+00> : vector<16x128xf32>
    %5 = tpu.matmul %3, %4, %cst {dimension_numbers = #tpu.dot_dimension_numbers<[1], [0], [0], [1], [0, 0, 1, 1], [], []>} : vector<16x32xbf16>, vector<32x128xbf16>, vector<16x128xf32> -> vector<16x128xf32>
    %c0_4 = arith.constant 0 : index
    %c0_5 = arith.constant 0 : index
    %6 = vector.load %arg14[%c0_4, %c0_5] : memref<1x128xf32, #tpu.memory_space<vmem>>, vector<1x128xf32>
    %7 = vector.broadcast %6 : vector<1x128xf32> to vector<16x128xf32>
    %8 = arith.addf %5, %7 : vector<16x128xf32>
    %cst_6 = arith.constant 1.702000e+00 : f32
    %9 = vector.broadcast %cst_6 : f32 to vector<16x128xf32>
    %10 = arith.mulf %9, %8 : vector<16x128xf32>
    %11 = arith.negf %10 : vector<16x128xf32>
    %12 = math.exp %11 : vector<16x128xf32>
    %cst_7 = arith.constant 1.000000e+00 : f32
    %13 = vector.broadcast %cst_7 : f32 to vector<16x128xf32>
    %14 = arith.addf %13, %12 : vector<16x128xf32>
    %15 = arith.divf %13, %14 : vector<16x128xf32>
    %16 = arith.mulf %8, %15 : vector<16x128xf32>
    %c0_8 = arith.constant 0 : index
    %c0_9 = arith.constant 0 : index
    %17 = vector.load %arg18[%c0_8, %c0_9] : memref<16x32xf32, #tpu.memory_space<vmem>>, vector<16x32xf32>
    %18 = arith.truncf %16 : vector<16x128xf32> to vector<16x128xbf16>
    %c0_10 = arith.constant 0 : index
    %c0_11 = arith.constant 0 : index
    %19 = vector.load %arg15[%c0_10, %c0_11] : memref<128x32xbf16, #tpu.memory_space<vmem>>, vector<128x32xbf16>
    %cst_12 = arith.constant dense<0.000000e+00> : vector<16x32xf32>
    %20 = tpu.matmul %18, %19, %cst_12 {dimension_numbers = #tpu.dot_dimension_numbers<[1], [0], [0], [1], [0, 0, 1, 1], [], []>} : vector<16x128xbf16>, vector<128x32xbf16>, vector<16x32xf32> -> vector<16x32xf32>
    %21 = arith.addf %17, %20 : vector<16x32xf32>
    %c0_13 = arith.constant 0 : index
    %c0_14 = arith.constant 0 : index
    %22 = vector.load %arg18[%c0_13, %c0_14] : memref<16x32xf32, #tpu.memory_space<vmem>>, vector<16x32xf32>
    tpu.vector_store %arg18[%c0_13, %c0_14], %21 {strides = array<i32>} : memref<16x32xf32, #tpu.memory_space<vmem>>, vector<16x32xf32>,
    %c0_i32_15 = arith.constant 0 : i32
    %23 = arith.cmpi eq, %arg0, %c0_i32_15 : i32
    %24 = arith.extui %23 : i1 to i32
    %c0_i32_16 = arith.constant 0 : i32
    %25 = arith.cmpi ne, %24, %c0_i32_16 : i32
    scf.if %25 {
      %c0_17 = arith.constant 0 : index
      %c0_18 = arith.constant 0 : index
      %26 = vector.load %arg18[%c0_17, %c0_18] : memref<16x32xf32, #tpu.memory_space<vmem>>, vector<16x32xf32>
      %c0_19 = arith.constant 0 : index
      %c0_20 = arith.constant 0 : index
      %27 = vector.load %arg10[%c0_19, %c0_20] : memref<1x32xf32, #tpu.memory_space<vmem>>, vector<1x32xf32>
      %28 = vector.broadcast %27 : vector<1x32xf32> to vector<16x32xf32>
      %29 = arith.addf %26, %28 : vector<16x32xf32>
      %c0_21 = arith.constant 0 : index
      %c0_22 = arith.constant 0 : index
      %30 = vector.load %arg11[%c0_21, %c0_22] : memref<1x32xf32, #tpu.memory_space<vmem>>, vector<1x32xf32>
      %c0_23 = arith.constant 0 : index
      %c0_24 = arith.constant 0 : index
      %31 = vector.load %arg12[%c0_23, %c0_24] : memref<1x32xf32, #tpu.memory_space<vmem>>, vector<1x32xf32>
      %cst_25 = arith.constant dense<0.000000e+00> : vector<16xf32>
      %32 = vector.multi_reduction <add>, %29, %cst_25 [1] : vector<16x32xf32> to vector<16xf32>
      %33 = vector.shape_cast %32 : vector<16xf32> to vector<16x1xf32>
      %cst_26 = arith.constant 3.200000e+01 : f32
      %34 = vector.broadcast %cst_26 : f32 to vector<16x1xf32>
      %35 = arith.divf %33, %34 : vector<16x1xf32>
      %36 = vector.broadcast %35 : vector<16x1xf32> to vector<16x32xf32>
      %37 = arith.subf %29, %36 : vector<16x32xf32>
      %38 = arith.mulf %37, %37 : vector<16x32xf32>
      %cst_27 = arith.constant dense<0.000000e+00> : vector<16xf32>
      %39 = vector.multi_reduction <add>, %38, %cst_27 [1] : vector<16x32xf32> to vector<16xf32>
      %40 = vector.shape_cast %39 : vector<16xf32> to vector<16x1xf32>
      %cst_28 = arith.constant 3.200000e+01 : f32
      %41 = vector.broadcast %cst_28 : f32 to vector<16x1xf32>
      %42 = arith.divf %40, %41 : vector<16x1xf32>
      %43 = vector.broadcast %35 : vector<16x1xf32> to vector<16x32xf32>
      %44 = arith.subf %29, %43 : vector<16x32xf32>
      %cst_29 = arith.constant 9.99999974E-6 : f32
      %45 = vector.broadcast %cst_29 : f32 to vector<16x1xf32>
      %46 = arith.addf %42, %45 : vector<16x1xf32>
      %47 = math.rsqrt %46 : vector<16x1xf32>
      %48 = vector.broadcast %47 : vector<16x1xf32> to vector<16x32xf32>
      %49 = arith.mulf %44, %48 : vector<16x32xf32>
      %50 = vector.broadcast %30 : vector<1x32xf32> to vector<16x32xf32>
      %51 = arith.mulf %49, %50 : vector<16x32xf32>
      %52 = vector.broadcast %31 : vector<1x32xf32> to vector<16x32xf32>
      %53 = arith.addf %51, %52 : vector<16x32xf32>
      %54 = vector.shape_cast %53 : vector<16x32xf32> to vector<2x8x32xf32>
      %c0_30 = arith.constant 0 : index
      %c0_31 = arith.constant 0 : index
      %c0_32 = arith.constant 0 : index
      %55 = vector.load %arg16[%c0_30, %c0_31, %c0_32] : memref<2x8x32xf32, #tpu.memory_space<vmem>>, vector<2x8x32xf32>
      tpu.vector_store %arg16[%c0_30, %c0_31, %c0_32], %54 {strides = array<i32>} : memref<2x8x32xf32, #tpu.memory_space<vmem>>, vector<2x8x32xf32>,
    } else {
    }
    return
  }
  func.func @transform_0(%arg0: i32) -> (i32, i32, i32) {
    %c0_i32 = arith.constant 0 : i32
    %c0_i32_0 = arith.constant 0 : i32
    %c0_i32_1 = arith.constant 0 : i32
    %c0_i32_2 = arith.constant 0 : i32
    return %c0_i32, %c0_i32_0, %c0_i32_1 : i32, i32, i32
  }
  func.func @transform_1(%arg0: i32) -> (i32, i32) {
    %c0_i32 = arith.constant 0 : i32
    %c0_i32_0 = arith.constant 0 : i32
    %c0_i32_1 = arith.constant 0 : i32
    return %c0_i32, %c0_i32_0 : i32, i32
  }
  func.func @transform_2(%arg0: i32) -> (i32, i32) {
    %c0_i32 = arith.constant 0 : i32
    %c0_i32_0 = arith.constant 0 : i32
    %c0_i32_1 = arith.constant 0 : i32
    return %c0_i32, %c0_i32_0 : i32, i32
  }
  func.func @transform_3(%arg0: i32) -> (i32, i32) {
    %c0_i32 = arith.constant 0 : i32
    %c0_i32_0 = arith.constant 0 : i32
    %c0_i32_1 = arith.constant 0 : i32
    return %c0_i32, %c0_i32_0 : i32, i32
  }
  func.func @transform_4(%arg0: i32) -> (i32, i32) {
    %c0_i32 = arith.constant 0 : i32
    %c0_i32_0 = arith.constant 0 : i32
    %c0_i32_1 = arith.constant 0 : i32
    return %c0_i32, %c0_i32_0 : i32, i32
  }
  func.func @transform_5(%arg0: i32) -> (i32, i32) {
    %c0_i32 = arith.constant 0 : i32
    %c0_i32_0 = arith.constant 0 : i32
    %c0_i32_1 = arith.constant 0 : i32
    return %c0_i32, %c0_i32_0 : i32, i32
  }
  func.func @transform_6(%arg0: i32) -> (i32, i32) {
    %c0_i32 = arith.constant 0 : i32
    %c0_i32_0 = arith.constant 0 : i32
    %c0_i32_1 = arith.constant 0 : i32
    return %c0_i32, %c0_i32_0 : i32, i32
  }
  func.func @transform_7(%arg0: i32) -> (i32, i32) {
    %c0_i32 = arith.constant 0 : i32
    %c0_i32_0 = arith.constant 0 : i32
    %c0_i32_1 = arith.constant 0 : i32
    return %c0_i32, %c0_i32_0 : i32, i32
  }
  func.func @transform_8(%arg0: i32) -> (i32, i32) {
    %c0_i32 = arith.constant 0 : i32
    %c0_i32_0 = arith.constant 0 : i32
    %c0_i32_1 = arith.constant 0 : i32
    return %c0_i32, %c0_i32_0 : i32, i32
  }
  func.func @transform_9(%arg0: i32) -> (i32, i32) {
    %c0_i32 = arith.constant 0 : i32
    %c0_i32_0 = arith.constant 0 : i32
    %c0_i32_1 = arith.constant 0 : i32
    return %c0_i32, %c0_i32_0 : i32, i32
  }
  func.func @transform_10(%arg0: i32) -> (i32, i32) {
    %c0_i32 = arith.constant 0 : i32
    %c0_i32_0 = arith.constant 0 : i32
    %c0_i32_1 = arith.constant 0 : i32
    return %c0_i32, %c0_i32_0 : i32, i32
  }
  func.func @transform_11(%arg0: i32) -> (i32, i32) {
    %c0_i32 = arith.constant 0 : i32
    %c0_i32_0 = arith.constant 0 : i32
    %c0_i32_1 = arith.constant 0 : i32
    return %c0_i32, %c0_i32_0 : i32, i32
  }
  func.func @transform_12(%arg0: i32) -> (i32, i32) {
    %c0_i32 = arith.constant 0 : i32
    %c0_i32_0 = arith.constant 0 : i32
    return %c0_i32, %arg0 : i32, i32
  }
  func.func @transform_13(%arg0: i32) -> (i32, i32) {
    %c0_i32 = arith.constant 0 : i32
    %c0_i32_0 = arith.constant 0 : i32
    return %c0_i32, %arg0 : i32, i32
  }
  func.func @transform_14(%arg0: i32) -> (i32, i32) {
    %c0_i32 = arith.constant 0 : i32
    %c0_i32_0 = arith.constant 0 : i32
    return %arg0, %c0_i32 : i32, i32
  }
  func.func @transform_15(%arg0: i32) -> (i32, i32, i32) {
    %c0_i32 = arith.constant 0 : i32
    %c0_i32_0 = arith.constant 0 : i32
    %c0_i32_1 = arith.constant 0 : i32
    %c0_i32_2 = arith.constant 0 : i32
    return %c0_i32, %c0_i32_0, %c0_i32_1 : i32, i32, i32
  }
}

module attributes {stable_mosaic.version = 11 : i64} {
  func.func @clip_layer_kernel(%arg0: i32, %arg1: memref<2x8x32xf32, #tpu.memory_space<vmem>>, %arg2: memref<1x32xf32, #tpu.memory_space<vmem>>, %arg3: memref<1x32xf32, #tpu.memory_space<vmem>>, %arg4: memref<32x96xbf16, #tpu.memory_space<vmem>>, %arg5: memref<1x96xf32, #tpu.memory_space<vmem>>, %arg6: memref<32x32xbf16, #tpu.memory_space<vmem>>, %arg7: memref<1x32xf32, #tpu.memory_space<vmem>>, %arg8: memref<1x32xf32, #tpu.memory_space<vmem>>, %arg9: memref<1x32xf32, #tpu.memory_space<vmem>>, %arg10: memref<1x32xf32, #tpu.memory_space<vmem>>, %arg11: memref<1x32xf32, #tpu.memory_space<vmem>>, %arg12: memref<1x32xf32, #tpu.memory_space<vmem>>, %arg13: memref<32x128xbf16, #tpu.memory_space<vmem>>, %arg14: memref<1x128xf32, #tpu.memory_space<vmem>>, %arg15: memref<128x32xbf16, #tpu.memory_space<vmem>>, %arg16: memref<2x8x32xf32, #tpu.memory_space<vmem>>, %arg17: memref<16x32xbf16, #tpu.memory_space<vmem>>, %arg18: memref<16x32xf32, #tpu.memory_space<vmem>>) attributes {dimension_semantics = [#tpu.dimension_semantics<arbitrary>], iteration_bounds = array<i64: 1>, scalar_prefetch = 0 : i64, scratch_operands = 2 : i64, tpu.core_type = #tpu.core_type<tc>, window_params = [{pipeline_mode = #tpu.pipeline_mode<synchronous>, transform_indices = @transform_0, window_bounds = array<i64: 2, 8, 32>}, {pipeline_mode = #tpu.pipeline_mode<synchronous>, transform_indices = @transform_1, window_bounds = array<i64: 1, 32>}, {pipeline_mode = #tpu.pipeline_mode<synchronous>, transform_indices = @transform_2, window_bounds = array<i64: 1, 32>}, {pipeline_mode = #tpu.pipeline_mode<synchronous>, transform_indices = @transform_3, window_bounds = array<i64: 32, 96>}, {pipeline_mode = #tpu.pipeline_mode<synchronous>, transform_indices = @transform_4, window_bounds = array<i64: 1, 96>}, {pipeline_mode = #tpu.pipeline_mode<synchronous>, transform_indices = @transform_5, window_bounds = array<i64: 32, 32>}, {pipeline_mode = #tpu.pipeline_mode<synchronous>, transform_indices = @transform_6, window_bounds = array<i64: 1, 32>}, {pipeline_mode = #tpu.pipeline_mode<synchronous>, transform_indices = @transform_7, window_bounds = array<i64: 1, 32>}, {pipeline_mode = #tpu.pipeline_mode<synchronous>, transform_indices = @transform_8, window_bounds = array<i64: 1, 32>}, {pipeline_mode = #tpu.pipeline_mode<synchronous>, transform_indices = @transform_9, window_bounds = array<i64: 1, 32>}, {pipeline_mode = #tpu.pipeline_mode<synchronous>, transform_indices = @transform_10, window_bounds = array<i64: 1, 32>}, {pipeline_mode = #tpu.pipeline_mode<synchronous>, transform_indices = @transform_11, window_bounds = array<i64: 1, 32>}, {transform_indices = @transform_12, window_bounds = array<i64: 32, 128>}, {transform_indices = @transform_13, window_bounds = array<i64: 1, 128>}, {transform_indices = @transform_14, window_bounds = array<i64: 128, 32>}, {pipeline_mode = #tpu.pipeline_mode<synchronous>, transform_indices = @transform_15, window_bounds = array<i64: 2, 8, 32>}]} {
    %c0_i32 = arith.constant 0 : i32
    %0 = arith.cmpi eq, %arg0, %c0_i32 : i32
    %1 = arith.extui %0 : i1 to i32
    %c0_i32_0 = arith.constant 0 : i32
    %2 = arith.cmpi ne, %1, %c0_i32_0 : i32
    scf.if %2 {
      %c0_17 = arith.constant 0 : index
      %c0_18 = arith.constant 0 : index
      %c0_19 = arith.constant 0 : index
      %26 = vector.load %arg1[%c0_17, %c0_18, %c0_19] : memref<2x8x32xf32, #tpu.memory_space<vmem>>, vector<2x8x32xf32>
      %27 = vector.shape_cast %26 : vector<2x8x32xf32> to vector<16x32xf32>
      %c0_20 = arith.constant 0 : index
      %c0_21 = arith.constant 0 : index
      %28 = vector.load %arg2[%c0_20, %c0_21] : memref<1x32xf32, #tpu.memory_space<vmem>>, vector<1x32xf32>
      %c0_22 = arith.constant 0 : index
      %c0_23 = arith.constant 0 : index
      %29 = vector.load %arg3[%c0_22, %c0_23] : memref<1x32xf32, #tpu.memory_space<vmem>>, vector<1x32xf32>
      %cst_24 = arith.constant dense<0.000000e+00> : vector<16xf32>
      %30 = vector.multi_reduction <add>, %27, %cst_24 [1] : vector<16x32xf32> to vector<16xf32>
      %31 = vector.shape_cast %30 : vector<16xf32> to vector<16x1xf32>
      %cst_25 = arith.constant 3.200000e+01 : f32
      %32 = vector.broadcast %cst_25 : f32 to vector<16x1xf32>
      %33 = arith.divf %31, %32 : vector<16x1xf32>
      %34 = vector.broadcast %33 : vector<16x1xf32> to vector<16x32xf32>
      %35 = arith.subf %27, %34 : vector<16x32xf32>
      %36 = arith.mulf %35, %35 : vector<16x32xf32>
      %cst_26 = arith.constant dense<0.000000e+00> : vector<16xf32>
      %37 = vector.multi_reduction <add>, %36, %cst_26 [1] : vector<16x32xf32> to vector<16xf32>
      %38 = vector.shape_cast %37 : vector<16xf32> to vector<16x1xf32>
      %cst_27 = arith.constant 3.200000e+01 : f32
      %39 = vector.broadcast %cst_27 : f32 to vector<16x1xf32>
      %40 = arith.divf %38, %39 : vector<16x1xf32>
      %41 = vector.broadcast %33 : vector<16x1xf32> to vector<16x32xf32>
      %42 = arith.subf %27, %41 : vector<16x32xf32>
      %cst_28 = arith.constant 9.99999974E-6 : f32
      %43 = vector.broadcast %cst_28 : f32 to vector<16x1xf32>
      %44 = arith.addf %40, %43 : vector<16x1xf32>
      %45 = math.rsqrt %44 : vector<16x1xf32>
      %46 = vector.broadcast %45 : vector<16x1xf32> to vector<16x32xf32>
      %47 = arith.mulf %42, %46 : vector<16x32xf32>
      %48 = vector.broadcast %28 : vector<1x32xf32> to vector<16x32xf32>
      %49 = arith.mulf %47, %48 : vector<16x32xf32>
      %50 = vector.broadcast %29 : vector<1x32xf32> to vector<16x32xf32>
      %51 = arith.addf %49, %50 : vector<16x32xf32>
      %52 = arith.truncf %51 : vector<16x32xf32> to vector<16x32xbf16>
      %c0_29 = arith.constant 0 : index
      %c0_30 = arith.constant 0 : index
      %53 = vector.load %arg4[%c0_29, %c0_30] : memref<32x96xbf16, #tpu.memory_space<vmem>>, vector<32x96xbf16>
      %cst_31 = arith.constant dense<0.000000e+00> : vector<16x96xf32>
      %54 = tpu.matmul %52, %53, %cst_31 {dimension_numbers = #tpu.dot_dimension_numbers<[1], [0], [0], [1], [0, 0, 1, 1], [], []>} : vector<16x32xbf16>, vector<32x96xbf16>, vector<16x96xf32> -> vector<16x96xf32>
      %c0_32 = arith.constant 0 : index
      %c0_33 = arith.constant 0 : index
      %55 = vector.load %arg5[%c0_32, %c0_33] : memref<1x96xf32, #tpu.memory_space<vmem>>, vector<1x96xf32>
      %56 = vector.broadcast %55 : vector<1x96xf32> to vector<16x96xf32>
      %57 = arith.addf %54, %56 : vector<16x96xf32>
      %58 = vector.extract_strided_slice %57 {offsets = [0, 0], sizes = [16, 32], strides = [1, 1]} : vector<16x96xf32> to vector<16x32xf32>
      %59 = vector.shape_cast %58 : vector<16x32xf32> to vector<2x8x4x8xf32>
      %60 = tpu.transpose %59, [0, 2, 1, 3] : vector<2x8x4x8xf32> -> vector<2x4x8x8xf32>
      %61 = vector.shape_cast %60 : vector<2x4x8x8xf32> to vector<8x8x8xf32>
      %62 = arith.truncf %61 : vector<8x8x8xf32> to vector<8x8x8xbf16>
      %63 = vector.extract_strided_slice %57 {offsets = [0, 32], sizes = [16, 32], strides = [1, 1]} : vector<16x96xf32> to vector<16x32xf32>
      %64 = vector.shape_cast %63 : vector<16x32xf32> to vector<2x8x4x8xf32>
      %65 = tpu.transpose %64, [0, 2, 1, 3] : vector<2x8x4x8xf32> -> vector<2x4x8x8xf32>
      %66 = vector.shape_cast %65 : vector<2x4x8x8xf32> to vector<8x8x8xf32>
      %67 = arith.truncf %66 : vector<8x8x8xf32> to vector<8x8x8xbf16>
      %68 = vector.extract_strided_slice %57 {offsets = [0, 64], sizes = [16, 32], strides = [1, 1]} : vector<16x96xf32> to vector<16x32xf32>
      %69 = vector.shape_cast %68 : vector<16x32xf32> to vector<2x8x4x8xf32>
      %70 = tpu.transpose %69, [0, 2, 1, 3] : vector<2x8x4x8xf32> -> vector<2x4x8x8xf32>
      %71 = vector.shape_cast %70 : vector<2x4x8x8xf32> to vector<8x8x8xf32>
      %72 = arith.truncf %71 : vector<8x8x8xf32> to vector<8x8x8xbf16>
      "tpu.trace_start"() <{level = 10 : i32, message = "bqd,bkd->bqk"}> : () -> ()
      %cst_34 = arith.constant dense<0.000000e+00> : vector<8x8x8xf32>
      %73 = tpu.matmul %62, %67, %cst_34 {dimension_numbers = #tpu.dot_dimension_numbers<[2], [2], [1], [1], [0, 0, 0, 1, 1, 1], [0], [0]>} : vector<8x8x8xbf16>, vector<8x8x8xbf16>, vector<8x8x8xf32> -> vector<8x8x8xf32>
      "tpu.trace_stop"() : () -> ()
      %cst_35 = arith.constant 0.353553385 : f32
      %74 = vector.broadcast %cst_35 : f32 to vector<8x8x8xf32>
      %75 = arith.mulf %73, %74 : vector<8x8x8xf32>
      %cst_36 = arith.constant dense<0xFF800000> : vector<8x8xf32>
      %76 = vector.multi_reduction <maximumf>, %75, %cst_36 [2] : vector<8x8x8xf32> to vector<8x8xf32>
      %77 = vector.shape_cast %76 : vector<8x8xf32> to vector<8x8x1xf32>
      %78 = vector.broadcast %77 : vector<8x8x1xf32> to vector<8x8x8xf32>
      %79 = arith.subf %75, %78 : vector<8x8x8xf32>
      %80 = math.exp %79 : vector<8x8x8xf32>
      %cst_37 = arith.constant dense<0.000000e+00> : vector<8x8xf32>
      %81 = vector.multi_reduction <add>, %80, %cst_37 [2] : vector<8x8x8xf32> to vector<8x8xf32>
      %82 = vector.shape_cast %81 : vector<8x8xf32> to vector<8x8x1xf32>
      %83 = tpu.reciprocal %82 {approx = true} : vector<8x8x1xf32> -> vector<8x8x1xf32>
      %84 = vector.broadcast %83 : vector<8x8x1xf32> to vector<8x8x8xf32>
      %85 = arith.mulf %80, %84 : vector<8x8x8xf32>
      %86 = arith.truncf %85 : vector<8x8x8xf32> to vector<8x8x8xbf16>
      "tpu.trace_start"() <{level = 10 : i32, message = "bqk,bkd->bqd"}> : () -> ()
      %cst_38 = arith.constant dense<0.000000e+00> : vector<8x8x8xf32>
      %87 = tpu.matmul %86, %72, %cst_38 {dimension_numbers = #tpu.dot_dimension_numbers<[2], [1], [1], [2], [0, 0, 0, 1, 1, 2], [0], [0]>} : vector<8x8x8xbf16>, vector<8x8x8xbf16>, vector<8x8x8xf32> -> vector<8x8x8xf32>
      "tpu.trace_stop"() : () -> ()
      %88 = vector.shape_cast %87 : vector<8x8x8xf32> to vector<2x4x8x8xf32>
      %89 = tpu.transpose %88, [0, 2, 1, 3] : vector<2x4x8x8xf32> -> vector<2x8x4x8xf32>
      %90 = vector.shape_cast %89 : vector<2x8x4x8xf32> to vector<16x32xf32>
      %91 = arith.truncf %90 : vector<16x32xf32> to vector<16x32xbf16>
      %c0_39 = arith.constant 0 : index
      %c0_40 = arith.constant 0 : index
      %92 = vector.load %arg6[%c0_39, %c0_40] : memref<32x32xbf16, #tpu.memory_space<vmem>>, vector<32x32xbf16>
      %cst_41 = arith.constant dense<0.000000e+00> : vector<16x32xf32>
      %93 = tpu.matmul %91, %92, %cst_41 {dimension_numbers = #tpu.dot_dimension_numbers<[1], [0], [0], [1], [0, 0, 1, 1], [], []>} : vector<16x32xbf16>, vector<32x32xbf16>, vector<16x32xf32> -> vector<16x32xf32>
      %c0_42 = arith.constant 0 : index
      %c0_43 = arith.constant 0 : index
      %94 = vector.load %arg7[%c0_42, %c0_43] : memref<1x32xf32, #tpu.memory_space<vmem>>, vector<1x32xf32>
      %95 = vector.broadcast %94 : vector<1x32xf32> to vector<16x32xf32>
      %96 = arith.addf %93, %95 : vector<16x32xf32>
      %97 = arith.addf %27, %96 : vector<16x32xf32>
      %c0_44 = arith.constant 0 : index
      %c0_45 = arith.constant 0 : index
      %98 = vector.load %arg8[%c0_44, %c0_45] : memref<1x32xf32, #tpu.memory_space<vmem>>, vector<1x32xf32>
      %c0_46 = arith.constant 0 : index
      %c0_47 = arith.constant 0 : index
      %99 = vector.load %arg9[%c0_46, %c0_47] : memref<1x32xf32, #tpu.memory_space<vmem>>, vector<1x32xf32>
      %cst_48 = arith.constant dense<0.000000e+00> : vector<16xf32>
      %100 = vector.multi_reduction <add>, %97, %cst_48 [1] : vector<16x32xf32> to vector<16xf32>
      %101 = vector.shape_cast %100 : vector<16xf32> to vector<16x1xf32>
      %cst_49 = arith.constant 3.200000e+01 : f32
      %102 = vector.broadcast %cst_49 : f32 to vector<16x1xf32>
      %103 = arith.divf %101, %102 : vector<16x1xf32>
      %104 = vector.broadcast %103 : vector<16x1xf32> to vector<16x32xf32>
      %105 = arith.subf %97, %104 : vector<16x32xf32>
      %106 = arith.mulf %105, %105 : vector<16x32xf32>
      %cst_50 = arith.constant dense<0.000000e+00> : vector<16xf32>
      %107 = vector.multi_reduction <add>, %106, %cst_50 [1] : vector<16x32xf32> to vector<16xf32>
      %108 = vector.shape_cast %107 : vector<16xf32> to vector<16x1xf32>
      %cst_51 = arith.constant 3.200000e+01 : f32
      %109 = vector.broadcast %cst_51 : f32 to vector<16x1xf32>
      %110 = arith.divf %108, %109 : vector<16x1xf32>
      %111 = vector.broadcast %103 : vector<16x1xf32> to vector<16x32xf32>
      %112 = arith.subf %97, %111 : vector<16x32xf32>
      %cst_52 = arith.constant 9.99999974E-6 : f32
      %113 = vector.broadcast %cst_52 : f32 to vector<16x1xf32>
      %114 = arith.addf %110, %113 : vector<16x1xf32>
      %115 = math.rsqrt %114 : vector<16x1xf32>
      %116 = vector.broadcast %115 : vector<16x1xf32> to vector<16x32xf32>
      %117 = arith.mulf %112, %116 : vector<16x32xf32>
      %118 = vector.broadcast %98 : vector<1x32xf32> to vector<16x32xf32>
      %119 = arith.mulf %117, %118 : vector<16x32xf32>
      %120 = vector.broadcast %99 : vector<1x32xf32> to vector<16x32xf32>
      %121 = arith.addf %119, %120 : vector<16x32xf32>
      %122 = arith.truncf %121 : vector<16x32xf32> to vector<16x32xbf16>
      %c0_53 = arith.constant 0 : index
      %c0_54 = arith.constant 0 : index
      %123 = vector.load %arg17[%c0_53, %c0_54] : memref<16x32xbf16, #tpu.memory_space<vmem>>, vector<16x32xbf16>
      tpu.vector_store %arg17[%c0_53, %c0_54], %122 {strides = array<i32>} : memref<16x32xbf16, #tpu.memory_space<vmem>>, vector<16x32xbf16>,
      %c0_55 = arith.constant 0 : index
      %c0_56 = arith.constant 0 : index
      %124 = vector.load %arg18[%c0_55, %c0_56] : memref<16x32xf32, #tpu.memory_space<vmem>>, vector<16x32xf32>
      tpu.vector_store %arg18[%c0_55, %c0_56], %97 {strides = array<i32>} : memref<16x32xf32, #tpu.memory_space<vmem>>, vector<16x32xf32>,
    } else {
    }
    %c0 = arith.constant 0 : index
    %c0_1 = arith.constant 0 : index
    %3 = vector.load %arg17[%c0, %c0_1] : memref<16x32xbf16, #tpu.memory_space<vmem>>, vector<16x32xbf16>
    %c0_2 = arith.constant 0 : index
    %c0_3 = arith.constant 0 : index
    %4 = vector.load %arg13[%c0_2, %c0_3] : memref<32x128xbf16, #tpu.memory_space<vmem>>, vector<32x128xbf16>
    %cst = arith.constant dense<0.000000e+00> : vector<16x128xf32>
    %5 = tpu.matmul %3, %4, %cst {dimension_numbers = #tpu.dot_dimension_numbers<[1], [0], [0], [1], [0, 0, 1, 1], [], []>} : vector<16x32xbf16>, vector<32x128xbf16>, vector<16x128xf32> -> vector<16x128xf32>
    %c0_4 = arith.constant 0 : index
    %c0_5 = arith.constant 0 : index
    %6 = vector.load %arg14[%c0_4, %c0_5] : memref<1x128xf32, #tpu.memory_space<vmem>>, vector<1x128xf32>
    %7 = vector.broadcast %6 : vector<1x128xf32> to vector<16x128xf32>
    %8 = arith.addf %5, %7 : vector<16x128xf32>
    %cst_6 = arith.constant 1.702000e+00 : f32
    %9 = vector.broadcast %cst_6 : f32 to vector<16x128xf32>
    %10 = arith.mulf %9, %8 : vector<16x128xf32>
    %11 = arith.negf %10 : vector<16x128xf32>
    %12 = math.exp %11 : vector<16x128xf32>
    %cst_7 = arith.constant 1.000000e+00 : f32
    %13 = vector.broadcast %cst_7 : f32 to vector<16x128xf32>
    %14 = arith.addf %13, %12 : vector<16x128xf32>
    %15 = arith.divf %13, %14 : vector<16x128xf32>
    %16 = arith.mulf %8, %15 : vector<16x128xf32>
    %c0_8 = arith.constant 0 : index
    %c0_9 = arith.constant 0 : index
    %17 = vector.load %arg18[%c0_8, %c0_9] : memref<16x32xf32, #tpu.memory_space<vmem>>, vector<16x32xf32>
    %18 = arith.truncf %16 : vector<16x128xf32> to vector<16x128xbf16>
    %c0_10 = arith.constant 0 : index
    %c0_11 = arith.constant 0 : index
    %19 = vector.load %arg15[%c0_10, %c0_11] : memref<128x32xbf16, #tpu.memory_space<vmem>>, vector<128x32xbf16>
    %cst_12 = arith.constant dense<0.000000e+00> : vector<16x32xf32>
    %20 = tpu.matmul %18, %19, %cst_12 {dimension_numbers = #tpu.dot_dimension_numbers<[1], [0], [0], [1], [0, 0, 1, 1], [], []>} : vector<16x128xbf16>, vector<128x32xbf16>, vector<16x32xf32> -> vector<16x32xf32>
    %21 = arith.addf %17, %20 : vector<16x32xf32>
    %c0_13 = arith.constant 0 : index
    %c0_14 = arith.constant 0 : index
    %22 = vector.load %arg18[%c0_13, %c0_14] : memref<16x32xf32, #tpu.memory_space<vmem>>, vector<16x32xf32>
    tpu.vector_store %arg18[%c0_13, %c0_14], %21 {strides = array<i32>} : memref<16x32xf32, #tpu.memory_space<vmem>>, vector<16x32xf32>,
    %c0_i32_15 = arith.constant 0 : i32
    %23 = arith.cmpi eq, %arg0, %c0_i32_15 : i32
    %24 = arith.extui %23 : i1 to i32
    %c0_i32_16 = arith.constant 0 : i32
    %25 = arith.cmpi ne, %24, %c0_i32_16 : i32
    scf.if %25 {
      %c0_17 = arith.constant 0 : index
      %c0_18 = arith.constant 0 : index
      %26 = vector.load %arg18[%c0_17, %c0_18] : memref<16x32xf32, #tpu.memory_space<vmem>>, vector<16x32xf32>
      %c0_19 = arith.constant 0 : index
      %c0_20 = arith.constant 0 : index
      %27 = vector.load %arg10[%c0_19, %c0_20] : memref<1x32xf32, #tpu.memory_space<vmem>>, vector<1x32xf32>
      %28 = vector.broadcast %27 : vector<1x32xf32> to vector<16x32xf32>
      %29 = arith.addf %26, %28 : vector<16x32xf32>
      %30 = vector.shape_cast %29 : vector<16x32xf32> to vector<2x8x32xf32>
      %c0_21 = arith.constant 0 : index
      %c0_22 = arith.constant 0 : index
      %c0_23 = arith.constant 0 : index
      %31 = vector.load %arg16[%c0_21, %c0_22, %c0_23] : memref<2x8x32xf32, #tpu.memory_space<vmem>>, vector<2x8x32xf32>
      tpu.vector_store %arg16[%c0_21, %c0_22, %c0_23], %30 {strides = array<i32>} : memref<2x8x32xf32, #tpu.memory_space<vmem>>, vector<2x8x32xf32>,
    } else {
    }
    return
  }
  func.func @transform_0(%arg0: i32) -> (i32, i32, i32) {
    %c0_i32 = arith.constant 0 : i32
    %c0_i32_0 = arith.constant 0 : i32
    %c0_i32_1 = arith.constant 0 : i32
    %c0_i32_2 = arith.constant 0 : i32
    return %c0_i32, %c0_i32_0, %c0_i32_1 : i32, i32, i32
  }
  func.func @transform_1(%arg0: i32) -> (i32, i32) {
    %c0_i32 = arith.constant 0 : i32
    %c0_i32_0 = arith.constant 0 : i32
    %c0_i32_1 = arith.constant 0 : i32
    return %c0_i32, %c0_i32_0 : i32, i32
  }
  func.func @transform_2(%arg0: i32) -> (i32, i32) {
    %c0_i32 = arith.constant 0 : i32
    %c0_i32_0 = arith.constant 0 : i32
    %c0_i32_1 = arith.constant 0 : i32
    return %c0_i32, %c0_i32_0 : i32, i32
  }
  func.func @transform_3(%arg0: i32) -> (i32, i32) {
    %c0_i32 = arith.constant 0 : i32
    %c0_i32_0 = arith.constant 0 : i32
    %c0_i32_1 = arith.constant 0 : i32
    return %c0_i32, %c0_i32_0 : i32, i32
  }
  func.func @transform_4(%arg0: i32) -> (i32, i32) {
    %c0_i32 = arith.constant 0 : i32
    %c0_i32_0 = arith.constant 0 : i32
    %c0_i32_1 = arith.constant 0 : i32
    return %c0_i32, %c0_i32_0 : i32, i32
  }
  func.func @transform_5(%arg0: i32) -> (i32, i32) {
    %c0_i32 = arith.constant 0 : i32
    %c0_i32_0 = arith.constant 0 : i32
    %c0_i32_1 = arith.constant 0 : i32
    return %c0_i32, %c0_i32_0 : i32, i32
  }
  func.func @transform_6(%arg0: i32) -> (i32, i32) {
    %c0_i32 = arith.constant 0 : i32
    %c0_i32_0 = arith.constant 0 : i32
    %c0_i32_1 = arith.constant 0 : i32
    return %c0_i32, %c0_i32_0 : i32, i32
  }
  func.func @transform_7(%arg0: i32) -> (i32, i32) {
    %c0_i32 = arith.constant 0 : i32
    %c0_i32_0 = arith.constant 0 : i32
    %c0_i32_1 = arith.constant 0 : i32
    return %c0_i32, %c0_i32_0 : i32, i32
  }
  func.func @transform_8(%arg0: i32) -> (i32, i32) {
    %c0_i32 = arith.constant 0 : i32
    %c0_i32_0 = arith.constant 0 : i32
    %c0_i32_1 = arith.constant 0 : i32
    return %c0_i32, %c0_i32_0 : i32, i32
  }
  func.func @transform_9(%arg0: i32) -> (i32, i32) {
    %c0_i32 = arith.constant 0 : i32
    %c0_i32_0 = arith.constant 0 : i32
    %c0_i32_1 = arith.constant 0 : i32
    return %c0_i32, %c0_i32_0 : i32, i32
  }
  func.func @transform_10(%arg0: i32) -> (i32, i32) {
    %c0_i32 = arith.constant 0 : i32
    %c0_i32_0 = arith.constant 0 : i32
    %c0_i32_1 = arith.constant 0 : i32
    return %c0_i32, %c0_i32_0 : i32, i32
  }
  func.func @transform_11(%arg0: i32) -> (i32, i32) {
    %c0_i32 = arith.constant 0 : i32
    %c0_i32_0 = arith.constant 0 : i32
    %c0_i32_1 = arith.constant 0 : i32
    return %c0_i32, %c0_i32_0 : i32, i32
  }
  func.func @transform_12(%arg0: i32) -> (i32, i32) {
    %c0_i32 = arith.constant 0 : i32
    %c0_i32_0 = arith.constant 0 : i32
    return %c0_i32, %arg0 : i32, i32
  }
  func.func @transform_13(%arg0: i32) -> (i32, i32) {
    %c0_i32 = arith.constant 0 : i32
    %c0_i32_0 = arith.constant 0 : i32
    return %c0_i32, %arg0 : i32, i32
  }
  func.func @transform_14(%arg0: i32) -> (i32, i32) {
    %c0_i32 = arith.constant 0 : i32
    %c0_i32_0 = arith.constant 0 : i32
    return %arg0, %c0_i32 : i32, i32
  }
  func.func @transform_15(%arg0: i32) -> (i32, i32, i32) {
    %c0_i32 = arith.constant 0 : i32
    %c0_i32_0 = arith.constant 0 : i32
    %c0_i32_1 = arith.constant 0 : i32
    %c0_i32_2 = arith.constant 0 : i32
    return %c0_i32, %c0_i32_0, %c0_i32_1 : i32, i32, i32
  }
}

</mosaic_0001>

<bundles_post_ra>
// kernel: clip_forward.3
= control target key start
LH: loop header
LB: loop body
LE: loop exit
PB: predicated region body
PF: predicated region fallthrough
CT: control target
= control target key end

     0   :  { %s769_s0 = inlined_call_operand.vmem [shape: s32[2,8], index: 0, kind: input, shape index: {}]   ;;  %s770_s1 = inlined_call_operand.vmem [shape: f32[100,32], index: 1, kind: input, shape index: {}]   ;;  %s771_s2 = inlined_call_operand.vmem [shape: f32[8,32], index: 2, kind: input, shape index: {}]   ;;  %s772_s3 = inlined_call_operand.vmem [shape: f32[2,8,32], index: 3, kind: output, shape index: {}]  }
   0x1   :  { %s8_s14 = sshll.u32 %s769_s0, 4  ;;  %s9_s14 = int_to_ptr.vmem [resolvable:$true] %s8_s14 }
   0x2   :  { %s667_s15 = scalar_lea.vmem %s9_s14, 32  ;;  %p672_p1 = scmp.lt.s32.totalorder %s9_s14, %s9_s14 }
   0x3   :  { %p668_p0 = scmp.ne.s32.totalorder %s9_s14, %s667_s15  ;;  %p673_p2 = scmp.lt.s32.totalorder %s667_s15, %s667_s15 }
   0x5   :  { %p674_p3 = por %p673_p2, %p672_p1 }
   0x7   :  { %p675_p4 = pnand %p674_p3, %p668_p0 }
   0x9   :  { %678 = shalt.err (!%p675_p4)  }
   0xa   :  { %s691_s16 = smov [#allocation5]  }
   0xb   :  { %11 = dma.vmem_to_smem %s9_s14, 32, %s691_s16, [#allocation4] }
   0xc   :  { %683 = dma.done.wait [#allocation4], 32 }
   0xd   :  { %684 = vsyncadd [#allocation4], 4294967264 }
   0xe   :  { %13 = sfence }
   0xf   :  { %s715_s17 = smov 0  }
  0x10 LB: > { %s649_s0 = sadd.s32 4294967295, %s689_s17   ;;  %p652_p5 = scmp.ge.s32.totalorder %s689_s17, 1  ;;  %s689_s17 = sphi %s715_s17, %s19_s17  }
  0x11   : > { %p85_p6 = scmp.lt.s32.totalorder %s689_s17, 3 }
  0x13   : > { %p86_p7 = pnand %p652_p5, %p85_p6 }
  0x14   : > { %p99_p8 = scmp.lt.s32.totalorder (!%p86_p7), %s649_s0, 1  ;;  %s723_s18 = sshll.u32 (!%p86_p7), %s649_s0, 7 }
  0x15   : > { %89 = sbr.rel (%p86_p7) target bundleno = 111 (0x6f), region = 24  ;;  %s104_s19 = sld [smem:[#allocation5 + %s723_s18]] (!%p86_p7) }
  0x1b   : > { %s105_s26 = scalar_lea.vmem (!%p86_p7), %s770_s1, %s104_s19 }
  0x1c   : > { %s774_s0 = smov (!%p99_p8, %s649_s0), 1  ;;  %v123_v0 = vld [vmem:[%s105_s26] sm:$0x1] }
  0x1d   : > { %s653_s20 = sshll.u32 %s774_s0, 3  ;;  %124 = vst [vmem:[#allocation2] sm:$0x1] %v123_v0 }
  0x1e   : > { %s729_s23 = scalar_lea.vmem %s772_s3, %s653_s20 }
  0x1f   : > { %149 = vsyncadd [#allocation3], 16  ;;  %s150_s27 = sadd.s32 1, %s723_s18 }
  0x20   : > { %s151_s28 = sld [smem:[#allocation5 + %s150_s27]] }
  0x26   : > { %s152_s4 = scalar_lea.vmem %s770_s1, %s151_s28 }
  0x27   : > { %v171_v1 = vld [vmem:[%s152_s4] sm:$0x1] }
  0x28   : > { %172 = vst [vmem:[#allocation2 + $0x1] sm:$0x1] %v171_v1 }
  0x29   : > { %197 = vsyncadd [#allocation3], 16  ;;  %s198_s5 = sadd.s32 2, %s723_s18 }
  0x2a   : > { %s199_s6 = sld [smem:[#allocation5 + %s198_s5]] }
  0x30   : > { %s200_s9 = scalar_lea.vmem %s770_s1, %s199_s6 }
  0x31   : > { %v219_v2 = vld [vmem:[%s200_s9] sm:$0x1] }
  0x32   : > { %220 = vst [vmem:[#allocation2 + $0x2] sm:$0x1] %v219_v2 }
  0x33   : > { %245 = vsyncadd [#allocation3], 16  ;;  %s246_s10 = sadd.s32 3, %s723_s18 }
  0x34   : > { %s247_s11 = sld [smem:[#allocation5 + %s246_s10]] }
  0x3a   : > { %s248_s14 = scalar_lea.vmem %s770_s1, %s247_s11 }
  0x3b   : > { %v267_v3 = vld [vmem:[%s248_s14] sm:$0x1] }
  0x3c   : > { %268 = vst [vmem:[#allocation2 + $0x3] sm:$0x1] %v267_v3 }
  0x3d   : > { %293 = vsyncadd [#allocation3], 16  ;;  %s294_s15 = sadd.s32 4, %s723_s18 }
  0x3e   : > { %s295_s16 = sld [smem:[#allocation5 + %s294_s15]] }
  0x44   : > { %s296_s20 = scalar_lea.vmem %s770_s1, %s295_s16 }
  0x45   : > { %v315_v4 = vld [vmem:[%s296_s20] sm:$0x1] }
  0x46   : > { %316 = vst [vmem:[#allocation2 + $0x4] sm:$0x1] %v315_v4 }
  0x47   : > { %341 = vsyncadd [#allocation3], 16  ;;  %s342_s21 = sadd.s32 5, %s723_s18 }
  0x48   : > { %s343_s22 = sld [smem:[#allocation5 + %s342_s21]] }
  0x4e   : > { %s344_s26 = scalar_lea.vmem %s770_s1, %s343_s22 }
  0x4f   : > { %v363_v5 = vld [vmem:[%s344_s26] sm:$0x1] }
  0x50   : > { %364 = vst [vmem:[#allocation2 + $0x5] sm:$0x1] %v363_v5 }
  0x51   : > { %389 = vsyncadd [#allocation3], 16  ;;  %s390_s27 = sadd.s32 6, %s723_s18 }
  0x52   : > { %s391_s28 = sld [smem:[#allocation5 + %s390_s27]] }
  0x58   : > { %s392_s4 = scalar_lea.vmem %s770_s1, %s391_s28 }
  0x59   : > { %v411_v6 = vld [vmem:[%s392_s4] sm:$0x1] }
  0x5a   : > { %412 = vst [vmem:[#allocation2 + $0x6] sm:$0x1] %v411_v6 }
  0x5b   : > { %437 = vsyncadd [#allocation3], 16  ;;  %s438_s5 = sadd.s32 7, %s723_s18 }
  0x5c   : > { %s439_s6 = sld [smem:[#allocation5 + %s438_s5]] }
  0x62   : > { %s440_s9 = scalar_lea.vmem %s770_s1, %s439_s6 }
  0x63   : > { %v459_v7 = vld [vmem:[%s440_s9] sm:$0x1] }
  0x64   : > { %460 = vst [vmem:[#allocation2 + $0x7] sm:$0x1] %v459_v7 }
  0x65   : > { %485 = vsyncadd [#allocation3], 16 }
  0x66   : > { %685 = dma.done.wait [#allocation3], 128 }
  0x67   : > { %686 = vsyncadd [#allocation3], 4294967168  ;;  %v503_v9 = vld [vmem:[%s771_s2] sm:$0xff]  ;;  %vm505_vm0 = vcmask 261120  }
  0x6b   : > { %v502_v8 = vld [vmem:[#allocation2] sm:$0xff] }
  0x6c   : > { %v504_v10 = vadd.f32 %v503_v9, %v502_v8 }
  0x6e   : > { %506 = vst.msk [vmem:[%s729_s23] sm:$0xff] %vm505_vm0, %v504_v10 }
  0x6f PF: > { %s19_s17 = sadd.s32 1, %s689_s17  }
  0x70   : > { %p16_p9 = scmp.ge.s32.totalorder %s19_s17, 4  }
  0x72   :  { %18 = sbr.rel (!%p16_p9) target bundleno = 16 (0x10), region = 386 }
  0x79   :  { %526 = vsyncmov [#allocation3] }
  0x7c   :  { %s527_s18 = vpop.sfrf %526 }
  0x7d   :  { %p657_p10 = scmp.ne.s32.totalorder %s527_s18, 0 }
  0x7f   :  { %531 = shalt.err (%p657_p10)  }

// kernel: clip_forward.4
= control target key start
LH: loop header
LB: loop body
LE: loop exit
PB: predicated region body
PF: predicated region fallthrough
CT: control target
= control target key end

     0   :  { %vm59_vm0 = vcmask 261120   ;;  %v2900_v15 = vmov 0.0   ;;  %vm2901_vm1 = vmmov 0   ;;  %s2904_s27 = smov 104   ;;  %v2906_v47 = vmov 1983009808   ;;  %s3489_s0 = inlined_call_operand.vmem [shape: f32[2,8,32], index: 0, kind: input, shape index: {}]   ;;  %s3490_s10 = inlined_call_operand.vmem [shape: f32[1,32], index: 10, kind: input, shape index: {}]   ;;  %s3491_s11 = inlined_call_operand.vmem [shape: f32[1,32], index: 11, kind: input, shape index: {}]   ;;  %s3492_s3 = inlined_call_operand.vmem [shape: bf16[32,96], index: 3, kind: input, shape index: {}]   ;;  %s3493_s1 = inlined_call_operand.vmem [shape: f32[1,32], index: 1, kind: input, shape index: {}]   ;;  %s3494_s2 = inlined_call_operand.vmem [shape: f32[1,32], index: 2, kind: input, shape index: {}]   ;;  %s3495_s4 = inlined_call_operand.vmem [shape: f32[1,96], index: 4, kind: input, shape index: {}]   ;;  %s3496_s5 = inlined_call_operand.vmem [shape: bf16[32,32], index: 5, kind: input, shape index: {}]   ;;  %s3497_s6 = inlined_call_operand.vmem [shape: f32[1,32], index: 6, kind: input, shape index: {}]   ;;  %s3498_s12 = inlined_call_operand.vmem [shape: bf16[32,128], index: 12, kind: input, shape index: {}]   ;;  %s3499_s7 = inlined_call_operand.vmem [shape: f32[1,32], index: 7, kind: input, shape index: {}]   ;;  %s3500_s8 = inlined_call_operand.vmem [shape: f32[1,32], index: 8, kind: input, shape index: {}]   ;;  %s3501_s14 = inlined_call_operand.vmem [shape: bf16[128,32], index: 14, kind: input, shape index: {}]   ;;  %s3502_s13 = inlined_call_operand.vmem [shape: f32[1,128], index: 13, kind: input, shape index: {}]   ;;  %s3503_s9 = inlined_call_operand.vmem [shape: f32[1,32], index: 9, kind: input, shape index: {}]   ;;  %s3504_s15 = inlined_call_operand.vmem [shape: f32[2,8,32], index: 15, kind: output, shape index: {}]  }
   0x1   :  { %v55_v0 = vld [vmem:[%s3489_s0] sm:$0xff]  ;;  %v56_v1 = vld [vmem:[%s3489_s0 + $0x8] sm:$0xff]  ;;  %2669 = vmatprep.subr.bf16.mxu0 %v2900_v15  ;;  %2689 = vmatprep.subr.bf16.mxu1 %v2900_v15  ;;  %v194_v48 = vunpack.c.l.s4 %v2906_v47  ;;  %v196_v49 = vlaneseq  ;;  %v2907_v52 = vmov 1934713408   ;;  %vm1079_vm2 = vcmask 64512   ;;  %s2908_s28 = smov 64  }
   0x2   :  { %v60_v2 = vsel %vm59_vm0, %v55_v0, 0.0  ;;  %v63_v3 = vsel %vm59_vm0, %v56_v1, 0.0  ;;  %v2836_v14 = vld [vmem:[%s3492_s3] sm:$0xff]   ;;  %v2837_v16 = vld [vmem:[%s3492_s3 + $0x8] sm:$0xff]   ;;  %2673 = vmatprep.mubr.msk.bf16.mxu0 %vm2901_vm1, %v2900_v15  ;;  %2691 = vmatprep.mubr.msk.bf16.mxu1 %vm2901_vm1, %v2900_v15  ;;  %v226_v53 = vunpack.c.l.s4 %v2907_v52  ;;  %vm1555_vm3 = vcmask 1043456   ;;  %s2910_s10 = smov 8  }
   0x3   :  { %61 = vadd.xlane.f32.xlu0 %v60_v2  ;;  %2670 = vmatpush3.bf16.msra.mxu0 %v2836_v14  ;;  %v2560_v25 = vld [vmem:[%s3493_s1] ss:$0 sm:$0xff]  ;;  %s2902_s1 = smov 112   ;;  %v195_v50 = vunpack.c.0.s8 %v194_v48  ;;  %v197_v51 = vshrl.u32 %v196_v49, 7  ;;  %s2911_s18 = smov 24   ;;  %vm2219_vm4 = vcmask 130048  }
   0x4   :  { %2671 = vmatprep.subr.bf16.mxu0 %v2900_v15  ;;  %v2561_v29 = vld [vmem:[%s3494_s2] ss:$0 sm:$0xff]  ;;  %s2903_s2 = smov 120   ;;  %v227_v59 = vunpack.c.0.s8 %v226_v53  ;;  %vm2222_vm5 = vcmask 195584  }
   0x5   :  { %v2562_v34 = vld [vmem:[%s3495_s4] ss:$0 sm:$0xff]  ;;  %s2905_s4 = smov 96   ;;  %v3062_v56 = vsub.s32 %v195_v50, %v197_v51 }
   0x7   :  { %64 = vadd.xlane.f32.xlu0 %v63_v3  ;;  %2672 = vmatpush3.bf16.msra.mxu0 %v2837_v16 }
   0x8   :  { %2677 = vmatprep.subr.bf16.mxu0 %v2900_v15 }
  0x90   :  { %v62_v4 = vpop.xlane.xlu0 %61 }
  0x91   :  { %v67_v5 = vmul.f32 0.03125, %v62_v4 }
  0x93   :  { %v69_v6 = vsub.f32 %v55_v0, %v67_v5  ;;  %v3072_v0 = vsub.s32 %v227_v59, %v197_v51 }
  0x94   :  { %v65_v7 = vpop.xlane.xlu0 %64 }
  0x95   :  { %v68_v8 = vmul.f32 0.03125, %v65_v7  ;;  %v71_v9 = vmul.f32 %v69_v6, %v69_v6 }
  0x97   :  { %v70_v10 = vsub.f32 %v56_v1, %v68_v8  ;;  %v73_v11 = vsel %vm59_vm0, %v71_v9, 0.0 }
  0x98   :  { %74 = vadd.xlane.f32.xlu1 %v73_v11 }
  0x99   :  { %v72_v12 = vmul.f32 %v70_v10, %v70_v10 }
  0x9b   :  { %v76_v13 = vsel %vm59_vm0, %v72_v12, 0.0 }
  0x9c   :  { %77 = vadd.xlane.f32.xlu1 %v76_v13 }
 0x125   :  { %v75_v17 = vpop.xlane.xlu1 %74 }
 0x126   :  { %v79_v18 = vmul.f32 0.03125, %v75_v17 }
 0x128   :  { %v81_v19 = vadd.f32 1e-05, %v79_v18 }
 0x129   :  { %v78_v20 = vpop.xlane.xlu1 %77 }
 0x12a   :  { %2850 = vrsqrt.f32 %v81_v19  ;;  %v80_v21 = vmul.f32 0.03125, %v78_v20 }
 0x12c   :  { %v82_v22 = vadd.f32 1e-05, %v80_v21 }
 0x12e   :  { %2852 = vrsqrt.f32 %v82_v22 }
 0x134   :  { %v2851_v23 = vpop.eup %2850 }
 0x135   :  { %v85_v24 = vmul.f32 %v2851_v23, %v69_v6 }
 0x137   :  { %v93_v28 = vmul.f32 %v2560_v25, %v85_v24 }
 0x138   :  { %v2853_v26 = vpop.eup %2852 }
 0x139   :  { %v86_v27 = vmul.f32 %v2853_v26, %v70_v10  ;;  %v101_v31 = vadd.f32 %v2561_v29, %v93_v28 }
 0x13b   :  { %v94_v30 = vmul.f32 %v2560_v25, %v86_v27 }
 0x13d   :  { %v102_v32 = vadd.f32 %v2561_v29, %v94_v30 }
 0x13f   :  { %v103_v33 = vpack.c.bf16 %v102_v32, %v101_v31 }
 0x141   :  { %2674 = vmatmul.mubr.msk.bf16.vlgmr.msra.gmra.mrb[0].mxu0 %vm59_vm0, %v103_v33 }
 0x142   :  { %2679 = vmatprep.mubr.msk.bf16.mxu0 %vm2901_vm1, %v2900_v15 }
 0x214   :  { %v164_v35 = vpop.f32.mrb[0].mxu0 }
 0x215   :  { %v3028_v36 = vadd.f32 %v2562_v34, %v164_v35  ;;  %v2675_v37 = vpop.f32.mrb[1].mxu0 }
 0x216   :  { %v167_v38 = vpop.f32.mrb[2].mxu0 }
 0x217   :  { %179 = vrot.lane.b32.xlu1 %v3028_v36, %s2902_s1  ;;  %173 = vrot.lane.b32.xlu0 %v3028_v36, %s2903_s2  ;;  %v2676_v39 = vpop.f32.mrb[3].mxu0  ;;  %v3032_v40 = vadd.f32 %v2562_v34, %v167_v38 }
 0x21b   :  { %185 = vrot.lane.b32.xlu1 %v3028_v36, %s2904_s27  ;;  %181 = vrot.lane.b32.xlu0 %v3032_v40, %s2902_s1 }
 0x21f   :  { %471 = vrot.lane.b32.xlu0 %v3028_v36, %s2905_s4  ;;  %175 = vrot.lane.b32.xlu1 %v3032_v40, %s2903_s2 }
 0x223   :  { %187 = vrot.lane.b32.xlu1 %v3032_v40, %s2904_s27 }
 0x289   :  { %v3039_v41 = vpop.permute.xlu1 %179  ;;  %v3041_v42 = vpop.permute.xlu0 %173 }
 0x28a   :  { %479 = vrot.lane.b32.xlu0 %v3039_v41, %s2905_s4  ;;  %475 = vrot.lane.b32.xlu1 %v3041_v42, %s2905_s4  ;;  %v191_v57 = vcombine.low %v3028_v36, %v3039_v41  ;;  %v192_v58 = vcombine.high %v3028_v36, %v3039_v41 }
 0x28c   :  { %v199_v62 = vrot.slane %v191_v57, %v3062_v56  ;;  %v206_v63 = vrot.slane %v192_v58, %v3062_v56 }
 0x28d   :  { %v3045_v43 = vpop.permute.xlu1 %185  ;;  %v3049_v44 = vpop.permute.xlu0 %181 }
 0x28e   :  { %473 = vrot.lane.b32.xlu0 %v3032_v40, %s2905_s4  ;;  %483 = vrot.lane.b32.xlu1 %v3045_v43, %s2905_s4  ;;  %v207_v54 = vcombine.low %v3041_v42, %v3045_v43  ;;  %v208_v55 = vcombine.high %v3041_v42, %v3045_v43  ;;  %v259_v16 = vcombine.low %v3032_v40, %v3049_v44 }
 0x28f   :  { %v260_v19 = vcombine.high %v3032_v40, %v3049_v44 }
 0x290   :  { %v215_v60 = vrot.slane %v207_v54, %v3062_v56  ;;  %v222_v61 = vrot.slane %v208_v55, %v3062_v56  ;;  %v267_v26 = vrot.slane %v259_v16, %v3062_v56 }
 0x291   :  { %v3051_v45 = vpop.permute.xlu1 %175  ;;  %v472_v10 = vpop.permute.xlu0 %471  ;;  %v274_v28 = vrot.slane %v260_v19, %v3062_v56 }
 0x292   :  { %481 = vrot.lane.b32.xlu0 %v3049_v44, %s2905_s4  ;;  %477 = vrot.lane.b32.xlu1 %v3051_v45, %s2905_s4  ;;  %v223_v1 = vcombine.low %v199_v62, %v215_v60  ;;  %v224_v2 = vcombine.high %v199_v62, %v215_v60  ;;  %v239_v3 = vcombine.low %v206_v63, %v222_v61 }
 0x293   :  { %v240_v4 = vcombine.high %v206_v63, %v222_v61 }
 0x294   :  { %v231_v5 = vrot.slane %v223_v1, %v3072_v0  ;;  %v238_v6 = vrot.slane %v224_v2, %v3072_v0  ;;  %v247_v7 = vrot.slane %v239_v3, %v3072_v0 }
 0x295   :  { %v3055_v46 = vpop.permute.xlu1 %187  ;;  %v254_v8 = vrot.slane %v240_v4, %v3072_v0 }
 0x296   :  { %485 = vrot.lane.b32.xlu1 %v3055_v46, %s2905_s4  ;;  %v327_v9 = vcombine.low %v231_v5, %v238_v6  ;;  %v2566_v11 = vcombine.high %v231_v5, %v238_v6  ;;  %v275_v14 = vcombine.low %v3051_v45, %v3055_v46  ;;  %v276_v17 = vcombine.high %v3051_v45, %v3055_v46 }
 0x297   :  { %v343_v12 = vcombine.low %v247_v7, %v254_v8  ;;  %v2567_v13 = vcombine.high %v247_v7, %v254_v8 }
 0x298   :  { %v334_v18 = vrot.slane %v327_v9, %v3062_v56  ;;  %v342_v22 = vrot.slane %v2566_v11, %v3062_v56  ;;  %v283_v25 = vrot.slane %v275_v14, %v3062_v56  ;;  %v290_v27 = vrot.slane %v276_v17, %v3062_v56 }
 0x299   :  { %v350_v23 = vrot.slane %v343_v12, %v3062_v56  ;;  %v358_v24 = vrot.slane %v2567_v13, %v3062_v56 }
 0x29a   :  { %v291_v32 = vcombine.low %v267_v26, %v283_v25  ;;  %v292_v33 = vcombine.high %v267_v26, %v283_v25  ;;  %v359_v35 = vcombine.low %v334_v18, %v342_v22  ;;  %v307_v47 = vcombine.low %v274_v28, %v290_v27 }
 0x29b   :  { %v375_v37 = vcombine.low %v350_v23, %v358_v24  ;;  %v308_v48 = vcombine.high %v274_v28, %v290_v27  ;;  %v360_v49 = vcombine.high %v334_v18, %v342_v22  ;;  %v376_v50 = vcombine.high %v350_v23, %v358_v24 }
 0x29c   :  { %v299_v55 = vrot.slane %v291_v32, %v3072_v0  ;;  %v306_v57 = vrot.slane %v292_v33, %v3072_v0  ;;  %v3101_v59 = vrot.slane %v359_v35, %v3072_v0  ;;  %v315_v3 = vrot.slane %v307_v47, %v3072_v0 }
 0x29d   :  { %v3104_v60 = vrot.slane %v375_v37, %v3072_v0  ;;  %v322_v4 = vrot.slane %v308_v48, %v3072_v0  ;;  %v3109_v5 = vrot.slane %v360_v49, %v3072_v0  ;;  %v3112_v6 = vrot.slane %v376_v50, %v3072_v0 }
 0x29e   :  { %v395_v11 = vcombine.low %v299_v55, %v306_v57  ;;  %v2568_v12 = vcombine.high %v299_v55, %v306_v57 }
 0x29f   :  { %v2569_v22 = vcombine.high %v315_v3, %v322_v4 }
 0x2fc   :  { %v480_v20 = vpop.permute.xlu0 %479  ;;  %v476_v21 = vpop.permute.xlu1 %475 }
 0x2fd   :  { %v495_v29 = vcombine.low %v472_v10, %v480_v20  ;;  %v496_v30 = vcombine.high %v472_v10, %v480_v20 }
 0x2ff   :  { %v503_v51 = vrot.slane %v495_v29, %v3062_v56  ;;  %v510_v52 = vrot.slane %v496_v30, %v3062_v56 }
 0x300   :  { %v474_v31 = vpop.permute.xlu0 %473  ;;  %v484_v34 = vpop.permute.xlu1 %483 }
 0x301   :  { %v511_v38 = vcombine.low %v476_v21, %v484_v34  ;;  %v512_v39 = vcombine.high %v476_v21, %v484_v34  ;;  %v411_v21 = vcombine.low %v315_v3, %v322_v4 }
 0x303   :  { %v519_v53 = vrot.slane %v511_v38, %v3062_v56  ;;  %v526_v54 = vrot.slane %v512_v39, %v3062_v56 }
 0x304   :  { %v478_v58 = vpop.permute.xlu1 %477  ;;  %v482_v2 = vpop.permute.xlu0 %481 }
 0x305   :  { %v527_v61 = vcombine.low %v503_v51, %v519_v53  ;;  %v528_v62 = vcombine.high %v503_v51, %v519_v53  ;;  %v543_v63 = vcombine.low %v510_v52, %v526_v54  ;;  %v544_v1 = vcombine.high %v510_v52, %v526_v54 }
 0x306   :  { %v563_v13 = vcombine.low %v474_v31, %v482_v2  ;;  %v564_v14 = vcombine.high %v474_v31, %v482_v2 }
 0x307   :  { %v535_v7 = vrot.slane %v527_v61, %v3072_v0  ;;  %v542_v8 = vrot.slane %v528_v62, %v3072_v0  ;;  %v551_v9 = vrot.slane %v543_v63, %v3072_v0  ;;  %v558_v10 = vrot.slane %v544_v1, %v3072_v0 }
 0x308   :  { %v486_v16 = vpop.permute.xlu1 %485  ;;  %v571_v29 = vrot.slane %v563_v13, %v3062_v56  ;;  %v578_v30 = vrot.slane %v564_v14, %v3062_v56  ;;  %v410_v61 = vrot.slane %v2568_v12, %v3062_v56 }
 0x309   :  { %v631_v17 = vcombine.low %v535_v7, %v542_v8  ;;  %v2570_v18 = vcombine.high %v535_v7, %v542_v8  ;;  %v647_v19 = vcombine.low %v551_v9, %v558_v10  ;;  %v2571_v20 = vcombine.high %v551_v9, %v558_v10 }
 0x30a   :  { %v579_v23 = vcombine.low %v478_v58, %v486_v16  ;;  %v580_v24 = vcombine.high %v478_v58, %v486_v16  ;;  %v3135_v58 = vrot.slane %v395_v11, %v3062_v56  ;;  %v418_v7 = vrot.slane %v411_v21, %v3062_v56 }
 0x30b   :  { %v638_v25 = vrot.slane %v631_v17, %v3062_v56  ;;  %v646_v26 = vrot.slane %v2570_v18, %v3062_v56  ;;  %v654_v27 = vrot.slane %v647_v19, %v3062_v56  ;;  %v662_v28 = vrot.slane %v2571_v20, %v3062_v56 }
 0x30c   :  { %v587_v31 = vrot.slane %v579_v23, %v3062_v56  ;;  %v594_v32 = vrot.slane %v580_v24, %v3062_v56  ;;  %v426_v8 = vrot.slane %v2569_v22, %v3062_v56  ;;  %v391_v22 = vcombine.low %v3101_v59, %v3104_v60 }
 0x30d   :  { %v663_v33 = vcombine.low %v638_v25, %v646_v26  ;;  %v679_v34 = vcombine.low %v654_v27, %v662_v28  ;;  %v664_v35 = vcombine.high %v638_v25, %v646_v26  ;;  %v680_v37 = vcombine.high %v654_v27, %v662_v28 }
 0x30e   :  { %v595_v38 = vcombine.low %v571_v29, %v587_v31  ;;  %v596_v39 = vcombine.high %v571_v29, %v587_v31  ;;  %v611_v47 = vcombine.low %v578_v30, %v594_v32  ;;  %v612_v48 = vcombine.high %v578_v30, %v594_v32 }
 0x30f   :  { %v671_v49 = vrot.slane %v663_v33, %v3072_v0  ;;  %v687_v50 = vrot.slane %v679_v34, %v3072_v0  ;;  %v678_v51 = vrot.slane %v664_v35, %v3072_v0  ;;  %v694_v52 = vrot.slane %v680_v37, %v3072_v0 }
 0x310   :  { %v603_v53 = vrot.slane %v595_v38, %v3072_v0  ;;  %v610_v54 = vrot.slane %v596_v39, %v3072_v0  ;;  %v619_v55 = vrot.slane %v611_v47, %v3072_v0  ;;  %v626_v57 = vrot.slane %v612_v48, %v3072_v0 }
 0x311   :  { %v695_v62 = vcombine.low %v671_v49, %v687_v50  ;;  %v697_v63 = vcombine.low %v678_v51, %v694_v52  ;;  %v696_v18 = vcombine.high %v671_v49, %v687_v50  ;;  %v393_v23 = vcombine.low %v3109_v5, %v3112_v6 }
 0x312   :  { %v699_v1 = vcombine.low %v603_v53, %v610_v54  ;;  %v2572_v2 = vcombine.high %v603_v53, %v610_v54  ;;  %v715_v3 = vcombine.low %v619_v55, %v626_v57  ;;  %v2573_v4 = vcombine.high %v619_v55, %v626_v57 }
 0x313   :  { %v767_v9 = vpack.c.bf16 %v695_v62, %v695_v62  ;;  %v769_v10 = vpack.c.bf16 %v697_v63, %v697_v63  ;;  %v427_v27 = vcombine.low %v3135_v58, %v410_v61  ;;  %v443_v28 = vcombine.low %v418_v7, %v426_v8 }
 0x314   :  { %v706_v13 = vrot.slane %v699_v1, %v3062_v56  ;;  %v714_v14 = vrot.slane %v2572_v2, %v3062_v56  ;;  %v722_v11 = vrot.slane %v715_v3, %v3062_v56  ;;  %v730_v12 = vrot.slane %v2573_v4, %v3062_v56 }
 0x315   :  { %v1084_v16 = vsel %vm1079_vm2, %v767_v9, 0  ;;  %v1176_v17 = vsel %vm1079_vm2, %v769_v10, 0  ;;  %v768_v29 = vpack.c.bf16 %v696_v18, %v696_v18  ;;  %v463_v33 = vpack.c.bf16 %v391_v22, %v391_v22 }
 0x316   :  { %2678 = vmatpush3.bf16.xpose.msra.mxu0 %v1084_v16  ;;  %2690 = vmatpush3.bf16.xpose.msra.mxu1 %v1176_v17  ;;  %v731_v19 = vcombine.low %v706_v13, %v714_v14  ;;  %v747_v20 = vcombine.low %v722_v11, %v730_v12  ;;  %v732_v21 = vcombine.high %v706_v13, %v714_v14 }
 0x317   :  { %2683 = vmatprep.subr.bf16.mxu0 %v2900_v15  ;;  %2701 = vmatprep.subr.bf16.mxu1 %v2900_v15  ;;  %v748_v24 = vcombine.high %v722_v11, %v730_v12  ;;  %v465_v34 = vpack.c.bf16 %v393_v23, %v393_v23  ;;  %v435_v37 = vrot.slane %v427_v27, %v3072_v0  ;;  %v1130_v39 = vsel %vm1079_vm2, %v768_v29, 0 }
 0x318   :  { %v739_v25 = vrot.slane %v731_v19, %v3072_v0  ;;  %v755_v26 = vrot.slane %v747_v20, %v3072_v0  ;;  %v746_v31 = vrot.slane %v732_v21, %v3072_v0  ;;  %v451_v38 = vrot.slane %v443_v28, %v3072_v0 }
 0x319   :  { %v762_v32 = vrot.slane %v748_v24, %v3072_v0  ;;  %v698_v47 = vcombine.high %v678_v51, %v694_v52  ;;  %v392_v50 = vcombine.high %v3101_v59, %v3104_v60  ;;  %v428_v51 = vcombine.high %v3135_v58, %v410_v61 }
 0x31a   :  { %v763_v30 = vcombine.low %v739_v25, %v755_v26  ;;  %v459_v53 = vcombine.low %v435_v37, %v451_v38  ;;  %v444_v52 = vcombine.high %v418_v7, %v426_v8  ;;  %v764_v60 = vcombine.high %v739_v25, %v755_v26 }
 0x31b   :  { %v765_v49 = vcombine.low %v746_v31, %v762_v32  ;;  %v770_v54 = vpack.c.bf16 %v698_v47, %v698_v47  ;;  %v464_v57 = vpack.c.bf16 %v392_v50, %v392_v50  ;;  %v442_v63 = vrot.slane %v428_v51, %v3072_v0 }
 0x31c   :  { %v771_v35 = vpack.c.bf16 %v763_v30, %v763_v30  ;;  %v467_v62 = vpack.c.bf16 %v459_v53, %v459_v53  ;;  %v458_v1 = vrot.slane %v444_v52, %v3072_v0  ;;  %v394_v58 = vcombine.high %v3109_v5, %v3112_v6 }
 0x31d   :  { %2680 = vmatmul.mubr.msk.bf16.vlgmr.msra.gmra.mrb[4].mxu0 %vm1079_vm2, %v463_v33  ;;  %2692 = vmatmul.mubr.msk.bf16.vlgmr.msra.gmra.mrb[0].mxu1 %vm1079_vm2, %v465_v34  ;;  %v773_v55 = vpack.c.bf16 %v765_v49, %v765_v49  ;;  %v1222_v59 = vsel %vm1079_vm2, %v770_v54, 0  ;;  %v772_v3 = vpack.c.bf16 %v764_v60, %v764_v60  ;;  %v766_v5 = vcombine.high %v746_v31, %v762_v32 }
 0x31e   :  { %2684 = vmatpush3.bf16.xpose.msra.mxu0 %v1130_v39  ;;  %v1268_v48 = vsel %vm1079_vm2, %v771_v35, 0  ;;  %2685 = vmatprep.mubr.msk.bf16.mxu0 %vm2901_vm1, %v2900_v15  ;;  %v461_v61 = vcombine.low %v442_v63, %v458_v1  ;;  %v466_v4 = vpack.c.bf16 %v394_v58, %v394_v58  ;;  %v460_v6 = vcombine.high %v435_v37, %v451_v38 }
 0x31f   :  { %2702 = vmatpush3.bf16.xpose.msra.mxu1 %v1268_v48  ;;  %2703 = vmatprep.mubr.msk.bf16.mxu1 %vm2901_vm1, %v2900_v15  ;;  %v1360_v2 = vsel %vm1079_vm2, %v773_v55, 0  ;;  %v1314_v8 = vsel %vm1079_vm2, %v772_v3, 0  ;;  %v774_v9 = vpack.c.bf16 %v766_v5, %v766_v5  ;;  %v462_v14 = vcombine.high %v442_v63, %v458_v1 }
 0x320   :  { %2695 = vmatprep.subr.bf16.mxu0 %v2900_v15  ;;  %2713 = vmatprep.subr.bf16.mxu1 %v2900_v15  ;;  %v469_v7 = vpack.c.bf16 %v461_v61, %v461_v61  ;;  %v468_v10 = vpack.c.bf16 %v460_v6, %v460_v6 }
 0x321   :  { %v1406_v13 = vsel %vm1079_vm2, %v774_v9, 0  ;;  %v470_v11 = vpack.c.bf16 %v462_v14, %v462_v14 }
 0x325   :  { %2686 = vmatmul.mubr.msk.bf16.vlgmr.msra.gmra.mrb[8].mxu0 %vm1079_vm2, %v464_v57 }
 0x326   :  { %2704 = vmatmul.mubr.msk.bf16.vlgmr.msra.gmra.mrb[4].mxu1 %vm1079_vm2, %v467_v62  ;;  %2696 = vmatpush3.bf16.xpose.msra.mxu0 %v1222_v59 }
 0x327   :  { %2714 = vmatpush3.bf16.xpose.msra.mxu1 %v1360_v2  ;;  %2697 = vmatprep.mubr.msk.bf16.mxu0 %vm2901_vm1, %v2900_v15 }
 0x328   :  { %2715 = vmatprep.mubr.msk.bf16.mxu1 %vm2901_vm1, %v2900_v15  ;;  %2707 = vmatprep.subr.bf16.mxu0 %v2900_v15 }
 0x329   :  { %2725 = vmatprep.subr.bf16.mxu1 %v2900_v15 }
 0x32d   :  { %2698 = vmatmul.mubr.msk.bf16.vlgmr.msra.gmra.mrb[12].mxu0 %vm1079_vm2, %v466_v4 }
 0x32e   :  { %2716 = vmatmul.mubr.msk.bf16.vlgmr.msra.gmra.mrb[8].mxu1 %vm1079_vm2, %v469_v7  ;;  %2708 = vmatpush3.bf16.xpose.msra.mxu0 %v1314_v8 }
 0x32f   :  { %2709 = vmatprep.mubr.msk.bf16.mxu0 %vm2901_vm1, %v2900_v15  ;;  %2719 = vmatprep.subr.bf16.mxu0 %v2900_v15 }
 0x330   :  { %2727 = vmatprep.mubr.msk.bf16.mxu1 %vm2901_vm1, %v2900_v15 }
 0x335   :  { %2710 = vmatmul.mubr.msk.bf16.vlgmr.msra.gmra.mrb[16].mxu0 %vm1079_vm2, %v468_v10 }
 0x336   :  { %2720 = vmatpush3.bf16.xpose.msra.mxu0 %v1406_v13  ;;  %2721 = vmatprep.mubr.msk.bf16.mxu0 %vm2901_vm1, %v2900_v15 }
 0x337   :  { %2731 = vmatprep.subr.bf16.mxu0 %v2900_v15 }
 0x33d   :  { %2722 = vmatmul.mubr.msk.bf16.vlgmr.msra.gmra.mrb[20].mxu0 %vm1079_vm2, %v470_v11 }
 0x33e   :  { %2733 = vmatprep.mubr.msk.bf16.mxu0 %vm2901_vm1, %v2900_v15 }
 0x3f0   :  { %v1120_v12 = vpop.f32.mrb[4].mxu0  ;;  %v1212_v16 = vpop.f32.mrb[0].mxu1 }
 0x3f1   :  { %v1448_v17 = vmul.f32 0.35355338, %v1120_v12  ;;  %v2681_v18 = vpop.f32.mrb[5].mxu0  ;;  %v2693_v19 = vpop.f32.mrb[1].mxu1  ;;  %v1450_v22 = vmul.f32 0.35355338, %v1212_v16 }
 0x3f2   :  { %v1123_v20 = vpop.f32.mrb[6].mxu0  ;;  %v1215_v21 = vpop.f32.mrb[2].mxu1 }
 0x3f3   :  { %v2682_v23 = vpop.f32.mrb[7].mxu0  ;;  %v2694_v24 = vpop.f32.mrb[3].mxu1  ;;  %v1456_v25 = vsel %vm1079_vm2, %v1448_v17, -inf  ;;  %v1462_v26 = vsel %vm1079_vm2, %v1450_v22, -inf }
 0x3f4   :  { %1457 = vmax.xlane.f32.xlu0 %v1456_v25 }
 0x3f8   :  { %1463 = vmax.xlane.f32.xlu0 %v1462_v26  ;;  %v1166_v27 = vpop.f32.mrb[8].mxu0 }
 0x3f9   :  { %v1304_v28 = vpop.f32.mrb[4].mxu1  ;;  %v1449_v29 = vmul.f32 0.35355338, %v1166_v27  ;;  %v2687_v30 = vpop.f32.mrb[9].mxu0 }
 0x3fa   :  { %v1452_v31 = vmul.f32 0.35355338, %v1304_v28  ;;  %v2705_v32 = vpop.f32.mrb[5].mxu1  ;;  %v1169_v33 = vpop.f32.mrb[10].mxu0 }
 0x3fb   :  { %v1307_v34 = vpop.f32.mrb[6].mxu1  ;;  %v2688_v35 = vpop.f32.mrb[11].mxu0  ;;  %v1459_v37 = vsel %vm1079_vm2, %v1449_v29, -inf }
 0x3fc   :  { %v2706_v38 = vpop.f32.mrb[7].mxu1  ;;  %v1468_v39 = vsel %vm1079_vm2, %v1452_v31, -inf  ;;  %1460 = vmax.xlane.f32.xlu1 %v1459_v37 }
 0x3fd   :  { %1469 = vmax.xlane.f32.xlu0 %v1468_v39 }
 0x400   :  { %v1258_v47 = vpop.f32.mrb[12].mxu0 }
 0x401   :  { %v1451_v48 = vmul.f32 0.35355338, %v1258_v47  ;;  %v1396_v49 = vpop.f32.mrb[8].mxu1  ;;  %v2699_v50 = vpop.f32.mrb[13].mxu0 }
 0x402   :  { %v2717_v53 = vpop.f32.mrb[9].mxu1  ;;  %v1261_v51 = vpop.f32.mrb[14].mxu0  ;;  %v3206_v52 = vmul.f32 0.35355338, %v1396_v49 }
 0x403   :  { %v1399_v54 = vpop.f32.mrb[10].mxu1  ;;  %v2700_v55 = vpop.f32.mrb[15].mxu0  ;;  %v1465_v57 = vsel %vm1079_vm2, %v1451_v48, -inf }
 0x404   :  { %v2718_v62 = vpop.f32.mrb[11].mxu1  ;;  %1466 = vmax.xlane.f32.xlu0 %v1465_v57  ;;  %v1474_v63 = vsel %vm1079_vm2, %v3206_v52, -inf }
 0x408   :  { %1475 = vmax.xlane.f32.xlu0 %v1474_v63  ;;  %v1350_v1 = vpop.f32.mrb[16].mxu0 }
 0x409   :  { %v2711_v59 = vpop.f32.mrb[17].mxu0  ;;  %v1453_v7 = vmul.f32 0.35355338, %v1350_v1 }
 0x40a   :  { %v1353_v60 = vpop.f32.mrb[18].mxu0 }
 0x40b   :  { %v2712_v2 = vpop.f32.mrb[19].mxu0  ;;  %v1471_v5 = vsel %vm1079_vm2, %v1453_v7, -inf }
 0x40d   :  { %779 = vrot.lane.b32.xlu1 %v3041_v42, %s2908_s28 }
 0x410   :  { %v1442_v58 = vpop.f32.mrb[20].mxu0 }
 0x411   :  { %783 = vrot.lane.b32.xlu1 %v3039_v41, %s2908_s28  ;;  %v2723_v61 = vpop.f32.mrb[21].mxu0  ;;  %v1455_v8 = vmul.f32 0.35355338, %v1442_v58 }
 0x412   :  { %v1445_v3 = vpop.f32.mrb[22].mxu0 }
 0x413   :  { %v2724_v4 = vpop.f32.mrb[23].mxu0  ;;  %v1477_v6 = vsel %vm1079_vm2, %v1455_v8, -inf }
 0x41e   :  { %775 = vrot.lane.b32.xlu0 %v3028_v36, %s2908_s28 }
 0x435   :  { %1472 = vmax.xlane.f32.xlu1 %v1471_v5 }
 0x439   :  { %1478 = vmax.xlane.f32.xlu1 %v1477_v6 }
 0x44a   :  { %787 = vrot.lane.b32.xlu1 %v3045_v43, %s2908_s28 }
 0x481   :  { %v1458_v42 = vpop.xlane.xlu0 %1457 }
 0x482   :  { %v1480_v9 = vsub.f32 %v1448_v17, %v1458_v42 }
 0x484   :  { %v1488_v41 = vmul.f32 1.442695, %v1480_v9 }
 0x485   :  { %v1464_v10 = vpop.xlane.xlu0 %1463 }
 0x486   :  { %2854 = vpow2.f32 %v1488_v41  ;;  %v1482_v13 = vsub.f32 %v1450_v22, %v1464_v10 }
 0x488   :  { %v1492_v14 = vmul.f32 1.442695, %v1482_v13 }
 0x489   :  { %v1461_v11 = vpop.xlane.xlu1 %1460 }
 0x48a   :  { %2856 = vpow2.f32 %v1492_v14  ;;  %v1470_v36 = vpop.xlane.xlu0 %1469  ;;  %v1481_v12 = vsub.f32 %v1449_v29, %v1461_v11 }
 0x48b   :  { %v1484_v16 = vsub.f32 %v1452_v31, %v1470_v36 }
 0x48c   :  { %v1490_v18 = vmul.f32 1.442695, %v1481_v12 }
 0x48d   :  { %v1496_v19 = vmul.f32 1.442695, %v1484_v16  ;;  %v780_v31 = vpop.permute.xlu1 %779 }
 0x48e   :  { %2858 = vpow2.f32 %v1490_v18 }
 0x48f   :  { %2860 = vpow2.f32 %v1496_v19 }
 0x490   :  { %v3221_v20 = vpop.eup %2854 }
 0x491   :  { %v1467_v21 = vpop.xlane.xlu0 %1466  ;;  %v1504_v43 = vsel %vm1079_vm2, %v3221_v20, 0.0  ;;  %v784_v32 = vpop.permute.xlu1 %783 }
 0x492   :  { %v1483_v17 = vsub.f32 %v1451_v48, %v1467_v21  ;;  %1505 = vadd.xlane.f32.xlu0 %v1504_v43 }
 0x494   :  { %v3225_v23 = vpop.eup %2856  ;;  %v1494_v22 = vmul.f32 1.442695, %v1483_v17 }
 0x495   :  { %v1510_v24 = vsel %vm1079_vm2, %v3225_v23, 0.0  ;;  %v3247_v33 = vpop.xlane.xlu0 %1475 }
 0x496   :  { %2862 = vpow2.f32 %v1494_v22  ;;  %1511 = vadd.xlane.f32.xlu0 %v1510_v24 }
 0x498   :  { %v3229_v25 = vpop.eup %2858 }
 0x499   :  { %v3231_v26 = vpop.eup %2860  ;;  %v1507_v27 = vsel %vm1079_vm2, %v3229_v25, 0.0  ;;  %v776_v38 = vpop.permute.xlu0 %775 }
 0x49a   :  { %v1516_v28 = vsel %vm1079_vm2, %v3231_v26, 0.0  ;;  %1508 = vadd.xlane.f32.xlu1 %v1507_v27  ;;  %v799_v48 = vcombine.low %v776_v38, %v784_v32  ;;  %v800_v49 = vcombine.high %v776_v38, %v784_v32  ;;  %v1486_v32 = vsub.f32 %v3206_v52, %v3247_v33 }
 0x49b   :  { %1517 = vadd.xlane.f32.xlu0 %v1516_v28 }
 0x49c   :  { %v807_v51 = vrot.slane %v799_v48, %v3062_v56 }
 0x4a0   :  { %v3237_v29 = vpop.eup %2862 }
 0x4a1   :  { %v1513_v30 = vsel %vm1079_vm2, %v3237_v29, 0.0 }
 0x4a2   :  { %1514 = vadd.xlane.f32.xlu1 %v1513_v30 }
 0x4b3   :  { %781 = vrot.lane.b32.xlu1 %v3051_v45, %s2908_s28 }
 0x4b7   :  { %785 = vrot.lane.b32.xlu1 %v3049_v44, %s2908_s28 }
 0x4bb   :  { %789 = vrot.lane.b32.xlu1 %v3055_v46, %s2908_s28  ;;  %v814_v46 = vrot.slane %v800_v49, %v3062_v56 }
 0x4c2   :  { %v1473_v34 = vpop.xlane.xlu1 %1472 }
 0x4c3   :  { %v1485_v35 = vsub.f32 %v1453_v7, %v1473_v34  ;;  %v1500_v34 = vmul.f32 1.442695, %v1486_v32 }
 0x4c5   :  { %v1498_v37 = vmul.f32 1.442695, %v1485_v35 }
 0x4c6   :  { %v1479_v39 = vpop.xlane.xlu1 %1478 }
 0x4c7   :  { %2864 = vpow2.f32 %v1498_v37  ;;  %v1487_v47 = vsub.f32 %v1455_v8, %v1479_v39 }
 0x4c9   :  { %v1502_v44 = vmul.f32 1.442695, %v1487_v47 }
 0x4ca   :  { %v788_v45 = vpop.permute.xlu1 %787 }
 0x4cb   :  { %v815_v50 = vcombine.low %v780_v31, %v788_v45  ;;  %v816_v53 = vcombine.high %v780_v31, %v788_v45  ;;  %2866 = vpow2.f32 %v1502_v44 }
 0x4cc   :  { %2868 = vpow2.f32 %v1500_v34 }
 0x4cd   :  { %v823_v54 = vrot.slane %v815_v50, %v3062_v56  ;;  %v830_v55 = vrot.slane %v816_v53, %v3062_v56 }
 0x4cf   :  { %v831_v57 = vcombine.low %v807_v51, %v823_v54  ;;  %v832_v62 = vcombine.high %v807_v51, %v823_v54  ;;  %v847_v63 = vcombine.low %v814_v46, %v830_v55  ;;  %v848_v1 = vcombine.high %v814_v46, %v830_v55 }
 0x4d1   :  { %v3253_v59 = vpop.eup %2864  ;;  %v839_v60 = vrot.slane %v831_v57, %v3072_v0  ;;  %v846_v2 = vrot.slane %v832_v62, %v3072_v0  ;;  %v855_v58 = vrot.slane %v847_v63, %v3072_v0  ;;  %v862_v61 = vrot.slane %v848_v1, %v3072_v0 }
 0x4d2   :  { %v1519_v3 = vsel %vm1079_vm2, %v3253_v59, 0.0 }
 0x4d3   :  { %v935_v4 = vcombine.low %v839_v60, %v846_v2  ;;  %v2574_v7 = vcombine.high %v839_v60, %v846_v2  ;;  %v951_v8 = vcombine.low %v855_v58, %v862_v61  ;;  %v2575_v5 = vcombine.high %v855_v58, %v862_v61  ;;  %1520 = vadd.xlane.f32.xlu0 %v1519_v3 }
 0x4d5   :  { %v942_v6 = vrot.slane %v935_v4, %v3062_v56  ;;  %v950_v42 = vrot.slane %v2574_v7, %v3062_v56  ;;  %v958_v9 = vrot.slane %v951_v8, %v3062_v56  ;;  %v966_v41 = vrot.slane %v2575_v5, %v3062_v56  ;;  %v3269_v19 = vpop.eup %2866 }
 0x4d6   :  { %v1525_v28 = vsel %vm1079_vm2, %v3269_v19, 0.0  ;;  %v3281_v35 = vpop.eup %2868 }
 0x4d7   :  { %v967_v10 = vcombine.low %v942_v6, %v950_v42  ;;  %v983_v13 = vcombine.low %v958_v9, %v966_v41  ;;  %v968_v14 = vcombine.high %v942_v6, %v950_v42  ;;  %v984_v11 = vcombine.high %v958_v9, %v966_v41 }
 0x4d8   :  { %v1522_v37 = vsel %vm1079_vm2, %v3281_v35, 0.0 }
 0x4d9   :  { %v975_v36 = vrot.slane %v967_v10, %v3072_v0  ;;  %v991_v12 = vrot.slane %v983_v13, %v3072_v0  ;;  %v982_v16 = vrot.slane %v968_v14, %v3072_v0  ;;  %v998_v18 = vrot.slane %v984_v11, %v3072_v0 }
 0x4db   :  { %v999_v21 = vcombine.low %v975_v36, %v991_v12  ;;  %v1000_v43 = vcombine.high %v975_v36, %v991_v12  ;;  %v1001_v17 = vcombine.low %v982_v16, %v998_v18  ;;  %v1002_v22 = vcombine.high %v982_v16, %v998_v18 }
 0x4dd   :  { %v1071_v24 = vpack.c.bf16 %v999_v21, %v999_v21  ;;  %v1072_v27 = vpack.c.bf16 %v1000_v43, %v1000_v43  ;;  %v1073_v49 = vpack.c.bf16 %v1001_v17, %v1001_v17  ;;  %v1074_v51 = vpack.c.bf16 %v1002_v22, %v1002_v22 }
 0x4df   :  { %1526 = vadd.xlane.f32.xlu1 %v1525_v28  ;;  %v1557_v30 = vsel %vm1555_vm3, %v1071_v24, 0  ;;  %v1603_v31 = vsel %vm1555_vm3, %v1072_v27, 0  ;;  %v1649_v33 = vsel %vm1555_vm3, %v1073_v49, 0  ;;  %v1695_v55 = vsel %vm1555_vm3, %v1074_v51, 0 }
 0x4e0   :  { %2726 = vmatpush3.bf16.msra.mxu1 %v1557_v30  ;;  %2732 = vmatpush3.bf16.msra.mxu0 %v1603_v31 }
 0x4e1   :  { %2737 = vmatprep.subr.bf16.mxu1 %v2900_v15  ;;  %2743 = vmatprep.subr.bf16.mxu0 %v2900_v15 }
 0x4e9   :  { %777 = vrot.lane.b32.xlu0 %v3032_v40, %s2908_s28 }
 0x508   :  { %1523 = vadd.xlane.f32.xlu0 %v1522_v37 }
 0x51f   :  { %v1506_v38 = vpop.xlane.xlu0 %1505 }
 0x520   :  { %2870 = vrcp.f32 %v1506_v38 }
 0x523   :  { %v1512_v39 = vpop.xlane.xlu0 %1511 }
 0x524   :  { %2872 = vrcp.f32 %v1512_v39 }
 0x527   :  { %v1509_v47 = vpop.xlane.xlu1 %1508 }
 0x528   :  { %2874 = vrcp.f32 %v1509_v47  ;;  %v1518_v1 = vpop.xlane.xlu0 %1517 }
 0x52a   :  { %v2871_v48 = vpop.eup %2870 }
 0x52b   :  { %v1536_v40 = vmul.f32 %v2871_v48, %v3221_v20 }
 0x52d   :  { %v1544_v45 = vpack.c.bf16 %v1536_v40, %v1536_v40 }
 0x52e   :  { %v2873_v52 = vpop.eup %2872 }
 0x52f   :  { %2728 = vmatmul.mubr.msk.bf16.vlgmr.msra.gmra.mrb[12].mxu1 %vm1079_vm2, %v1544_v45  ;;  %v1515_v50 = vpop.xlane.xlu1 %1514  ;;  %v1538_v53 = vmul.f32 %v2873_v52, %v3225_v23 }
 0x530   :  { %2738 = vmatpush3.bf16.msra.mxu1 %v1649_v33  ;;  %2876 = vrcp.f32 %v1515_v50  ;;  %2739 = vmatprep.mubr.msk.bf16.mxu1 %vm2901_vm1, %v2900_v15 }
 0x531   :  { %2749 = vmatprep.subr.bf16.mxu1 %v2900_v15  ;;  %v1546_v54 = vpack.c.bf16 %v1538_v53, %v1538_v53  ;;  %2878 = vrcp.f32 %v1518_v1 }
 0x532   :  { %v2875_v44 = vpop.eup %2874 }
 0x533   :  { %v1537_v20 = vmul.f32 %v2875_v44, %v3229_v25  ;;  %v782_v62 = vpop.permute.xlu1 %781 }
 0x535   :  { %v1545_v46 = vpack.c.bf16 %v1537_v20, %v1537_v20 }
 0x537   :  { %2734 = vmatmul.mubr.msk.bf16.vlgmr.msra.gmra.mrb[24].mxu0 %vm1079_vm2, %v1545_v46  ;;  %2740 = vmatmul.mubr.msk.bf16.vlgmr.msra.gmra.mrb[16].mxu1 %vm1079_vm2, %v1546_v54  ;;  %v786_v63 = vpop.permute.xlu1 %785 }
 0x538   :  { %2744 = vmatpush3.bf16.msra.mxu0 %v1695_v55  ;;  %2745 = vmatprep.mubr.msk.bf16.mxu0 %vm2901_vm1, %v2900_v15 }
 0x539   :  { %2755 = vmatprep.subr.bf16.mxu0 %v2900_v15  ;;  %2751 = vmatprep.mubr.msk.bf16.mxu1 %vm2901_vm1, %v2900_v15 }
 0x53a   :  { %v2877_v23 = vpop.eup %2876 }
 0x53b   :  { %v1539_v25 = vmul.f32 %v2877_v23, %v3237_v29  ;;  %v790_v60 = vpop.permute.xlu1 %789  ;;  %v2879_v34 = vpop.eup %2878 }
 0x53c   :  { %v883_v58 = vcombine.low %v782_v62, %v790_v60  ;;  %v884_v61 = vcombine.high %v782_v62, %v790_v60  ;;  %v1540_v33 = vmul.f32 %v2879_v34, %v3231_v26 }
 0x53d   :  { %v1547_v57 = vpack.c.bf16 %v1539_v25, %v1539_v25 }
 0x53e   :  { %v891_v8 = vrot.slane %v883_v58, %v3062_v56  ;;  %v898_v29 = vrot.slane %v884_v61, %v3062_v56  ;;  %v1548_v55 = vpack.c.bf16 %v1540_v33, %v1540_v33 }
 0x53f   :  { %2746 = vmatmul.mubr.msk.bf16.vlgmr.msra.gmra.mrb[28].mxu0 %vm1079_vm2, %v1547_v57 }
 0x540   :  { %2757 = vmatprep.mubr.msk.bf16.mxu0 %vm2901_vm1, %v2900_v15 }
 0x560   :  { %v1521_v2 = vpop.xlane.xlu0 %1520 }
 0x561   :  { %2880 = vrcp.f32 %v1521_v2 }
 0x564   :  { %v778_v3 = vpop.permute.xlu0 %777 }
 0x565   :  { %v867_v4 = vcombine.low %v778_v3, %v786_v63  ;;  %v868_v7 = vcombine.high %v778_v3, %v786_v63 }
 0x567   :  { %v875_v5 = vrot.slane %v867_v4, %v3062_v56  ;;  %v882_v6 = vrot.slane %v868_v7, %v3062_v56 }
 0x569   :  { %v899_v42 = vcombine.low %v875_v5, %v891_v8  ;;  %v900_v9 = vcombine.high %v875_v5, %v891_v8  ;;  %v915_v41 = vcombine.low %v882_v6, %v898_v29  ;;  %v916_v10 = vcombine.high %v882_v6, %v898_v29 }
 0x56b   :  { %v907_v13 = vrot.slane %v899_v42, %v3072_v0  ;;  %v914_v14 = vrot.slane %v900_v9, %v3072_v0  ;;  %v923_v11 = vrot.slane %v915_v41, %v3072_v0  ;;  %v930_v36 = vrot.slane %v916_v10, %v3072_v0  ;;  %v2881_v48 = vpop.eup %2880 }
 0x56c   :  { %v1527_v27 = vpop.xlane.xlu1 %1526  ;;  %v1541_v50 = vmul.f32 %v2881_v48, %v3253_v59 }
 0x56d   :  { %v1003_v12 = vcombine.low %v907_v13, %v914_v14  ;;  %v2576_v16 = vcombine.high %v907_v13, %v914_v14  ;;  %v1019_v18 = vcombine.low %v923_v11, %v930_v36  ;;  %v2577_v21 = vcombine.high %v923_v11, %v930_v36 }
 0x56e   :  { %2882 = vrcp.f32 %v1527_v27  ;;  %v1549_v23 = vpack.c.bf16 %v1541_v50, %v1541_v50 }
 0x56f   :  { %v1010_v43 = vrot.slane %v1003_v12, %v3062_v56  ;;  %v1018_v17 = vrot.slane %v2576_v16, %v3062_v56  ;;  %v1026_v22 = vrot.slane %v1019_v18, %v3062_v56  ;;  %v1034_v24 = vrot.slane %v2577_v21, %v3062_v56 }
 0x571   :  { %v1035_v28 = vcombine.low %v1010_v43, %v1018_v17  ;;  %v1051_v30 = vcombine.low %v1026_v22, %v1034_v24  ;;  %v1036_v31 = vcombine.high %v1010_v43, %v1018_v17  ;;  %v1052_v32 = vcombine.high %v1026_v22, %v1034_v24 }
 0x573   :  { %v1043_v37 = vrot.slane %v1035_v28, %v3072_v0  ;;  %v1059_v38 = vrot.slane %v1051_v30, %v3072_v0  ;;  %v1050_v39 = vrot.slane %v1036_v31, %v3072_v0  ;;  %v1066_v47 = vrot.slane %v1052_v32, %v3072_v0 }
 0x575   :  { %v1067_v40 = vcombine.low %v1043_v37, %v1059_v38  ;;  %v1068_v49 = vcombine.high %v1043_v37, %v1059_v38  ;;  %v1069_v45 = vcombine.low %v1050_v39, %v1066_v47  ;;  %v1070_v52 = vcombine.high %v1050_v39, %v1066_v47 }
 0x577   :  { %v1075_v53 = vpack.c.bf16 %v1067_v40, %v1067_v40  ;;  %v1076_v44 = vpack.c.bf16 %v1068_v49, %v1068_v49  ;;  %v1077_v46 = vpack.c.bf16 %v1069_v45, %v1069_v45  ;;  %v1078_v54 = vpack.c.bf16 %v1070_v52, %v1070_v52 }
 0x578   :  { %v2883_v25 = vpop.eup %2882 }
 0x579   :  { %v1741_v20 = vsel %vm1555_vm3, %v1075_v53, 0  ;;  %v1787_v51 = vsel %vm1555_vm3, %v1076_v44, 0  ;;  %v1833_v26 = vsel %vm1555_vm3, %v1077_v46, 0  ;;  %v1879_v59 = vsel %vm1555_vm3, %v1078_v54, 0 }
 0x57a   :  { %2750 = vmatpush3.bf16.msra.mxu1 %v1741_v20  ;;  %2756 = vmatpush3.bf16.msra.mxu0 %v1787_v51  ;;  %v1543_v57 = vmul.f32 %v2883_v25, %v3269_v19 }
 0x57b   :  { %2761 = vmatprep.subr.bf16.mxu1 %v2900_v15  ;;  %2767 = vmatprep.subr.bf16.mxu0 %v2900_v15 }
 0x57c   :  { %v1551_v62 = vpack.c.bf16 %v1543_v57, %v1543_v57 }
 0x57d   :  { %2752 = vmatmul.mubr.msk.bf16.vlgmr.msra.gmra.mrb[20].mxu1 %vm1079_vm2, %v1548_v55  ;;  %2758 = vmatmul.mubr.msk.bf16.vlgmr.msra.gmra.mrb[32].mxu0 %vm1079_vm2, %v1549_v23 }
 0x57e   :  { %2762 = vmatpush3.bf16.msra.mxu1 %v1833_v26  ;;  %2768 = vmatpush3.bf16.msra.mxu0 %v1879_v59 }
 0x57f   :  { %2769 = vmatprep.mubr.msk.bf16.mxu0 %vm2901_vm1, %v2900_v15  ;;  %2763 = vmatprep.mubr.msk.bf16.mxu1 %vm2901_vm1, %v2900_v15 }
 0x580   :  { %2773 = vmatprep.subr.bf16.mxu1 %v2900_v15  ;;  %2781 = vmatprep.subr.bf16.mxu0 %v2900_v15 }
 0x585   :  { %2770 = vmatmul.mubr.msk.bf16.vlgmr.msra.gmra.mrb[36].mxu0 %vm1079_vm2, %v1551_v62 }
 0x586   :  { %2785 = vmatprep.mubr.msk.bf16.mxu0 %vm2901_vm1, %v2900_v15 }
 0x595   :  { %v1524_v63 = vpop.xlane.xlu0 %1523 }
 0x596   :  { %2884 = vrcp.f32 %v1524_v63 }
 0x5a0   :  { %v2885_v1 = vpop.eup %2884 }
 0x5a1   :  { %v1542_v19 = vmul.f32 %v2885_v1, %v3281_v35 }
 0x5a3   :  { %v1550_v60 = vpack.c.bf16 %v1542_v19, %v1542_v19 }
 0x5a5   :  { %2764 = vmatmul.mubr.msk.bf16.vlgmr.msra.gmra.mrb[24].mxu1 %vm1079_vm2, %v1550_v60 }
 0x5a6   :  { %2777 = vmatprep.mubr.msk.bf16.mxu1 %vm2901_vm1, %v2900_v15 }
 0x602   :  { %v1593_v2 = vpop.f32.mrb[12].mxu1 }
 0x603   :  { %v2729_v58 = vpop.f32.mrb[13].mxu1 }
 0x604   :  { %v1596_v61 = vpop.f32.mrb[14].mxu1 }
 0x605   :  { %v2730_v3 = vpop.f32.mrb[15].mxu1 }
 0x60a   :  { %v1639_v4 = vpop.f32.mrb[24].mxu0  ;;  %v1685_v7 = vpop.f32.mrb[16].mxu1 }
 0x60b   :  { %v1921_v8 = vcombine.low %v1593_v2, %v1685_v7  ;;  %v1922_v29 = vcombine.high %v1593_v2, %v1685_v7  ;;  %v2735_v5 = vpop.f32.mrb[25].mxu0  ;;  %v2741_v6 = vpop.f32.mrb[17].mxu1 }
 0x60c   :  { %v1642_v42 = vpop.f32.mrb[26].mxu0  ;;  %v1688_v9 = vpop.f32.mrb[18].mxu1 }
 0x60d   :  { %v2736_v41 = vpop.f32.mrb[27].mxu0  ;;  %v2742_v35 = vpop.f32.mrb[19].mxu1  ;;  %v1929_v12 = vrot.slane %v1921_v8, %v3062_v56  ;;  %v1936_v16 = vrot.slane %v1922_v29, %v3062_v56 }
 0x612   :  { %v1731_v10 = vpop.f32.mrb[28].mxu0 }
 0x613   :  { %v1937_v13 = vcombine.low %v1639_v4, %v1731_v10  ;;  %v1938_v14 = vcombine.high %v1639_v4, %v1731_v10  ;;  %v2747_v11 = vpop.f32.mrb[29].mxu0 }
 0x614   :  { %v1734_v36 = vpop.f32.mrb[30].mxu0 }
 0x615   :  { %v1945_v18 = vrot.slane %v1937_v13, %v3062_v56  ;;  %v1952_v21 = vrot.slane %v1938_v14, %v3062_v56  ;;  %v2748_v43 = vpop.f32.mrb[31].mxu0 }
 0x617   :  { %v1953_v17 = vcombine.low %v1929_v12, %v1945_v18  ;;  %v1954_v22 = vcombine.high %v1929_v12, %v1945_v18  ;;  %v1969_v24 = vcombine.low %v1936_v16, %v1952_v21  ;;  %v1970_v27 = vcombine.high %v1936_v16, %v1952_v21 }
 0x619   :  { %v1961_v28 = vrot.slane %v1953_v17, %v3072_v0  ;;  %v1968_v30 = vrot.slane %v1954_v22, %v3072_v0  ;;  %v1977_v31 = vrot.slane %v1969_v24, %v3072_v0  ;;  %v1984_v32 = vrot.slane %v1970_v27, %v3072_v0  ;;  %v2838_v27 = vld [vmem:[%s3496_s5] sm:$0xff]  }
 0x61a   :  { %2774 = vmatpush3.bf16.msra.mxu1 %v2838_v27 }
 0x61b   :  { %v2057_v34 = vcombine.low %v1961_v28, %v1968_v30  ;;  %v2594_v37 = vcombine.high %v1961_v28, %v1968_v30  ;;  %v2073_v38 = vcombine.low %v1977_v31, %v1984_v32  ;;  %v2595_v39 = vcombine.high %v1977_v31, %v1984_v32  ;;  %2775 = vmatprep.subr.bf16.mxu1 %v2900_v15 }
 0x61d   :  { %v2064_v47 = vrot.slane %v2057_v34, %v3062_v56  ;;  %v2072_v48 = vrot.slane %v2594_v37, %v3062_v56  ;;  %v2080_v40 = vrot.slane %v2073_v38, %v3062_v56  ;;  %v2088_v49 = vrot.slane %v2595_v39, %v3062_v56 }
 0x61f   :  { %v2090_v45 = vcombine.high %v2064_v47, %v2072_v48  ;;  %v2106_v52 = vcombine.high %v2080_v40, %v2088_v49  ;;  %v2089_v33 = vcombine.low %v2064_v47, %v2072_v48  ;;  %v2105_v50 = vcombine.low %v2080_v40, %v2088_v49  ;;  %v2839_v47 = vld [vmem:[%s3496_s5 + $0x8] sm:$0xff]   ;;  %s2909_s5 = smov 16  }
 0x620   :  { %2776 = vmatpush3.bf16.msra.mxu1 %v2839_v47 }
 0x621   :  { %v3358_v53 = vrot.slane %v2090_v45, %v3072_v0  ;;  %v3361_v44 = vrot.slane %v2106_v52, %v3072_v0  ;;  %v3364_v20 = vrot.slane %v2089_v33, %v3072_v0  ;;  %v3367_v51 = vrot.slane %v2105_v50, %v3072_v0  ;;  %2789 = vmatprep.subr.bf16.mxu1 %v2900_v15 }
 0x623   :  { %v2123_v46 = vcombine.low %v3358_v53, %v3361_v44  ;;  %v2121_v54 = vcombine.low %v3364_v20, %v3367_v51  ;;  %v2122_v55 = vcombine.high %v3364_v20, %v3367_v51  ;;  %v2124_v23 = vcombine.high %v3358_v53, %v3361_v44  ;;  %v2598_v20 = vld [vmem:[%s3497_s6] ss:$0 sm:$0xff] }
 0x650   :  { %v1777_v25 = vpop.f32.mrb[20].mxu1  ;;  %v1823_v26 = vpop.f32.mrb[32].mxu0 }
 0x651   :  { %v2753_v59 = vpop.f32.mrb[21].mxu1  ;;  %v2759_v57 = vpop.f32.mrb[33].mxu0 }
 0x652   :  { %v1780_v62 = vpop.f32.mrb[22].mxu1  ;;  %v1826_v63 = vpop.f32.mrb[34].mxu0 }
 0x653   :  { %v2754_v1 = vpop.f32.mrb[23].mxu1  ;;  %v2760_v19 = vpop.f32.mrb[35].mxu0 }
 0x658   :  { %v1915_v60 = vpop.f32.mrb[36].mxu0 }
 0x659   :  { %v2005_v2 = vcombine.low %v1823_v26, %v1915_v60  ;;  %v2006_v58 = vcombine.high %v1823_v26, %v1915_v60  ;;  %v2771_v61 = vpop.f32.mrb[37].mxu0 }
 0x65a   :  { %v1918_v3 = vpop.f32.mrb[38].mxu0 }
 0x65b   :  { %v2772_v4 = vpop.f32.mrb[39].mxu0  ;;  %v2013_v42 = vrot.slane %v2005_v2, %v3062_v56  ;;  %v2020_v9 = vrot.slane %v2006_v58, %v3062_v56 }
 0x678   :  { %v1869_v7 = vpop.f32.mrb[24].mxu1 }
 0x679   :  { %v1989_v8 = vcombine.low %v1777_v25, %v1869_v7  ;;  %v1990_v29 = vcombine.high %v1777_v25, %v1869_v7  ;;  %v2765_v5 = vpop.f32.mrb[25].mxu1 }
 0x67a   :  { %v1872_v6 = vpop.f32.mrb[26].mxu1 }
 0x67b   :  { %v1997_v41 = vrot.slane %v1989_v8, %v3062_v56  ;;  %v2004_v35 = vrot.slane %v1990_v29, %v3062_v56  ;;  %v2766_v10 = vpop.f32.mrb[27].mxu1  ;;  %v2898_v8 = vld [vmem:[%s3489_s0] sm:$0xff] }
 0x67d   :  { %v2021_v13 = vcombine.low %v1997_v41, %v2013_v42  ;;  %v2022_v14 = vcombine.high %v1997_v41, %v2013_v42  ;;  %v2037_v11 = vcombine.low %v2004_v35, %v2020_v9  ;;  %v2038_v36 = vcombine.high %v2004_v35, %v2020_v9  ;;  %v2899_v42 = vld [vmem:[%s3489_s0 + $0x8] sm:$0xff] }
 0x67f   :  { %v2029_v12 = vrot.slane %v2021_v13, %v3072_v0  ;;  %v2036_v16 = vrot.slane %v2022_v14, %v3072_v0  ;;  %v2045_v18 = vrot.slane %v2037_v11, %v3072_v0  ;;  %v2052_v21 = vrot.slane %v2038_v36, %v3072_v0 }
 0x681   :  { %v2125_v43 = vcombine.low %v2029_v12, %v2036_v16  ;;  %v2596_v17 = vcombine.high %v2029_v12, %v2036_v16  ;;  %v2141_v22 = vcombine.low %v2045_v18, %v2052_v21  ;;  %v2597_v24 = vcombine.high %v2045_v18, %v2052_v21 }
 0x683   :  { %v2132_v28 = vrot.slane %v2125_v43, %v3062_v56  ;;  %v2140_v30 = vrot.slane %v2596_v17, %v3062_v56  ;;  %v2148_v31 = vrot.slane %v2141_v22, %v3062_v56  ;;  %v2156_v32 = vrot.slane %v2597_v24, %v3062_v56  ;;  %v2840_v17 = vld [vmem:[%s3498_s12] sm:$0xff]   ;;  %v2841_v22 = vld [vmem:[%s3498_s12 + $0x8] sm:$0xff]  }
 0x684   :  { %2782 = vmatpush3.bf16.msra.mxu0 %v2840_v17 }
 0x685   :  { %v2158_v34 = vcombine.high %v2132_v28, %v2140_v30  ;;  %v2174_v37 = vcombine.high %v2148_v31, %v2156_v32  ;;  %v2157_v38 = vcombine.low %v2132_v28, %v2140_v30  ;;  %v2173_v39 = vcombine.low %v2148_v31, %v2156_v32  ;;  %2783 = vmatprep.subr.bf16.mxu0 %v2900_v15 }
 0x687   :  { %v2172_v48 = vrot.slane %v2158_v34, %v3072_v0  ;;  %v2188_v40 = vrot.slane %v2174_v37, %v3072_v0  ;;  %v2165_v49 = vrot.slane %v2157_v38, %v3072_v0  ;;  %v2181_v45 = vrot.slane %v2173_v39, %v3072_v0  ;;  %v2602_v38 = vld [vmem:[%s3499_s7] ss:$0 sm:$0xff] }
 0x688   :  { %2784 = vmatpush3.bf16.msra.mxu0 %v2841_v22 }
 0x689   :  { %v2191_v56 = vcombine.low %v2172_v48, %v2188_v40  ;;  %v2190_v52 = vcombine.high %v2165_v49, %v2181_v45  ;;  %v2189_v33 = vcombine.low %v2165_v49, %v2181_v45  ;;  %v2192_v50 = vcombine.high %v2172_v48, %v2188_v40  ;;  %v2603_v40 = vld [vmem:[%s3500_s8] ss:$0 sm:$0xff] }
 0x68b   :  { %v2826_v25 = vpack.i.bf16 %v2191_v56, %v2123_v46  ;;  %v2821_v26 = vpack.i.bf16 %v2190_v52, %v2122_v55  ;;  %v2831_v59 = vpack.i.bf16 %v2192_v50, %v2124_v23  ;;  %v2842_v50 = vld [vmem:[%s3501_s14] sm:$0xff]  }
 0x68d   :  { %2827 = vrot.lane.b32.xlu1 %v2826_v25, %s2909_s5  ;;  %2822 = vrot.lane.b32.xlu0 %v2821_v26, %s2910_s10  ;;  %v2843_v25 = vld [vmem:[%s3501_s14 + $0x8] sm:$0xff]   ;;  %v2844_v26 = vld [vmem:[%s3501_s14 + $0x10] sm:$0xff]  }
 0x691   :  { %2832 = vrot.lane.b32.xlu0 %v2831_v59, %s2911_s18  ;;  %v2845_v59 = vld [vmem:[%s3501_s14 + $0x18] sm:$0xff]  }
 0x6ff   :  { %v2828_v0 = vpop.permute.xlu1 %2827  ;;  %v2823_v57 = vpop.permute.xlu0 %2822 }
 0x700   :  { %v2825_v62 = vunpack.i.h.bf16 %v2823_v57  ;;  %v2824_v63 = vunpack.i.l.bf16 %v2823_v57  ;;  %v2830_v1 = vunpack.i.h.bf16 %v2828_v0  ;;  %v2829_v19 = vunpack.i.l.bf16 %v2828_v0  ;;  %v2846_v0 = vld [vmem:[%s3501_s14 + $0x20] sm:$0xff]   ;;  %v2847_v57 = vld [vmem:[%s3501_s14 + $0x28] sm:$0xff]  }
 0x702   :  { %v2217_v53 = vsel %vm1079_vm2, %v2121_v54, %v2824_v63  ;;  %v2218_v44 = vsel %vm1079_vm2, %v2189_v33, %v2825_v62  ;;  %v2848_v62 = vld [vmem:[%s3501_s14 + $0x30] sm:$0xff]   ;;  %v2849_v63 = vld [vmem:[%s3501_s14 + $0x38] sm:$0xff]  }
 0x703   :  { %v2833_v46 = vpop.permute.xlu0 %2832  ;;  %v2220_v60 = vsel %vm2219_vm4, %v2217_v53, %v2829_v19  ;;  %v2221_v2 = vsel %vm2219_vm4, %v2218_v44, %v2830_v1  ;;  %v2604_v1 = vld [vmem:[%s3502_s13] ss:$0 sm:$0xff] }
 0x704   :  { %v2835_v55 = vunpack.i.h.bf16 %v2833_v46  ;;  %v2834_v23 = vunpack.i.l.bf16 %v2833_v46 }
 0x706   :  { %v2223_v58 = vsel %vm2222_vm5, %v2220_v60, %v2834_v23  ;;  %v2224_v61 = vsel %vm2222_vm5, %v2221_v2, %v2835_v55 }
 0x707   :  { %v2225_v3 = vpack.c.bf16 %v2224_v61, %v2223_v58 }
 0x709   :  { %2778 = vmatmul.mubr.msk.bf16.vlgmr.msra.gmra.mrb[28].mxu1 %vm59_vm0, %v2225_v3 }
 0x70a   :  { %2805 = vmatprep.mubr.msk.bf16.mxu1 %vm2901_vm1, %v2900_v15  ;;  %2790 = vmatpush3.bf16.msra.mxu1 %v2842_v50 }
 0x70b   :  { %2791 = vmatprep.subr.bf16.mxu1 %v2900_v15 }
 0x70e   :  { %2792 = vmatpush3.bf16.msra.mxu1 %v2843_v25 }
 0x70f   :  { %2793 = vmatprep.subr.bf16.mxu1 %v2900_v15 }
 0x712   :  { %2794 = vmatpush3.bf16.msra.mxu1 %v2844_v26 }
 0x713   :  { %2795 = vmatprep.subr.bf16.mxu1 %v2900_v15 }
 0x716   :  { %2796 = vmatpush3.bf16.msra.mxu1 %v2845_v59 }
 0x717   :  { %2797 = vmatprep.subr.bf16.mxu1 %v2900_v15 }
 0x71a   :  { %2798 = vmatpush3.bf16.msra.mxu1 %v2846_v0 }
 0x71b   :  { %2799 = vmatprep.subr.bf16.mxu1 %v2900_v15 }
 0x71e   :  { %2800 = vmatpush3.bf16.msra.mxu1 %v2847_v57 }
 0x71f   :  { %2801 = vmatprep.subr.bf16.mxu1 %v2900_v15 }
 0x722   :  { %2802 = vmatpush3.bf16.msra.mxu1 %v2848_v62 }
 0x723   :  { %2803 = vmatprep.subr.bf16.mxu1 %v2900_v15 }
 0x726   :  { %2804 = vmatpush3.bf16.msra.mxu1 %v2849_v63 }
 0x7dc   :  { %v2286_v51 = vpop.f32.mrb[28].mxu1 }
 0x7dd   :  { %v2287_v54 = vadd.f32 %v2598_v20, %v2286_v51  ;;  %v2779_v4 = vpop.f32.mrb[29].mxu1 }
 0x7de   :  { %v2289_v7 = vpop.f32.mrb[30].mxu1 }
 0x7df   :  { %v2293_v29 = vadd.f32 %v2898_v8, %v2287_v54  ;;  %v2290_v5 = vadd.f32 %v2598_v20, %v2289_v7  ;;  %v2780_v6 = vpop.f32.mrb[31].mxu1 }
 0x7e1   :  { %2341 = vst.msk [vmem:[#allocation3] sm:$0xff] %vm59_vm0, %v2293_v29  ;;  %v2294_v9 = vadd.f32 %v2899_v42, %v2290_v5  ;;  %v2297_v41 = vsel %vm59_vm0, %v2293_v29, 0.0 }
 0x7e2   :  { %2298 = vadd.xlane.f32.xlu1 %v2297_v41 }
 0x7e3   :  { %2342 = vst.msk [vmem:[#allocation3 + $0x8] sm:$0xff] %vm59_vm0, %v2294_v9  ;;  %v2300_v35 = vsel %vm59_vm0, %v2294_v9, 0.0 }
 0x7e4   :  { %2301 = vadd.xlane.f32.xlu0 %v2300_v35 }
 0x7e8   :  { %v2428_v5 = vld [vmem:[#allocation3] sm:$0xff] }
 0x7ea   :  { %v2429_v41 = vld [vmem:[#allocation3 + $0x8] sm:$0xff] }
 0x86f   :  { %v2299_v10 = vpop.xlane.xlu1 %2298 }
 0x870   :  { %v2303_v13 = vmul.f32 0.03125, %v2299_v10 }
 0x871   :  { %v2302_v14 = vpop.xlane.xlu0 %2301 }
 0x872   :  { %v2305_v11 = vsub.f32 %v2293_v29, %v2303_v13  ;;  %v2304_v36 = vmul.f32 0.03125, %v2302_v14  ;;  %v2618_v14 = vld [vmem:[%s3503_s9] ss:$0 sm:$0xff] }
 0x874   :  { %v2306_v12 = vsub.f32 %v2294_v9, %v2304_v36  ;;  %v2307_v16 = vmul.f32 %v2305_v11, %v2305_v11 }
 0x876   :  { %v2309_v18 = vsel %vm59_vm0, %v2307_v16, 0.0  ;;  %v2308_v21 = vmul.f32 %v2306_v12, %v2306_v12 }
 0x877   :  { %2310 = vadd.xlane.f32.xlu0 %v2309_v18 }
 0x878   :  { %v2312_v43 = vsel %vm59_vm0, %v2308_v21, 0.0 }
 0x87b   :  { %2313 = vadd.xlane.f32.xlu0 %v2312_v43 }
 0x904   :  { %v2311_v24 = vpop.xlane.xlu0 %2310 }
 0x905   :  { %v2315_v27 = vmul.f32 0.03125, %v2311_v24 }
 0x907   :  { %v2317_v28 = vadd.f32 1e-05, %v2315_v27 }
 0x908   :  { %v2314_v30 = vpop.xlane.xlu0 %2313 }
 0x909   :  { %2886 = vrsqrt.f32 %v2317_v28  ;;  %v2316_v31 = vmul.f32 0.03125, %v2314_v30 }
 0x90b   :  { %v2318_v32 = vadd.f32 1e-05, %v2316_v31 }
 0x90d   :  { %2888 = vrsqrt.f32 %v2318_v32 }
 0x913   :  { %v2887_v34 = vpop.eup %2886 }
 0x914   :  { %v2321_v37 = vmul.f32 %v2887_v34, %v2305_v11 }
 0x916   :  { %v2329_v47 = vmul.f32 %v2602_v38, %v2321_v37 }
 0x917   :  { %v2889_v39 = vpop.eup %2888 }
 0x918   :  { %v2322_v48 = vmul.f32 %v2889_v39, %v2306_v12  ;;  %v2337_v45 = vadd.f32 %v2603_v40, %v2329_v47 }
 0x91a   :  { %v2330_v49 = vmul.f32 %v2602_v38, %v2322_v48 }
 0x91c   :  { %v2338_v56 = vadd.f32 %v2603_v40, %v2330_v49 }
 0x91e   :  { %v2339_v52 = vpack.c.bf16 %v2338_v56, %v2337_v45 }
 0x920   :  { %2340 = vst.msk [vmem:[#allocation2] sm:$0xff] %vm59_vm0, %v2339_v52 }
 0x927   :  { %v2343_v33 = vld [vmem:[#allocation2] sm:$0xff] }
 0x928   :  { %2786 = vmatmul.mubr.msk.bf16.vlgmr.msra.gmra.mrb[40].mxu0 %vm59_vm0, %v2343_v33 }
 0x9fb   :  { %v2405_v19 = vpop.f32.mrb[40].mxu0 }
 0x9fc   :  { %v2406_v53 = vadd.f32 %v2604_v1, %v2405_v19  ;;  %v2787_v44 = vpop.f32.mrb[41].mxu0 }
 0x9fd   :  { %v2408_v46 = vpop.f32.mrb[42].mxu0 }
 0x9fe   :  { %v2608_v55 = vmul.f32 -1.702, %v2406_v53  ;;  %v2409_v23 = vadd.f32 %v2604_v1, %v2408_v46  ;;  %v2788_v60 = vpop.f32.mrb[43].mxu0 }
 0xa00   :  { %v2416_v2 = vmul.f32 1.442695, %v2608_v55  ;;  %v2609_v58 = vmul.f32 -1.702, %v2409_v23 }
 0xa02   :  { %2890 = vpow2.f32 %v2416_v2  ;;  %v2418_v15 = vmul.f32 1.442695, %v2609_v58 }
 0xa04   :  { %2892 = vpow2.f32 %v2418_v15 }
 0xa0c   :  { %v2891_v61 = vpop.eup %2890 }
 0xa0d   :  { %v2420_v3 = vadd.f32 1.0, %v2891_v61 }
 0xa0e   :  { %v2893_v20 = vpop.eup %2892 }
 0xa0f   :  { %2894 = vrcp.f32 %v2420_v3  ;;  %v2421_v51 = vadd.f32 1.0, %v2893_v20 }
 0xa11   :  { %2896 = vrcp.f32 %v2421_v51 }
 0xa19   :  { %v2895_v54 = vpop.eup %2894 }
 0xa1a   :  { %v2426_v7 = vmul.f32 %v2895_v54, %v2406_v53 }
 0xa1b   :  { %v2897_v4 = vpop.eup %2896 }
 0xa1c   :  { %v2427_v8 = vmul.f32 %v2897_v4, %v2409_v23 }
 0xa1e   :  { %v2430_v29 = vpack.c.bf16 %v2427_v8, %v2426_v7 }
 0xa20   :  { %2806 = vmatmul.mubr.bf16.vlgmr.msra.gmra.mrb[32].mxu1 %v2430_v29 }
 0xaf3   :  { %v2529_v6 = vpop.f32.mrb[32].mxu1 }
 0xaf4   :  { %v2536_v42 = vadd.f32 %v2529_v6, %v2428_v5  ;;  %v2807_v9 = vpop.f32.mrb[33].mxu1 }
 0xaf5   :  { %v2532_v35 = vpop.f32.mrb[34].mxu1 }
 0xaf6   :  { %2538 = vst.msk [vmem:[#allocation3] sm:$0xff] %vm59_vm0, %v2536_v42  ;;  %v2537_v10 = vadd.f32 %v2532_v35, %v2429_v41  ;;  %v2808_v13 = vpop.f32.mrb[35].mxu1 }
 0xaf8   :  { %2539 = vst.msk [vmem:[#allocation3 + $0x8] sm:$0xff] %vm59_vm0, %v2537_v10 }
 0xafd   :  { %v2543_v11 = vld [vmem:[#allocation3] sm:$0xff] }
 0xafe   :  { %v2552_v36 = vadd.f32 %v2618_v14, %v2543_v11 }
 0xaff   :  { %v2544_v12 = vld [vmem:[#allocation3 + $0x8] sm:$0xff] }
 0xb00   :  { %2554 = vst.msk [vmem:[%s3504_s15] sm:$0xff] %vm59_vm0, %v2552_v36  ;;  %v2553_v16 = vadd.f32 %v2618_v14, %v2544_v12 }
 0xb02   :  { %2555 = vst.msk [vmem:[%s3504_s15 + $0x8] sm:$0xff] %vm59_vm0, %v2553_v16 }

// kernel: clip_forward.5
= control target key start
LH: loop header
LB: loop body
LE: loop exit
PB: predicated region body
PF: predicated region fallthrough
CT: control target
= control target key end

     0   :  { %vm60_vm0 = vcmask 261120   ;;  %s3596_s0 = inlined_call_operand.vmem [shape: f32[2,8,32], index: 0, kind: input, shape index: {}]   ;;  %s3597_s1 = inlined_call_operand.vmem [shape: f32[1,32], index: 1, kind: input, shape index: {}]   ;;  %s3598_s2 = inlined_call_operand.vmem [shape: f32[1,32], index: 2, kind: input, shape index: {}]   ;;  %s3599_s3 = inlined_call_operand.vmem [shape: bf16[32,96], index: 3, kind: input, shape index: {}]   ;;  %s3600_s4 = inlined_call_operand.vmem [shape: f32[1,96], index: 4, kind: input, shape index: {}]   ;;  %s3601_s5 = inlined_call_operand.vmem [shape: bf16[32,32], index: 5, kind: input, shape index: {}]   ;;  %s3602_s6 = inlined_call_operand.vmem [shape: f32[1,32], index: 6, kind: input, shape index: {}]   ;;  %s3603_s7 = inlined_call_operand.vmem [shape: f32[1,32], index: 7, kind: input, shape index: {}]   ;;  %s3604_s8 = inlined_call_operand.vmem [shape: f32[1,32], index: 8, kind: input, shape index: {}]   ;;  %s3605_s9 = inlined_call_operand.vmem [shape: f32[1,32], index: 9, kind: input, shape index: {}]   ;;  %s3606_s10 = inlined_call_operand.vmem [shape: f32[1,32], index: 10, kind: input, shape index: {}]   ;;  %s3607_s11 = inlined_call_operand.vmem [shape: f32[1,32], index: 11, kind: input, shape index: {}]   ;;  %s3608_s12 = inlined_call_operand.vmem [shape: bf16[32,128], index: 12, kind: input, shape index: {}]   ;;  %s3609_s13 = inlined_call_operand.vmem [shape: f32[1,128], index: 13, kind: input, shape index: {}]   ;;  %s3610_s14 = inlined_call_operand.vmem [shape: bf16[128,32], index: 14, kind: input, shape index: {}]   ;;  %s3611_s15 = inlined_call_operand.hbm [shape: f32[2,8,32], index: 15, kind: output, shape index: {}]  }
   0x1   :  { %v56_v0 = vld [vmem:[%s3596_s0] sm:$0xff]  ;;  %v57_v1 = vld [vmem:[%s3596_s0 + $0x8] sm:$0xff] }
   0x2   :  { %v61_v2 = vsel %vm60_vm0, %v56_v0, 0.0  ;;  %v64_v3 = vsel %vm60_vm0, %v57_v1, 0.0 }
   0x3   :  { %62 = vadd.xlane.f32.xlu0 %v61_v2 }
   0x7   :  { %65 = vadd.xlane.f32.xlu0 %v64_v3 }
   0x8   :  { %20 = vsyncpa [#allocation5], 0  ;;  %v2898_v14 = vld [vmem:[%s3599_s3] sm:$0xff]   ;;  %v2990_v15 = vmov 0.0   ;;  %v2899_v16 = vld [vmem:[%s3599_s3 + $0x8] sm:$0xff]   ;;  %vm2991_vm1 = vmmov 0   ;;  %v197_v49 = vlaneseq }
   0x9   :  { %2729 = vmatprep.subr.bf16.mxu0 %v2990_v15  ;;  %2749 = vmatprep.subr.bf16.mxu1 %v2990_v15  ;;  %v2618_v25 = vld [vmem:[%s3597_s1] ss:$0 sm:$0xff]  ;;  %s2992_s1 = smov 112   ;;  %s2994_s16 = smov 104   ;;  %v2996_v47 = vmov 1983009808  }
   0xa   :  { %2730 = vmatpush3.bf16.msra.mxu0 %v2898_v14  ;;  %2733 = vmatprep.mubr.msk.bf16.mxu0 %vm2991_vm1, %v2990_v15  ;;  %v2619_v29 = vld [vmem:[%s3598_s2] ss:$0 sm:$0xff]  ;;  %s2993_s2 = smov 120   ;;  %v195_v48 = vunpack.c.l.s4 %v2996_v47  ;;  %v198_v51 = vshrl.u32 %v197_v49, 7  ;;  %v2997_v52 = vmov 1934713408  }
   0xb   :  { %2731 = vmatprep.subr.bf16.mxu0 %v2990_v15  ;;  %2751 = vmatprep.mubr.msk.bf16.mxu1 %vm2991_vm1, %v2990_v15  ;;  %v2620_v34 = vld [vmem:[%s3600_s4] ss:$0 sm:$0xff]  ;;  %s2995_s4 = smov 96   ;;  %v227_v53 = vunpack.c.l.s4 %v2997_v52  ;;  %vm1080_vm2 = vcmask 64512   ;;  %s2998_s17 = smov 64   ;;  %vm1556_vm3 = vcmask 1043456  }
   0xc   :  { %v196_v50 = vunpack.c.0.s8 %v195_v48  ;;  %s2999_s22 = smov 16   ;;  %s3001_s23 = smov 24   ;;  %vm2220_vm4 = vcmask 130048   ;;  %vm2223_vm5 = vcmask 195584  }
   0xd   :  { %v228_v59 = vunpack.c.0.s8 %v227_v53 }
   0xe   :  { %2732 = vmatpush3.bf16.msra.mxu0 %v2899_v16  ;;  %v3154_v56 = vsub.s32 %v196_v50, %v198_v51 }
   0xf   :  { %2737 = vmatprep.subr.bf16.mxu0 %v2990_v15 }
  0x90   :  { %v63_v4 = vpop.xlane.xlu0 %62 }
  0x91   :  { %v68_v5 = vmul.f32 0.03125, %v63_v4 }
  0x93   :  { %v70_v6 = vsub.f32 %v56_v0, %v68_v5  ;;  %v3164_v0 = vsub.s32 %v228_v59, %v198_v51 }
  0x94   :  { %v66_v7 = vpop.xlane.xlu0 %65 }
  0x95   :  { %v69_v8 = vmul.f32 0.03125, %v66_v7  ;;  %v72_v9 = vmul.f32 %v70_v6, %v70_v6 }
  0x97   :  { %v71_v10 = vsub.f32 %v57_v1, %v69_v8  ;;  %v74_v11 = vsel %vm60_vm0, %v72_v9, 0.0 }
  0x98   :  { %75 = vadd.xlane.f32.xlu1 %v74_v11 }
  0x99   :  { %v73_v12 = vmul.f32 %v71_v10, %v71_v10 }
  0x9b   :  { %v77_v13 = vsel %vm60_vm0, %v73_v12, 0.0 }
  0x9c   :  { %78 = vadd.xlane.f32.xlu1 %v77_v13 }
 0x125   :  { %v76_v17 = vpop.xlane.xlu1 %75 }
 0x126   :  { %v80_v18 = vmul.f32 0.03125, %v76_v17 }
 0x128   :  { %v82_v19 = vadd.f32 1e-05, %v80_v18 }
 0x129   :  { %v79_v20 = vpop.xlane.xlu1 %78 }
 0x12a   :  { %2912 = vrsqrt.f32 %v82_v19  ;;  %v81_v21 = vmul.f32 0.03125, %v79_v20 }
 0x12c   :  { %v83_v22 = vadd.f32 1e-05, %v81_v21 }
 0x12e   :  { %2914 = vrsqrt.f32 %v83_v22 }
 0x134   :  { %v2913_v23 = vpop.eup %2912 }
 0x135   :  { %v86_v24 = vmul.f32 %v2913_v23, %v70_v6 }
 0x137   :  { %v94_v28 = vmul.f32 %v2618_v25, %v86_v24 }
 0x138   :  { %v2915_v26 = vpop.eup %2914 }
 0x139   :  { %v87_v27 = vmul.f32 %v2915_v26, %v71_v10  ;;  %v102_v31 = vadd.f32 %v2619_v29, %v94_v28 }
 0x13b   :  { %v95_v30 = vmul.f32 %v2618_v25, %v87_v27 }
 0x13d   :  { %v103_v32 = vadd.f32 %v2619_v29, %v95_v30 }
 0x13f   :  { %v104_v33 = vpack.c.bf16 %v103_v32, %v102_v31 }
 0x141   :  { %2734 = vmatmul.mubr.msk.bf16.vlgmr.msra.gmra.mrb[0].mxu0 %vm60_vm0, %v104_v33 }
 0x142   :  { %2739 = vmatprep.mubr.msk.bf16.mxu0 %vm2991_vm1, %v2990_v15 }
 0x214   :  { %v165_v35 = vpop.f32.mrb[0].mxu0 }
 0x215   :  { %v3120_v36 = vadd.f32 %v2620_v34, %v165_v35  ;;  %v2735_v37 = vpop.f32.mrb[1].mxu0 }
 0x216   :  { %v168_v38 = vpop.f32.mrb[2].mxu0 }
 0x217   :  { %180 = vrot.lane.b32.xlu1 %v3120_v36, %s2992_s1  ;;  %174 = vrot.lane.b32.xlu0 %v3120_v36, %s2993_s2  ;;  %v2736_v39 = vpop.f32.mrb[3].mxu0  ;;  %v3124_v40 = vadd.f32 %v2620_v34, %v168_v38 }
 0x21b   :  { %186 = vrot.lane.b32.xlu1 %v3120_v36, %s2994_s16  ;;  %182 = vrot.lane.b32.xlu0 %v3124_v40, %s2992_s1 }
 0x21f   :  { %472 = vrot.lane.b32.xlu0 %v3120_v36, %s2995_s4  ;;  %176 = vrot.lane.b32.xlu1 %v3124_v40, %s2993_s2  ;;  %s3002_s2 = smov [#allocation4]  }
 0x223   :  { %188 = vrot.lane.b32.xlu1 %v3124_v40, %s2994_s16 }
 0x289   :  { %v3131_v41 = vpop.permute.xlu1 %180  ;;  %v3133_v42 = vpop.permute.xlu0 %174 }
 0x28a   :  { %480 = vrot.lane.b32.xlu0 %v3131_v41, %s2995_s4  ;;  %476 = vrot.lane.b32.xlu1 %v3133_v42, %s2995_s4  ;;  %v192_v57 = vcombine.low %v3120_v36, %v3131_v41  ;;  %v193_v58 = vcombine.high %v3120_v36, %v3131_v41 }
 0x28c   :  { %v200_v62 = vrot.slane %v192_v57, %v3154_v56  ;;  %v207_v63 = vrot.slane %v193_v58, %v3154_v56 }
 0x28d   :  { %v3137_v43 = vpop.permute.xlu1 %186  ;;  %v3141_v44 = vpop.permute.xlu0 %182 }
 0x28e   :  { %474 = vrot.lane.b32.xlu0 %v3124_v40, %s2995_s4  ;;  %484 = vrot.lane.b32.xlu1 %v3137_v43, %s2995_s4  ;;  %v208_v54 = vcombine.low %v3133_v42, %v3137_v43  ;;  %v209_v55 = vcombine.high %v3133_v42, %v3137_v43  ;;  %v260_v16 = vcombine.low %v3124_v40, %v3141_v44 }
 0x28f   :  { %v261_v19 = vcombine.high %v3124_v40, %v3141_v44 }
 0x290   :  { %v216_v60 = vrot.slane %v208_v54, %v3154_v56  ;;  %v223_v61 = vrot.slane %v209_v55, %v3154_v56  ;;  %v268_v26 = vrot.slane %v260_v16, %v3154_v56 }
 0x291   :  { %v3143_v45 = vpop.permute.xlu1 %176  ;;  %v473_v10 = vpop.permute.xlu0 %472  ;;  %v275_v28 = vrot.slane %v261_v19, %v3154_v56 }
 0x292   :  { %482 = vrot.lane.b32.xlu0 %v3141_v44, %s2995_s4  ;;  %478 = vrot.lane.b32.xlu1 %v3143_v45, %s2995_s4  ;;  %v224_v1 = vcombine.low %v200_v62, %v216_v60  ;;  %v225_v2 = vcombine.high %v200_v62, %v216_v60  ;;  %v240_v3 = vcombine.low %v207_v63, %v223_v61 }
 0x293   :  { %v241_v4 = vcombine.high %v207_v63, %v223_v61 }
 0x294   :  { %v232_v5 = vrot.slane %v224_v1, %v3164_v0  ;;  %v239_v6 = vrot.slane %v225_v2, %v3164_v0  ;;  %v248_v7 = vrot.slane %v240_v3, %v3164_v0 }
 0x295   :  { %v3147_v46 = vpop.permute.xlu1 %188  ;;  %v255_v8 = vrot.slane %v241_v4, %v3164_v0 }
 0x296   :  { %486 = vrot.lane.b32.xlu1 %v3147_v46, %s2995_s4  ;;  %v328_v9 = vcombine.low %v232_v5, %v239_v6  ;;  %v2624_v11 = vcombine.high %v232_v5, %v239_v6  ;;  %v276_v14 = vcombine.low %v3143_v45, %v3147_v46  ;;  %v277_v17 = vcombine.high %v3143_v45, %v3147_v46 }
 0x297   :  { %v344_v12 = vcombine.low %v248_v7, %v255_v8  ;;  %v2625_v13 = vcombine.high %v248_v7, %v255_v8 }
 0x298   :  { %v335_v18 = vrot.slane %v328_v9, %v3154_v56  ;;  %v343_v22 = vrot.slane %v2624_v11, %v3154_v56  ;;  %v284_v25 = vrot.slane %v276_v14, %v3154_v56  ;;  %v291_v27 = vrot.slane %v277_v17, %v3154_v56 }
 0x299   :  { %v351_v23 = vrot.slane %v344_v12, %v3154_v56  ;;  %v359_v24 = vrot.slane %v2625_v13, %v3154_v56 }
 0x29a   :  { %v292_v32 = vcombine.low %v268_v26, %v284_v25  ;;  %v293_v33 = vcombine.high %v268_v26, %v284_v25  ;;  %v360_v35 = vcombine.low %v335_v18, %v343_v22  ;;  %v308_v47 = vcombine.low %v275_v28, %v291_v27 }
 0x29b   :  { %v376_v37 = vcombine.low %v351_v23, %v359_v24  ;;  %v309_v48 = vcombine.high %v275_v28, %v291_v27  ;;  %v361_v49 = vcombine.high %v335_v18, %v343_v22  ;;  %v377_v50 = vcombine.high %v351_v23, %v359_v24 }
 0x29c   :  { %v300_v55 = vrot.slane %v292_v32, %v3164_v0  ;;  %v307_v57 = vrot.slane %v293_v33, %v3164_v0  ;;  %v3193_v59 = vrot.slane %v360_v35, %v3164_v0  ;;  %v316_v3 = vrot.slane %v308_v47, %v3164_v0 }
 0x29d   :  { %v3196_v60 = vrot.slane %v376_v37, %v3164_v0  ;;  %v323_v4 = vrot.slane %v309_v48, %v3164_v0  ;;  %v3201_v5 = vrot.slane %v361_v49, %v3164_v0  ;;  %v3204_v6 = vrot.slane %v377_v50, %v3164_v0 }
 0x29e   :  { %v396_v11 = vcombine.low %v300_v55, %v307_v57  ;;  %v2626_v12 = vcombine.high %v300_v55, %v307_v57 }
 0x29f   :  { %v2627_v22 = vcombine.high %v316_v3, %v323_v4 }
 0x2fc   :  { %v481_v20 = vpop.permute.xlu0 %480  ;;  %v477_v21 = vpop.permute.xlu1 %476 }
 0x2fd   :  { %v496_v29 = vcombine.low %v473_v10, %v481_v20  ;;  %v497_v30 = vcombine.high %v473_v10, %v481_v20 }
 0x2ff   :  { %v504_v51 = vrot.slane %v496_v29, %v3154_v56  ;;  %v511_v52 = vrot.slane %v497_v30, %v3154_v56 }
 0x300   :  { %v475_v31 = vpop.permute.xlu0 %474  ;;  %v485_v34 = vpop.permute.xlu1 %484 }
 0x301   :  { %v512_v38 = vcombine.low %v477_v21, %v485_v34  ;;  %v513_v39 = vcombine.high %v477_v21, %v485_v34  ;;  %v412_v21 = vcombine.low %v316_v3, %v323_v4 }
 0x303   :  { %v520_v53 = vrot.slane %v512_v38, %v3154_v56  ;;  %v527_v54 = vrot.slane %v513_v39, %v3154_v56 }
 0x304   :  { %v479_v58 = vpop.permute.xlu1 %478  ;;  %v483_v2 = vpop.permute.xlu0 %482 }
 0x305   :  { %v528_v61 = vcombine.low %v504_v51, %v520_v53  ;;  %v529_v62 = vcombine.high %v504_v51, %v520_v53  ;;  %v544_v63 = vcombine.low %v511_v52, %v527_v54  ;;  %v545_v1 = vcombine.high %v511_v52, %v527_v54 }
 0x306   :  { %v564_v13 = vcombine.low %v475_v31, %v483_v2  ;;  %v565_v14 = vcombine.high %v475_v31, %v483_v2 }
 0x307   :  { %v536_v7 = vrot.slane %v528_v61, %v3164_v0  ;;  %v543_v8 = vrot.slane %v529_v62, %v3164_v0  ;;  %v552_v9 = vrot.slane %v544_v63, %v3164_v0  ;;  %v559_v10 = vrot.slane %v545_v1, %v3164_v0 }
 0x308   :  { %v487_v16 = vpop.permute.xlu1 %486  ;;  %v572_v29 = vrot.slane %v564_v13, %v3154_v56  ;;  %v579_v30 = vrot.slane %v565_v14, %v3154_v56  ;;  %v411_v61 = vrot.slane %v2626_v12, %v3154_v56 }
 0x309   :  { %v632_v17 = vcombine.low %v536_v7, %v543_v8  ;;  %v2628_v18 = vcombine.high %v536_v7, %v543_v8  ;;  %v648_v19 = vcombine.low %v552_v9, %v559_v10  ;;  %v2629_v20 = vcombine.high %v552_v9, %v559_v10 }
 0x30a   :  { %v580_v23 = vcombine.low %v479_v58, %v487_v16  ;;  %v581_v24 = vcombine.high %v479_v58, %v487_v16  ;;  %v3227_v58 = vrot.slane %v396_v11, %v3154_v56  ;;  %v419_v7 = vrot.slane %v412_v21, %v3154_v56 }
 0x30b   :  { %v639_v25 = vrot.slane %v632_v17, %v3154_v56  ;;  %v647_v26 = vrot.slane %v2628_v18, %v3154_v56  ;;  %v655_v27 = vrot.slane %v648_v19, %v3154_v56  ;;  %v663_v28 = vrot.slane %v2629_v20, %v3154_v56 }
 0x30c   :  { %v588_v31 = vrot.slane %v580_v23, %v3154_v56  ;;  %v595_v32 = vrot.slane %v581_v24, %v3154_v56  ;;  %v427_v8 = vrot.slane %v2627_v22, %v3154_v56  ;;  %v392_v22 = vcombine.low %v3193_v59, %v3196_v60 }
 0x30d   :  { %v664_v33 = vcombine.low %v639_v25, %v647_v26  ;;  %v680_v34 = vcombine.low %v655_v27, %v663_v28  ;;  %v665_v35 = vcombine.high %v639_v25, %v647_v26  ;;  %v681_v37 = vcombine.high %v655_v27, %v663_v28 }
 0x30e   :  { %v596_v38 = vcombine.low %v572_v29, %v588_v31  ;;  %v597_v39 = vcombine.high %v572_v29, %v588_v31  ;;  %v612_v47 = vcombine.low %v579_v30, %v595_v32  ;;  %v613_v48 = vcombine.high %v579_v30, %v595_v32 }
 0x30f   :  { %v672_v49 = vrot.slane %v664_v33, %v3164_v0  ;;  %v688_v50 = vrot.slane %v680_v34, %v3164_v0  ;;  %v679_v51 = vrot.slane %v665_v35, %v3164_v0  ;;  %v695_v52 = vrot.slane %v681_v37, %v3164_v0 }
 0x310   :  { %v604_v53 = vrot.slane %v596_v38, %v3164_v0  ;;  %v611_v54 = vrot.slane %v597_v39, %v3164_v0  ;;  %v620_v55 = vrot.slane %v612_v47, %v3164_v0  ;;  %v627_v57 = vrot.slane %v613_v48, %v3164_v0 }
 0x311   :  { %v696_v62 = vcombine.low %v672_v49, %v688_v50  ;;  %v698_v63 = vcombine.low %v679_v51, %v695_v52  ;;  %v697_v18 = vcombine.high %v672_v49, %v688_v50  ;;  %v394_v23 = vcombine.low %v3201_v5, %v3204_v6 }
 0x312   :  { %v700_v1 = vcombine.low %v604_v53, %v611_v54  ;;  %v2630_v2 = vcombine.high %v604_v53, %v611_v54  ;;  %v716_v3 = vcombine.low %v620_v55, %v627_v57  ;;  %v2631_v4 = vcombine.high %v620_v55, %v627_v57 }
 0x313   :  { %v768_v9 = vpack.c.bf16 %v696_v62, %v696_v62  ;;  %v770_v10 = vpack.c.bf16 %v698_v63, %v698_v63  ;;  %v428_v27 = vcombine.low %v3227_v58, %v411_v61  ;;  %v444_v28 = vcombine.low %v419_v7, %v427_v8 }
 0x314   :  { %v707_v13 = vrot.slane %v700_v1, %v3154_v56  ;;  %v715_v14 = vrot.slane %v2630_v2, %v3154_v56  ;;  %v723_v11 = vrot.slane %v716_v3, %v3154_v56  ;;  %v731_v12 = vrot.slane %v2631_v4, %v3154_v56 }
 0x315   :  { %v1085_v16 = vsel %vm1080_vm2, %v768_v9, 0  ;;  %v1177_v17 = vsel %vm1080_vm2, %v770_v10, 0  ;;  %v769_v29 = vpack.c.bf16 %v697_v18, %v697_v18  ;;  %v464_v33 = vpack.c.bf16 %v392_v22, %v392_v22 }
 0x316   :  { %2738 = vmatpush3.bf16.xpose.msra.mxu0 %v1085_v16  ;;  %2750 = vmatpush3.bf16.xpose.msra.mxu1 %v1177_v17  ;;  %v732_v19 = vcombine.low %v707_v13, %v715_v14  ;;  %v748_v20 = vcombine.low %v723_v11, %v731_v12  ;;  %v733_v21 = vcombine.high %v707_v13, %v715_v14 }
 0x317   :  { %2743 = vmatprep.subr.bf16.mxu0 %v2990_v15  ;;  %2761 = vmatprep.subr.bf16.mxu1 %v2990_v15  ;;  %v749_v24 = vcombine.high %v723_v11, %v731_v12  ;;  %v466_v34 = vpack.c.bf16 %v394_v23, %v394_v23  ;;  %v436_v37 = vrot.slane %v428_v27, %v3164_v0  ;;  %v1131_v39 = vsel %vm1080_vm2, %v769_v29, 0 }
 0x318   :  { %v740_v25 = vrot.slane %v732_v19, %v3164_v0  ;;  %v756_v26 = vrot.slane %v748_v20, %v3164_v0  ;;  %v747_v31 = vrot.slane %v733_v21, %v3164_v0  ;;  %v452_v38 = vrot.slane %v444_v28, %v3164_v0 }
 0x319   :  { %v763_v32 = vrot.slane %v749_v24, %v3164_v0  ;;  %v699_v47 = vcombine.high %v679_v51, %v695_v52  ;;  %v393_v50 = vcombine.high %v3193_v59, %v3196_v60  ;;  %v429_v51 = vcombine.high %v3227_v58, %v411_v61 }
 0x31a   :  { %v764_v30 = vcombine.low %v740_v25, %v756_v26  ;;  %v460_v53 = vcombine.low %v436_v37, %v452_v38  ;;  %v445_v52 = vcombine.high %v419_v7, %v427_v8  ;;  %v765_v60 = vcombine.high %v740_v25, %v756_v26 }
 0x31b   :  { %v766_v49 = vcombine.low %v747_v31, %v763_v32  ;;  %v771_v54 = vpack.c.bf16 %v699_v47, %v699_v47  ;;  %v465_v57 = vpack.c.bf16 %v393_v50, %v393_v50  ;;  %v443_v63 = vrot.slane %v429_v51, %v3164_v0 }
 0x31c   :  { %v772_v35 = vpack.c.bf16 %v764_v30, %v764_v30  ;;  %v468_v62 = vpack.c.bf16 %v460_v53, %v460_v53  ;;  %v459_v1 = vrot.slane %v445_v52, %v3164_v0  ;;  %v395_v58 = vcombine.high %v3201_v5, %v3204_v6 }
 0x31d   :  { %2740 = vmatmul.mubr.msk.bf16.vlgmr.msra.gmra.mrb[4].mxu0 %vm1080_vm2, %v464_v33  ;;  %2752 = vmatmul.mubr.msk.bf16.vlgmr.msra.gmra.mrb[0].mxu1 %vm1080_vm2, %v466_v34  ;;  %v774_v55 = vpack.c.bf16 %v766_v49, %v766_v49  ;;  %v1223_v59 = vsel %vm1080_vm2, %v771_v54, 0  ;;  %v773_v3 = vpack.c.bf16 %v765_v60, %v765_v60  ;;  %v767_v5 = vcombine.high %v747_v31, %v763_v32 }
 0x31e   :  { %2744 = vmatpush3.bf16.xpose.msra.mxu0 %v1131_v39  ;;  %v1269_v48 = vsel %vm1080_vm2, %v772_v35, 0  ;;  %2745 = vmatprep.mubr.msk.bf16.mxu0 %vm2991_vm1, %v2990_v15  ;;  %v462_v61 = vcombine.low %v443_v63, %v459_v1  ;;  %v467_v4 = vpack.c.bf16 %v395_v58, %v395_v58  ;;  %v461_v6 = vcombine.high %v436_v37, %v452_v38 }
 0x31f   :  { %2762 = vmatpush3.bf16.xpose.msra.mxu1 %v1269_v48  ;;  %2763 = vmatprep.mubr.msk.bf16.mxu1 %vm2991_vm1, %v2990_v15  ;;  %v1361_v2 = vsel %vm1080_vm2, %v774_v55, 0  ;;  %v1315_v8 = vsel %vm1080_vm2, %v773_v3, 0  ;;  %v775_v9 = vpack.c.bf16 %v767_v5, %v767_v5  ;;  %v463_v14 = vcombine.high %v443_v63, %v459_v1 }
 0x320   :  { %2755 = vmatprep.subr.bf16.mxu0 %v2990_v15  ;;  %2773 = vmatprep.subr.bf16.mxu1 %v2990_v15  ;;  %v470_v7 = vpack.c.bf16 %v462_v61, %v462_v61  ;;  %v469_v10 = vpack.c.bf16 %v461_v6, %v461_v6 }
 0x321   :  { %v1407_v13 = vsel %vm1080_vm2, %v775_v9, 0  ;;  %v471_v11 = vpack.c.bf16 %v463_v14, %v463_v14 }
 0x325   :  { %2746 = vmatmul.mubr.msk.bf16.vlgmr.msra.gmra.mrb[8].mxu0 %vm1080_vm2, %v465_v57 }
 0x326   :  { %2764 = vmatmul.mubr.msk.bf16.vlgmr.msra.gmra.mrb[4].mxu1 %vm1080_vm2, %v468_v62  ;;  %2756 = vmatpush3.bf16.xpose.msra.mxu0 %v1223_v59 }
 0x327   :  { %2774 = vmatpush3.bf16.xpose.msra.mxu1 %v1361_v2  ;;  %2757 = vmatprep.mubr.msk.bf16.mxu0 %vm2991_vm1, %v2990_v15 }
 0x328   :  { %2775 = vmatprep.mubr.msk.bf16.mxu1 %vm2991_vm1, %v2990_v15  ;;  %2767 = vmatprep.subr.bf16.mxu0 %v2990_v15 }
 0x329   :  { %2785 = vmatprep.subr.bf16.mxu1 %v2990_v15 }
 0x32d   :  { %2758 = vmatmul.mubr.msk.bf16.vlgmr.msra.gmra.mrb[12].mxu0 %vm1080_vm2, %v467_v4 }
 0x32e   :  { %2776 = vmatmul.mubr.msk.bf16.vlgmr.msra.gmra.mrb[8].mxu1 %vm1080_vm2, %v470_v7  ;;  %2768 = vmatpush3.bf16.xpose.msra.mxu0 %v1315_v8 }
 0x32f   :  { %2769 = vmatprep.mubr.msk.bf16.mxu0 %vm2991_vm1, %v2990_v15  ;;  %2779 = vmatprep.subr.bf16.mxu0 %v2990_v15 }
 0x330   :  { %2787 = vmatprep.mubr.msk.bf16.mxu1 %vm2991_vm1, %v2990_v15 }
 0x335   :  { %2770 = vmatmul.mubr.msk.bf16.vlgmr.msra.gmra.mrb[16].mxu0 %vm1080_vm2, %v469_v10 }
 0x336   :  { %2780 = vmatpush3.bf16.xpose.msra.mxu0 %v1407_v13  ;;  %2781 = vmatprep.mubr.msk.bf16.mxu0 %vm2991_vm1, %v2990_v15 }
 0x337   :  { %2791 = vmatprep.subr.bf16.mxu0 %v2990_v15 }
 0x33d   :  { %2782 = vmatmul.mubr.msk.bf16.vlgmr.msra.gmra.mrb[20].mxu0 %vm1080_vm2, %v471_v11 }
 0x33e   :  { %2793 = vmatprep.mubr.msk.bf16.mxu0 %vm2991_vm1, %v2990_v15 }
 0x3f0   :  { %v1121_v12 = vpop.f32.mrb[4].mxu0  ;;  %v1213_v16 = vpop.f32.mrb[0].mxu1 }
 0x3f1   :  { %v1449_v17 = vmul.f32 0.35355338, %v1121_v12  ;;  %v2741_v18 = vpop.f32.mrb[5].mxu0  ;;  %v2753_v19 = vpop.f32.mrb[1].mxu1  ;;  %v1451_v22 = vmul.f32 0.35355338, %v1213_v16 }
 0x3f2   :  { %v1124_v20 = vpop.f32.mrb[6].mxu0  ;;  %v1216_v21 = vpop.f32.mrb[2].mxu1 }
 0x3f3   :  { %v2742_v23 = vpop.f32.mrb[7].mxu0  ;;  %v2754_v24 = vpop.f32.mrb[3].mxu1  ;;  %v1457_v25 = vsel %vm1080_vm2, %v1449_v17, -inf  ;;  %v1463_v26 = vsel %vm1080_vm2, %v1451_v22, -inf }
 0x3f4   :  { %1458 = vmax.xlane.f32.xlu0 %v1457_v25 }
 0x3f8   :  { %1464 = vmax.xlane.f32.xlu0 %v1463_v26  ;;  %v1167_v27 = vpop.f32.mrb[8].mxu0 }
 0x3f9   :  { %v1305_v28 = vpop.f32.mrb[4].mxu1  ;;  %v1450_v29 = vmul.f32 0.35355338, %v1167_v27  ;;  %v2747_v30 = vpop.f32.mrb[9].mxu0 }
 0x3fa   :  { %v1453_v31 = vmul.f32 0.35355338, %v1305_v28  ;;  %v2765_v32 = vpop.f32.mrb[5].mxu1  ;;  %v1170_v33 = vpop.f32.mrb[10].mxu0 }
 0x3fb   :  { %v1308_v34 = vpop.f32.mrb[6].mxu1  ;;  %v2748_v35 = vpop.f32.mrb[11].mxu0  ;;  %v1460_v37 = vsel %vm1080_vm2, %v1450_v29, -inf }
 0x3fc   :  { %v2766_v38 = vpop.f32.mrb[7].mxu1  ;;  %v1469_v39 = vsel %vm1080_vm2, %v1453_v31, -inf  ;;  %1461 = vmax.xlane.f32.xlu1 %v1460_v37 }
 0x3fd   :  { %1470 = vmax.xlane.f32.xlu0 %v1469_v39 }
 0x400   :  { %v1259_v47 = vpop.f32.mrb[12].mxu0 }
 0x401   :  { %v1452_v48 = vmul.f32 0.35355338, %v1259_v47  ;;  %v1397_v49 = vpop.f32.mrb[8].mxu1  ;;  %v2759_v50 = vpop.f32.mrb[13].mxu0 }
 0x402   :  { %v2777_v53 = vpop.f32.mrb[9].mxu1  ;;  %v1262_v51 = vpop.f32.mrb[14].mxu0  ;;  %v3298_v52 = vmul.f32 0.35355338, %v1397_v49 }
 0x403   :  { %v1400_v54 = vpop.f32.mrb[10].mxu1  ;;  %v2760_v55 = vpop.f32.mrb[15].mxu0  ;;  %v1466_v57 = vsel %vm1080_vm2, %v1452_v48, -inf }
 0x404   :  { %v2778_v62 = vpop.f32.mrb[11].mxu1  ;;  %1467 = vmax.xlane.f32.xlu0 %v1466_v57  ;;  %v1475_v63 = vsel %vm1080_vm2, %v3298_v52, -inf }
 0x408   :  { %1476 = vmax.xlane.f32.xlu0 %v1475_v63  ;;  %v1351_v1 = vpop.f32.mrb[16].mxu0 }
 0x409   :  { %v2771_v59 = vpop.f32.mrb[17].mxu0  ;;  %v1454_v7 = vmul.f32 0.35355338, %v1351_v1 }
 0x40a   :  { %v1354_v60 = vpop.f32.mrb[18].mxu0 }
 0x40b   :  { %v2772_v2 = vpop.f32.mrb[19].mxu0  ;;  %v1472_v5 = vsel %vm1080_vm2, %v1454_v7, -inf }
 0x40d   :  { %780 = vrot.lane.b32.xlu1 %v3133_v42, %s2998_s17 }
 0x410   :  { %v1443_v58 = vpop.f32.mrb[20].mxu0 }
 0x411   :  { %784 = vrot.lane.b32.xlu1 %v3131_v41, %s2998_s17  ;;  %v2783_v61 = vpop.f32.mrb[21].mxu0  ;;  %v1456_v8 = vmul.f32 0.35355338, %v1443_v58 }
 0x412   :  { %v1446_v3 = vpop.f32.mrb[22].mxu0 }
 0x413   :  { %v2784_v4 = vpop.f32.mrb[23].mxu0  ;;  %v1478_v6 = vsel %vm1080_vm2, %v1456_v8, -inf }
 0x41e   :  { %776 = vrot.lane.b32.xlu0 %v3120_v36, %s2998_s17 }
 0x435   :  { %1473 = vmax.xlane.f32.xlu1 %v1472_v5 }
 0x439   :  { %1479 = vmax.xlane.f32.xlu1 %v1478_v6 }
 0x44a   :  { %788 = vrot.lane.b32.xlu1 %v3137_v43, %s2998_s17 }
 0x481   :  { %v1459_v42 = vpop.xlane.xlu0 %1458 }
 0x482   :  { %v1481_v9 = vsub.f32 %v1449_v17, %v1459_v42 }
 0x484   :  { %v1489_v41 = vmul.f32 1.442695, %v1481_v9 }
 0x485   :  { %v1465_v10 = vpop.xlane.xlu0 %1464 }
 0x486   :  { %2916 = vpow2.f32 %v1489_v41  ;;  %v1483_v13 = vsub.f32 %v1451_v22, %v1465_v10 }
 0x488   :  { %v1493_v14 = vmul.f32 1.442695, %v1483_v13 }
 0x489   :  { %v1462_v11 = vpop.xlane.xlu1 %1461 }
 0x48a   :  { %2918 = vpow2.f32 %v1493_v14  ;;  %v1471_v36 = vpop.xlane.xlu0 %1470  ;;  %v1482_v12 = vsub.f32 %v1450_v29, %v1462_v11 }
 0x48b   :  { %v1485_v16 = vsub.f32 %v1453_v31, %v1471_v36 }
 0x48c   :  { %v1491_v18 = vmul.f32 1.442695, %v1482_v12 }
 0x48d   :  { %v1497_v19 = vmul.f32 1.442695, %v1485_v16  ;;  %v781_v31 = vpop.permute.xlu1 %780 }
 0x48e   :  { %2920 = vpow2.f32 %v1491_v18 }
 0x48f   :  { %2922 = vpow2.f32 %v1497_v19 }
 0x490   :  { %v3313_v20 = vpop.eup %2916 }
 0x491   :  { %v1468_v21 = vpop.xlane.xlu0 %1467  ;;  %v1505_v43 = vsel %vm1080_vm2, %v3313_v20, 0.0  ;;  %v785_v32 = vpop.permute.xlu1 %784 }
 0x492   :  { %v1484_v17 = vsub.f32 %v1452_v48, %v1468_v21  ;;  %1506 = vadd.xlane.f32.xlu0 %v1505_v43 }
 0x494   :  { %v3317_v23 = vpop.eup %2918  ;;  %v1495_v22 = vmul.f32 1.442695, %v1484_v17 }
 0x495   :  { %v1511_v24 = vsel %vm1080_vm2, %v3317_v23, 0.0  ;;  %v3339_v33 = vpop.xlane.xlu0 %1476 }
 0x496   :  { %2924 = vpow2.f32 %v1495_v22  ;;  %1512 = vadd.xlane.f32.xlu0 %v1511_v24 }
 0x498   :  { %v3321_v25 = vpop.eup %2920 }
 0x499   :  { %v3323_v26 = vpop.eup %2922  ;;  %v1508_v27 = vsel %vm1080_vm2, %v3321_v25, 0.0  ;;  %v777_v38 = vpop.permute.xlu0 %776 }
 0x49a   :  { %v1517_v28 = vsel %vm1080_vm2, %v3323_v26, 0.0  ;;  %1509 = vadd.xlane.f32.xlu1 %v1508_v27  ;;  %v800_v48 = vcombine.low %v777_v38, %v785_v32  ;;  %v801_v49 = vcombine.high %v777_v38, %v785_v32  ;;  %v1487_v32 = vsub.f32 %v3298_v52, %v3339_v33 }
 0x49b   :  { %1518 = vadd.xlane.f32.xlu0 %v1517_v28 }
 0x49c   :  { %v808_v51 = vrot.slane %v800_v48, %v3154_v56 }
 0x4a0   :  { %v3329_v29 = vpop.eup %2924 }
 0x4a1   :  { %v1514_v30 = vsel %vm1080_vm2, %v3329_v29, 0.0 }
 0x4a2   :  { %1515 = vadd.xlane.f32.xlu1 %v1514_v30 }
 0x4b3   :  { %782 = vrot.lane.b32.xlu1 %v3143_v45, %s2998_s17 }
 0x4b7   :  { %786 = vrot.lane.b32.xlu1 %v3141_v44, %s2998_s17 }
 0x4bb   :  { %790 = vrot.lane.b32.xlu1 %v3147_v46, %s2998_s17  ;;  %v815_v46 = vrot.slane %v801_v49, %v3154_v56 }
 0x4c2   :  { %v1474_v34 = vpop.xlane.xlu1 %1473 }
 0x4c3   :  { %v1486_v35 = vsub.f32 %v1454_v7, %v1474_v34  ;;  %v1501_v34 = vmul.f32 1.442695, %v1487_v32 }
 0x4c5   :  { %v1499_v37 = vmul.f32 1.442695, %v1486_v35 }
 0x4c6   :  { %v1480_v39 = vpop.xlane.xlu1 %1479 }
 0x4c7   :  { %2926 = vpow2.f32 %v1499_v37  ;;  %v1488_v47 = vsub.f32 %v1456_v8, %v1480_v39 }
 0x4c9   :  { %v1503_v44 = vmul.f32 1.442695, %v1488_v47 }
 0x4ca   :  { %v789_v45 = vpop.permute.xlu1 %788 }
 0x4cb   :  { %v816_v50 = vcombine.low %v781_v31, %v789_v45  ;;  %v817_v53 = vcombine.high %v781_v31, %v789_v45  ;;  %2928 = vpow2.f32 %v1503_v44 }
 0x4cc   :  { %2930 = vpow2.f32 %v1501_v34 }
 0x4cd   :  { %v824_v54 = vrot.slane %v816_v50, %v3154_v56  ;;  %v831_v55 = vrot.slane %v817_v53, %v3154_v56 }
 0x4cf   :  { %v832_v57 = vcombine.low %v808_v51, %v824_v54  ;;  %v833_v62 = vcombine.high %v808_v51, %v824_v54  ;;  %v848_v63 = vcombine.low %v815_v46, %v831_v55  ;;  %v849_v1 = vcombine.high %v815_v46, %v831_v55 }
 0x4d1   :  { %v3345_v59 = vpop.eup %2926  ;;  %v840_v60 = vrot.slane %v832_v57, %v3164_v0  ;;  %v847_v2 = vrot.slane %v833_v62, %v3164_v0  ;;  %v856_v58 = vrot.slane %v848_v63, %v3164_v0  ;;  %v863_v61 = vrot.slane %v849_v1, %v3164_v0 }
 0x4d2   :  { %v1520_v3 = vsel %vm1080_vm2, %v3345_v59, 0.0 }
 0x4d3   :  { %v936_v4 = vcombine.low %v840_v60, %v847_v2  ;;  %v2632_v7 = vcombine.high %v840_v60, %v847_v2  ;;  %v952_v8 = vcombine.low %v856_v58, %v863_v61  ;;  %v2633_v5 = vcombine.high %v856_v58, %v863_v61  ;;  %1521 = vadd.xlane.f32.xlu0 %v1520_v3 }
 0x4d5   :  { %v943_v6 = vrot.slane %v936_v4, %v3154_v56  ;;  %v951_v42 = vrot.slane %v2632_v7, %v3154_v56  ;;  %v959_v9 = vrot.slane %v952_v8, %v3154_v56  ;;  %v967_v41 = vrot.slane %v2633_v5, %v3154_v56  ;;  %v3361_v19 = vpop.eup %2928 }
 0x4d6   :  { %v1526_v28 = vsel %vm1080_vm2, %v3361_v19, 0.0  ;;  %v3373_v35 = vpop.eup %2930 }
 0x4d7   :  { %v968_v10 = vcombine.low %v943_v6, %v951_v42  ;;  %v984_v13 = vcombine.low %v959_v9, %v967_v41  ;;  %v969_v14 = vcombine.high %v943_v6, %v951_v42  ;;  %v985_v11 = vcombine.high %v959_v9, %v967_v41 }
 0x4d8   :  { %v1523_v37 = vsel %vm1080_vm2, %v3373_v35, 0.0 }
 0x4d9   :  { %v976_v36 = vrot.slane %v968_v10, %v3164_v0  ;;  %v992_v12 = vrot.slane %v984_v13, %v3164_v0  ;;  %v983_v16 = vrot.slane %v969_v14, %v3164_v0  ;;  %v999_v18 = vrot.slane %v985_v11, %v3164_v0 }
 0x4db   :  { %v1000_v21 = vcombine.low %v976_v36, %v992_v12  ;;  %v1001_v43 = vcombine.high %v976_v36, %v992_v12  ;;  %v1002_v17 = vcombine.low %v983_v16, %v999_v18  ;;  %v1003_v22 = vcombine.high %v983_v16, %v999_v18 }
 0x4dd   :  { %v1072_v24 = vpack.c.bf16 %v1000_v21, %v1000_v21  ;;  %v1073_v27 = vpack.c.bf16 %v1001_v43, %v1001_v43  ;;  %v1074_v49 = vpack.c.bf16 %v1002_v17, %v1002_v17  ;;  %v1075_v51 = vpack.c.bf16 %v1003_v22, %v1003_v22 }
 0x4df   :  { %1527 = vadd.xlane.f32.xlu1 %v1526_v28  ;;  %v1558_v30 = vsel %vm1556_vm3, %v1072_v24, 0  ;;  %v1604_v31 = vsel %vm1556_vm3, %v1073_v27, 0  ;;  %v1650_v33 = vsel %vm1556_vm3, %v1074_v49, 0  ;;  %v1696_v55 = vsel %vm1556_vm3, %v1075_v51, 0 }
 0x4e0   :  { %2786 = vmatpush3.bf16.msra.mxu1 %v1558_v30  ;;  %2792 = vmatpush3.bf16.msra.mxu0 %v1604_v31 }
 0x4e1   :  { %2797 = vmatprep.subr.bf16.mxu1 %v2990_v15  ;;  %2803 = vmatprep.subr.bf16.mxu0 %v2990_v15 }
 0x4e9   :  { %778 = vrot.lane.b32.xlu0 %v3124_v40, %s2998_s17 }
 0x508   :  { %1524 = vadd.xlane.f32.xlu0 %v1523_v37 }
 0x51f   :  { %v1507_v38 = vpop.xlane.xlu0 %1506 }
 0x520   :  { %2932 = vrcp.f32 %v1507_v38 }
 0x523   :  { %v1513_v39 = vpop.xlane.xlu0 %1512 }
 0x524   :  { %2934 = vrcp.f32 %v1513_v39 }
 0x527   :  { %v1510_v47 = vpop.xlane.xlu1 %1509 }
 0x528   :  { %2936 = vrcp.f32 %v1510_v47  ;;  %v1519_v1 = vpop.xlane.xlu0 %1518 }
 0x52a   :  { %v2933_v48 = vpop.eup %2932 }
 0x52b   :  { %v1537_v40 = vmul.f32 %v2933_v48, %v3313_v20 }
 0x52d   :  { %v1545_v45 = vpack.c.bf16 %v1537_v40, %v1537_v40 }
 0x52e   :  { %v2935_v52 = vpop.eup %2934 }
 0x52f   :  { %2788 = vmatmul.mubr.msk.bf16.vlgmr.msra.gmra.mrb[12].mxu1 %vm1080_vm2, %v1545_v45  ;;  %v1516_v50 = vpop.xlane.xlu1 %1515  ;;  %v1539_v53 = vmul.f32 %v2935_v52, %v3317_v23 }
 0x530   :  { %2798 = vmatpush3.bf16.msra.mxu1 %v1650_v33  ;;  %2938 = vrcp.f32 %v1516_v50  ;;  %2799 = vmatprep.mubr.msk.bf16.mxu1 %vm2991_vm1, %v2990_v15 }
 0x531   :  { %2809 = vmatprep.subr.bf16.mxu1 %v2990_v15  ;;  %v1547_v54 = vpack.c.bf16 %v1539_v53, %v1539_v53  ;;  %2940 = vrcp.f32 %v1519_v1 }
 0x532   :  { %v2937_v44 = vpop.eup %2936 }
 0x533   :  { %v1538_v20 = vmul.f32 %v2937_v44, %v3321_v25  ;;  %v783_v62 = vpop.permute.xlu1 %782 }
 0x535   :  { %v1546_v46 = vpack.c.bf16 %v1538_v20, %v1538_v20 }
 0x537   :  { %2794 = vmatmul.mubr.msk.bf16.vlgmr.msra.gmra.mrb[24].mxu0 %vm1080_vm2, %v1546_v46  ;;  %2800 = vmatmul.mubr.msk.bf16.vlgmr.msra.gmra.mrb[16].mxu1 %vm1080_vm2, %v1547_v54  ;;  %v787_v63 = vpop.permute.xlu1 %786 }
 0x538   :  { %2804 = vmatpush3.bf16.msra.mxu0 %v1696_v55  ;;  %2805 = vmatprep.mubr.msk.bf16.mxu0 %vm2991_vm1, %v2990_v15 }
 0x539   :  { %2815 = vmatprep.subr.bf16.mxu0 %v2990_v15  ;;  %2811 = vmatprep.mubr.msk.bf16.mxu1 %vm2991_vm1, %v2990_v15 }
 0x53a   :  { %v2939_v23 = vpop.eup %2938 }
 0x53b   :  { %v1540_v25 = vmul.f32 %v2939_v23, %v3329_v29  ;;  %v791_v60 = vpop.permute.xlu1 %790  ;;  %v2941_v34 = vpop.eup %2940 }
 0x53c   :  { %v884_v58 = vcombine.low %v783_v62, %v791_v60  ;;  %v885_v61 = vcombine.high %v783_v62, %v791_v60  ;;  %v1541_v33 = vmul.f32 %v2941_v34, %v3323_v26 }
 0x53d   :  { %v1548_v57 = vpack.c.bf16 %v1540_v25, %v1540_v25 }
 0x53e   :  { %v892_v8 = vrot.slane %v884_v58, %v3154_v56  ;;  %v899_v29 = vrot.slane %v885_v61, %v3154_v56  ;;  %v1549_v55 = vpack.c.bf16 %v1541_v33, %v1541_v33 }
 0x53f   :  { %2806 = vmatmul.mubr.msk.bf16.vlgmr.msra.gmra.mrb[28].mxu0 %vm1080_vm2, %v1548_v57 }
 0x540   :  { %2817 = vmatprep.mubr.msk.bf16.mxu0 %vm2991_vm1, %v2990_v15 }
 0x560   :  { %v1522_v2 = vpop.xlane.xlu0 %1521 }
 0x561   :  { %2942 = vrcp.f32 %v1522_v2 }
 0x564   :  { %v779_v3 = vpop.permute.xlu0 %778 }
 0x565   :  { %v868_v4 = vcombine.low %v779_v3, %v787_v63  ;;  %v869_v7 = vcombine.high %v779_v3, %v787_v63 }
 0x567   :  { %v876_v5 = vrot.slane %v868_v4, %v3154_v56  ;;  %v883_v6 = vrot.slane %v869_v7, %v3154_v56 }
 0x569   :  { %v900_v42 = vcombine.low %v876_v5, %v892_v8  ;;  %v901_v9 = vcombine.high %v876_v5, %v892_v8  ;;  %v916_v41 = vcombine.low %v883_v6, %v899_v29  ;;  %v917_v10 = vcombine.high %v883_v6, %v899_v29 }
 0x56b   :  { %v908_v13 = vrot.slane %v900_v42, %v3164_v0  ;;  %v915_v14 = vrot.slane %v901_v9, %v3164_v0  ;;  %v924_v11 = vrot.slane %v916_v41, %v3164_v0  ;;  %v931_v36 = vrot.slane %v917_v10, %v3164_v0  ;;  %v2943_v48 = vpop.eup %2942 }
 0x56c   :  { %v1528_v27 = vpop.xlane.xlu1 %1527  ;;  %v1542_v50 = vmul.f32 %v2943_v48, %v3345_v59 }
 0x56d   :  { %v1004_v12 = vcombine.low %v908_v13, %v915_v14  ;;  %v2634_v16 = vcombine.high %v908_v13, %v915_v14  ;;  %v1020_v18 = vcombine.low %v924_v11, %v931_v36  ;;  %v2635_v21 = vcombine.high %v924_v11, %v931_v36 }
 0x56e   :  { %2944 = vrcp.f32 %v1528_v27  ;;  %v1550_v23 = vpack.c.bf16 %v1542_v50, %v1542_v50 }
 0x56f   :  { %v1011_v43 = vrot.slane %v1004_v12, %v3154_v56  ;;  %v1019_v17 = vrot.slane %v2634_v16, %v3154_v56  ;;  %v1027_v22 = vrot.slane %v1020_v18, %v3154_v56  ;;  %v1035_v24 = vrot.slane %v2635_v21, %v3154_v56 }
 0x571   :  { %v1036_v28 = vcombine.low %v1011_v43, %v1019_v17  ;;  %v1052_v30 = vcombine.low %v1027_v22, %v1035_v24  ;;  %v1037_v31 = vcombine.high %v1011_v43, %v1019_v17  ;;  %v1053_v32 = vcombine.high %v1027_v22, %v1035_v24 }
 0x573   :  { %v1044_v37 = vrot.slane %v1036_v28, %v3164_v0  ;;  %v1060_v38 = vrot.slane %v1052_v30, %v3164_v0  ;;  %v1051_v39 = vrot.slane %v1037_v31, %v3164_v0  ;;  %v1067_v47 = vrot.slane %v1053_v32, %v3164_v0 }
 0x575   :  { %v1068_v40 = vcombine.low %v1044_v37, %v1060_v38  ;;  %v1069_v49 = vcombine.high %v1044_v37, %v1060_v38  ;;  %v1070_v45 = vcombine.low %v1051_v39, %v1067_v47  ;;  %v1071_v52 = vcombine.high %v1051_v39, %v1067_v47 }
 0x577   :  { %v1076_v53 = vpack.c.bf16 %v1068_v40, %v1068_v40  ;;  %v1077_v44 = vpack.c.bf16 %v1069_v49, %v1069_v49  ;;  %v1078_v46 = vpack.c.bf16 %v1070_v45, %v1070_v45  ;;  %v1079_v54 = vpack.c.bf16 %v1071_v52, %v1071_v52 }
 0x578   :  { %v2945_v25 = vpop.eup %2944 }
 0x579   :  { %v1742_v20 = vsel %vm1556_vm3, %v1076_v53, 0  ;;  %v1788_v51 = vsel %vm1556_vm3, %v1077_v44, 0  ;;  %v1834_v26 = vsel %vm1556_vm3, %v1078_v46, 0  ;;  %v1880_v59 = vsel %vm1556_vm3, %v1079_v54, 0 }
 0x57a   :  { %2810 = vmatpush3.bf16.msra.mxu1 %v1742_v20  ;;  %2816 = vmatpush3.bf16.msra.mxu0 %v1788_v51  ;;  %v1544_v57 = vmul.f32 %v2945_v25, %v3361_v19 }
 0x57b   :  { %2821 = vmatprep.subr.bf16.mxu1 %v2990_v15  ;;  %2827 = vmatprep.subr.bf16.mxu0 %v2990_v15 }
 0x57c   :  { %v1552_v62 = vpack.c.bf16 %v1544_v57, %v1544_v57 }
 0x57d   :  { %2812 = vmatmul.mubr.msk.bf16.vlgmr.msra.gmra.mrb[20].mxu1 %vm1080_vm2, %v1549_v55  ;;  %2818 = vmatmul.mubr.msk.bf16.vlgmr.msra.gmra.mrb[32].mxu0 %vm1080_vm2, %v1550_v23 }
 0x57e   :  { %2822 = vmatpush3.bf16.msra.mxu1 %v1834_v26  ;;  %2828 = vmatpush3.bf16.msra.mxu0 %v1880_v59 }
 0x57f   :  { %2829 = vmatprep.mubr.msk.bf16.mxu0 %vm2991_vm1, %v2990_v15  ;;  %2823 = vmatprep.mubr.msk.bf16.mxu1 %vm2991_vm1, %v2990_v15 }
 0x580   :  { %2833 = vmatprep.subr.bf16.mxu1 %v2990_v15  ;;  %2841 = vmatprep.subr.bf16.mxu0 %v2990_v15 }
 0x585   :  { %2830 = vmatmul.mubr.msk.bf16.vlgmr.msra.gmra.mrb[36].mxu0 %vm1080_vm2, %v1552_v62 }
 0x586   :  { %2845 = vmatprep.mubr.msk.bf16.mxu0 %vm2991_vm1, %v2990_v15 }
 0x595   :  { %v1525_v63 = vpop.xlane.xlu0 %1524 }
 0x596   :  { %2946 = vrcp.f32 %v1525_v63 }
 0x5a0   :  { %v2947_v1 = vpop.eup %2946 }
 0x5a1   :  { %v1543_v19 = vmul.f32 %v2947_v1, %v3373_v35 }
 0x5a3   :  { %v1551_v60 = vpack.c.bf16 %v1543_v19, %v1543_v19 }
 0x5a5   :  { %2824 = vmatmul.mubr.msk.bf16.vlgmr.msra.gmra.mrb[24].mxu1 %vm1080_vm2, %v1551_v60 }
 0x5a6   :  { %2837 = vmatprep.mubr.msk.bf16.mxu1 %vm2991_vm1, %v2990_v15 }
 0x602   :  { %v1594_v2 = vpop.f32.mrb[12].mxu1 }
 0x603   :  { %v2789_v58 = vpop.f32.mrb[13].mxu1 }
 0x604   :  { %v1597_v61 = vpop.f32.mrb[14].mxu1 }
 0x605   :  { %v2790_v3 = vpop.f32.mrb[15].mxu1 }
 0x60a   :  { %v1640_v4 = vpop.f32.mrb[24].mxu0  ;;  %v1686_v7 = vpop.f32.mrb[16].mxu1 }
 0x60b   :  { %v1922_v8 = vcombine.low %v1594_v2, %v1686_v7  ;;  %v1923_v29 = vcombine.high %v1594_v2, %v1686_v7  ;;  %v2795_v5 = vpop.f32.mrb[25].mxu0  ;;  %v2801_v6 = vpop.f32.mrb[17].mxu1 }
 0x60c   :  { %v1643_v42 = vpop.f32.mrb[26].mxu0  ;;  %v1689_v9 = vpop.f32.mrb[18].mxu1 }
 0x60d   :  { %v2796_v41 = vpop.f32.mrb[27].mxu0  ;;  %v2802_v35 = vpop.f32.mrb[19].mxu1  ;;  %v1930_v12 = vrot.slane %v1922_v8, %v3154_v56  ;;  %v1937_v16 = vrot.slane %v1923_v29, %v3154_v56 }
 0x612   :  { %v1732_v10 = vpop.f32.mrb[28].mxu0 }
 0x613   :  { %v1938_v13 = vcombine.low %v1640_v4, %v1732_v10  ;;  %v1939_v14 = vcombine.high %v1640_v4, %v1732_v10  ;;  %v2807_v11 = vpop.f32.mrb[29].mxu0 }
 0x614   :  { %v1735_v36 = vpop.f32.mrb[30].mxu0 }
 0x615   :  { %v1946_v18 = vrot.slane %v1938_v13, %v3154_v56  ;;  %v1953_v21 = vrot.slane %v1939_v14, %v3154_v56  ;;  %v2808_v43 = vpop.f32.mrb[31].mxu0 }
 0x617   :  { %v1954_v17 = vcombine.low %v1930_v12, %v1946_v18  ;;  %v1955_v22 = vcombine.high %v1930_v12, %v1946_v18  ;;  %v1970_v24 = vcombine.low %v1937_v16, %v1953_v21  ;;  %v1971_v27 = vcombine.high %v1937_v16, %v1953_v21 }
 0x619   :  { %v1962_v28 = vrot.slane %v1954_v17, %v3164_v0  ;;  %v1969_v30 = vrot.slane %v1955_v22, %v3164_v0  ;;  %v1978_v31 = vrot.slane %v1970_v24, %v3164_v0  ;;  %v1985_v32 = vrot.slane %v1971_v27, %v3164_v0  ;;  %v2900_v27 = vld [vmem:[%s3601_s5] sm:$0xff]  }
 0x61a   :  { %2834 = vmatpush3.bf16.msra.mxu1 %v2900_v27 }
 0x61b   :  { %v2058_v34 = vcombine.low %v1962_v28, %v1969_v30  ;;  %v2652_v37 = vcombine.high %v1962_v28, %v1969_v30  ;;  %v2074_v38 = vcombine.low %v1978_v31, %v1985_v32  ;;  %v2653_v39 = vcombine.high %v1978_v31, %v1985_v32  ;;  %2835 = vmatprep.subr.bf16.mxu1 %v2990_v15 }
 0x61d   :  { %v2065_v47 = vrot.slane %v2058_v34, %v3154_v56  ;;  %v2073_v48 = vrot.slane %v2652_v37, %v3154_v56  ;;  %v2081_v40 = vrot.slane %v2074_v38, %v3154_v56  ;;  %v2089_v49 = vrot.slane %v2653_v39, %v3154_v56 }
 0x61f   :  { %v2091_v45 = vcombine.high %v2065_v47, %v2073_v48  ;;  %v2107_v52 = vcombine.high %v2081_v40, %v2089_v49  ;;  %v2090_v33 = vcombine.low %v2065_v47, %v2073_v48  ;;  %v2106_v50 = vcombine.low %v2081_v40, %v2089_v49  ;;  %v2901_v47 = vld [vmem:[%s3601_s5 + $0x8] sm:$0xff]   ;;  %s3000_s5 = smov 8  }
 0x620   :  { %2836 = vmatpush3.bf16.msra.mxu1 %v2901_v47 }
 0x621   :  { %v3450_v53 = vrot.slane %v2091_v45, %v3164_v0  ;;  %v3453_v44 = vrot.slane %v2107_v52, %v3164_v0  ;;  %v3456_v20 = vrot.slane %v2090_v33, %v3164_v0  ;;  %v3459_v51 = vrot.slane %v2106_v50, %v3164_v0  ;;  %2849 = vmatprep.subr.bf16.mxu1 %v2990_v15 }
 0x623   :  { %v2124_v46 = vcombine.low %v3450_v53, %v3453_v44  ;;  %v2122_v54 = vcombine.low %v3456_v20, %v3459_v51  ;;  %v2123_v55 = vcombine.high %v3456_v20, %v3459_v51  ;;  %v2125_v23 = vcombine.high %v3450_v53, %v3453_v44  ;;  %v2656_v20 = vld [vmem:[%s3602_s6] ss:$0 sm:$0xff] }
 0x650   :  { %v1778_v25 = vpop.f32.mrb[20].mxu1  ;;  %v1824_v26 = vpop.f32.mrb[32].mxu0 }
 0x651   :  { %v2813_v59 = vpop.f32.mrb[21].mxu1  ;;  %v2819_v57 = vpop.f32.mrb[33].mxu0 }
 0x652   :  { %v1781_v62 = vpop.f32.mrb[22].mxu1  ;;  %v1827_v63 = vpop.f32.mrb[34].mxu0 }
 0x653   :  { %v2814_v1 = vpop.f32.mrb[23].mxu1  ;;  %v2820_v19 = vpop.f32.mrb[35].mxu0 }
 0x658   :  { %v1916_v60 = vpop.f32.mrb[36].mxu0 }
 0x659   :  { %v2006_v2 = vcombine.low %v1824_v26, %v1916_v60  ;;  %v2007_v58 = vcombine.high %v1824_v26, %v1916_v60  ;;  %v2831_v61 = vpop.f32.mrb[37].mxu0 }
 0x65a   :  { %v1919_v3 = vpop.f32.mrb[38].mxu0 }
 0x65b   :  { %v2832_v4 = vpop.f32.mrb[39].mxu0  ;;  %v2014_v42 = vrot.slane %v2006_v2, %v3154_v56  ;;  %v2021_v9 = vrot.slane %v2007_v58, %v3154_v56 }
 0x678   :  { %v1870_v7 = vpop.f32.mrb[24].mxu1 }
 0x679   :  { %v1990_v8 = vcombine.low %v1778_v25, %v1870_v7  ;;  %v1991_v29 = vcombine.high %v1778_v25, %v1870_v7  ;;  %v2825_v5 = vpop.f32.mrb[25].mxu1 }
 0x67a   :  { %v1873_v6 = vpop.f32.mrb[26].mxu1 }
 0x67b   :  { %v1998_v41 = vrot.slane %v1990_v8, %v3154_v56  ;;  %v2005_v35 = vrot.slane %v1991_v29, %v3154_v56  ;;  %v2826_v10 = vpop.f32.mrb[27].mxu1  ;;  %v2964_v8 = vld [vmem:[%s3596_s0] sm:$0xff] }
 0x67d   :  { %v2022_v13 = vcombine.low %v1998_v41, %v2014_v42  ;;  %v2023_v14 = vcombine.high %v1998_v41, %v2014_v42  ;;  %v2038_v11 = vcombine.low %v2005_v35, %v2021_v9  ;;  %v2039_v36 = vcombine.high %v2005_v35, %v2021_v9  ;;  %v2965_v42 = vld [vmem:[%s3596_s0 + $0x8] sm:$0xff] }
 0x67f   :  { %v2030_v12 = vrot.slane %v2022_v13, %v3164_v0  ;;  %v2037_v16 = vrot.slane %v2023_v14, %v3164_v0  ;;  %v2046_v18 = vrot.slane %v2038_v11, %v3164_v0  ;;  %v2053_v21 = vrot.slane %v2039_v36, %v3164_v0 }
 0x681   :  { %v2126_v43 = vcombine.low %v2030_v12, %v2037_v16  ;;  %v2654_v17 = vcombine.high %v2030_v12, %v2037_v16  ;;  %v2142_v22 = vcombine.low %v2046_v18, %v2053_v21  ;;  %v2655_v24 = vcombine.high %v2046_v18, %v2053_v21 }
 0x683   :  { %v2133_v28 = vrot.slane %v2126_v43, %v3154_v56  ;;  %v2141_v30 = vrot.slane %v2654_v17, %v3154_v56  ;;  %v2149_v31 = vrot.slane %v2142_v22, %v3154_v56  ;;  %v2157_v32 = vrot.slane %v2655_v24, %v3154_v56  ;;  %v2902_v17 = vld [vmem:[%s3608_s12] sm:$0xff]   ;;  %v2903_v22 = vld [vmem:[%s3608_s12 + $0x8] sm:$0xff]   ;;  %s2607_s12 = sshll.u32 %s3002_s2, 4  ;;  %s2608_s12 = int_to_ptr.vmem [resolvable:$true] %s2607_s12 }
 0x684   :  { %2842 = vmatpush3.bf16.msra.mxu0 %v2902_v17  ;;  %s2966_s16 = scalar_lea.vmem %s2608_s12, 256  ;;  %p2971_p1 = scmp.lt.s32.totalorder %s2608_s12, %s2608_s12 }
 0x685   :  { %v2159_v34 = vcombine.high %v2133_v28, %v2141_v30  ;;  %v2175_v37 = vcombine.high %v2149_v31, %v2157_v32  ;;  %v2158_v38 = vcombine.low %v2133_v28, %v2141_v30  ;;  %v2174_v39 = vcombine.low %v2149_v31, %v2157_v32  ;;  %2843 = vmatprep.subr.bf16.mxu0 %v2990_v15  ;;  %p2967_p0 = scmp.ne.s32.totalorder %s2608_s12, %s2966_s16  ;;  %p2972_p2 = scmp.lt.s32.totalorder %s2966_s16, %s2966_s16 }
 0x687   :  { %v2173_v48 = vrot.slane %v2159_v34, %v3164_v0  ;;  %v2189_v40 = vrot.slane %v2175_v37, %v3164_v0  ;;  %v2166_v49 = vrot.slane %v2158_v38, %v3164_v0  ;;  %v2182_v45 = vrot.slane %v2174_v39, %v3164_v0  ;;  %v2660_v38 = vld [vmem:[%s3603_s7] ss:$0 sm:$0xff]  ;;  %p2973_p3 = por %p2972_p2, %p2971_p1 }
 0x688   :  { %2844 = vmatpush3.bf16.msra.mxu0 %v2903_v22 }
 0x689   :  { %v2192_v56 = vcombine.low %v2173_v48, %v2189_v40  ;;  %v2191_v52 = vcombine.high %v2166_v49, %v2182_v45  ;;  %v2190_v33 = vcombine.low %v2166_v49, %v2182_v45  ;;  %v2193_v50 = vcombine.high %v2173_v48, %v2189_v40  ;;  %v2661_v40 = vld [vmem:[%s3604_s8] ss:$0 sm:$0xff]  ;;  %p2974_p4 = pnand %p2973_p3, %p2967_p0 }
 0x68b   :  { %v2888_v53 = vpack.i.bf16 %v2192_v56, %v2124_v46  ;;  %v2883_v44 = vpack.i.bf16 %v2191_v52, %v2123_v55  ;;  %v2893_v25 = vpack.i.bf16 %v2193_v50, %v2125_v23  ;;  %v2904_v50 = vld [vmem:[%s3610_s14] sm:$0xff]  }
 0x68d   :  { %2889 = vrot.lane.b32.xlu1 %v2888_v53, %s2999_s22  ;;  %2884 = vrot.lane.b32.xlu0 %v2883_v44, %s3000_s5  ;;  %v2905_v53 = vld [vmem:[%s3610_s14 + $0x8] sm:$0xff]   ;;  %v2906_v44 = vld [vmem:[%s3610_s14 + $0x10] sm:$0xff]  }
 0x691   :  { %2894 = vrot.lane.b32.xlu0 %v2893_v25, %s3001_s23  ;;  %v2907_v25 = vld [vmem:[%s3610_s14 + $0x18] sm:$0xff]  }
 0x6ff   :  { %v2890_v26 = vpop.permute.xlu1 %2889  ;;  %v2885_v59 = vpop.permute.xlu0 %2884 }
 0x700   :  { %v2887_v0 = vunpack.i.h.bf16 %v2885_v59  ;;  %v2886_v57 = vunpack.i.l.bf16 %v2885_v59  ;;  %v2892_v62 = vunpack.i.h.bf16 %v2890_v26  ;;  %v2891_v63 = vunpack.i.l.bf16 %v2890_v26  ;;  %v2908_v26 = vld [vmem:[%s3610_s14 + $0x20] sm:$0xff]   ;;  %v2909_v59 = vld [vmem:[%s3610_s14 + $0x28] sm:$0xff]  }
 0x702   :  { %v2218_v46 = vsel %vm1080_vm2, %v2122_v54, %v2886_v57  ;;  %v2219_v55 = vsel %vm1080_vm2, %v2190_v33, %v2887_v0  ;;  %v2910_v0 = vld [vmem:[%s3610_s14 + $0x30] sm:$0xff]   ;;  %v2911_v57 = vld [vmem:[%s3610_s14 + $0x38] sm:$0xff]  }
 0x703   :  { %v2895_v23 = vpop.permute.xlu0 %2894  ;;  %v2221_v60 = vsel %vm2220_vm4, %v2218_v46, %v2891_v63  ;;  %v2222_v2 = vsel %vm2220_vm4, %v2219_v55, %v2892_v62  ;;  %v2662_v62 = vld [vmem:[%s3609_s13] ss:$0 sm:$0xff] }
 0x704   :  { %v2897_v1 = vunpack.i.h.bf16 %v2895_v23  ;;  %v2896_v19 = vunpack.i.l.bf16 %v2895_v23 }
 0x706   :  { %v2224_v58 = vsel %vm2223_vm5, %v2221_v60, %v2896_v19  ;;  %v2225_v61 = vsel %vm2223_vm5, %v2222_v2, %v2897_v1 }
 0x707   :  { %v2226_v3 = vpack.c.bf16 %v2225_v61, %v2224_v58 }
 0x709   :  { %2838 = vmatmul.mubr.msk.bf16.vlgmr.msra.gmra.mrb[28].mxu1 %vm60_vm0, %v2226_v3 }
 0x70a   :  { %2865 = vmatprep.mubr.msk.bf16.mxu1 %vm2991_vm1, %v2990_v15  ;;  %2850 = vmatpush3.bf16.msra.mxu1 %v2904_v50 }
 0x70b   :  { %2851 = vmatprep.subr.bf16.mxu1 %v2990_v15 }
 0x70e   :  { %2852 = vmatpush3.bf16.msra.mxu1 %v2905_v53 }
 0x70f   :  { %2853 = vmatprep.subr.bf16.mxu1 %v2990_v15 }
 0x712   :  { %2854 = vmatpush3.bf16.msra.mxu1 %v2906_v44 }
 0x713   :  { %2855 = vmatprep.subr.bf16.mxu1 %v2990_v15 }
 0x716   :  { %2856 = vmatpush3.bf16.msra.mxu1 %v2907_v25 }
 0x717   :  { %2857 = vmatprep.subr.bf16.mxu1 %v2990_v15 }
 0x71a   :  { %2858 = vmatpush3.bf16.msra.mxu1 %v2908_v26 }
 0x71b   :  { %2859 = vmatprep.subr.bf16.mxu1 %v2990_v15 }
 0x71e   :  { %2860 = vmatpush3.bf16.msra.mxu1 %v2909_v59 }
 0x71f   :  { %2861 = vmatprep.subr.bf16.mxu1 %v2990_v15 }
 0x722   :  { %2862 = vmatpush3.bf16.msra.mxu1 %v2910_v0 }
 0x723   :  { %2863 = vmatprep.subr.bf16.mxu1 %v2990_v15 }
 0x726   :  { %2864 = vmatpush3.bf16.msra.mxu1 %v2911_v57 }
 0x7dc   :  { %v2287_v51 = vpop.f32.mrb[28].mxu1 }
 0x7dd   :  { %v2288_v54 = vadd.f32 %v2656_v20, %v2287_v51  ;;  %v2839_v4 = vpop.f32.mrb[29].mxu1 }
 0x7de   :  { %v2290_v7 = vpop.f32.mrb[30].mxu1 }
 0x7df   :  { %v2294_v29 = vadd.f32 %v2964_v8, %v2288_v54  ;;  %v2291_v5 = vadd.f32 %v2656_v20, %v2290_v7  ;;  %v2840_v6 = vpop.f32.mrb[31].mxu1 }
 0x7e1   :  { %2342 = vst.msk [vmem:[#allocation3] sm:$0xff] %vm60_vm0, %v2294_v29  ;;  %v2295_v9 = vadd.f32 %v2965_v42, %v2291_v5  ;;  %v2298_v41 = vsel %vm60_vm0, %v2294_v29, 0.0 }
 0x7e2   :  { %2299 = vadd.xlane.f32.xlu1 %v2298_v41 }
 0x7e3   :  { %2343 = vst.msk [vmem:[#allocation3 + $0x8] sm:$0xff] %vm60_vm0, %v2295_v9  ;;  %v2301_v35 = vsel %vm60_vm0, %v2295_v9, 0.0 }
 0x7e4   :  { %2302 = vadd.xlane.f32.xlu0 %v2301_v35 }
 0x7e8   :  { %v2429_v5 = vld [vmem:[#allocation3] sm:$0xff] }
 0x7ea   :  { %v2430_v41 = vld [vmem:[#allocation3 + $0x8] sm:$0xff] }
 0x86f   :  { %v2300_v10 = vpop.xlane.xlu1 %2299 }
 0x870   :  { %v2304_v13 = vmul.f32 0.03125, %v2300_v10 }
 0x871   :  { %v2303_v14 = vpop.xlane.xlu0 %2302 }
 0x872   :  { %v2306_v11 = vsub.f32 %v2294_v29, %v2304_v13  ;;  %v2305_v36 = vmul.f32 0.03125, %v2303_v14  ;;  %v2676_v14 = vld [vmem:[%s3605_s9] ss:$0 sm:$0xff] }
 0x874   :  { %v2307_v12 = vsub.f32 %v2295_v9, %v2305_v36  ;;  %v2308_v16 = vmul.f32 %v2306_v11, %v2306_v11 }
 0x876   :  { %v2310_v18 = vsel %vm60_vm0, %v2308_v16, 0.0  ;;  %v2309_v21 = vmul.f32 %v2307_v12, %v2307_v12 }
 0x877   :  { %2311 = vadd.xlane.f32.xlu0 %v2310_v18 }
 0x878   :  { %v2313_v43 = vsel %vm60_vm0, %v2309_v21, 0.0 }
 0x87b   :  { %2314 = vadd.xlane.f32.xlu0 %v2313_v43 }
 0x904   :  { %v2312_v24 = vpop.xlane.xlu0 %2311 }
 0x905   :  { %v2316_v27 = vmul.f32 0.03125, %v2312_v24 }
 0x907   :  { %v2318_v28 = vadd.f32 1e-05, %v2316_v27 }
 0x908   :  { %v2315_v30 = vpop.xlane.xlu0 %2314 }
 0x909   :  { %2948 = vrsqrt.f32 %v2318_v28  ;;  %v2317_v31 = vmul.f32 0.03125, %v2315_v30 }
 0x90b   :  { %v2319_v32 = vadd.f32 1e-05, %v2317_v31 }
 0x90d   :  { %2950 = vrsqrt.f32 %v2319_v32 }
 0x913   :  { %v2949_v34 = vpop.eup %2948 }
 0x914   :  { %v2322_v37 = vmul.f32 %v2949_v34, %v2306_v11 }
 0x916   :  { %v2330_v47 = vmul.f32 %v2660_v38, %v2322_v37 }
 0x917   :  { %v2951_v39 = vpop.eup %2950 }
 0x918   :  { %v2323_v48 = vmul.f32 %v2951_v39, %v2307_v12  ;;  %v2338_v45 = vadd.f32 %v2661_v40, %v2330_v47 }
 0x91a   :  { %v2331_v49 = vmul.f32 %v2660_v38, %v2323_v48 }
 0x91c   :  { %v2339_v56 = vadd.f32 %v2661_v40, %v2331_v49 }
 0x91e   :  { %v2340_v52 = vpack.c.bf16 %v2339_v56, %v2338_v45  ;;  %v2677_v45 = vld [vmem:[%s3606_s10] ss:$0 sm:$0xff] }
 0x920   :  { %2341 = vst.msk [vmem:[#allocation2] sm:$0xff] %vm60_vm0, %v2340_v52 }
 0x927   :  { %v2344_v33 = vld [vmem:[#allocation2] sm:$0xff] }
 0x928   :  { %2846 = vmatmul.mubr.msk.bf16.vlgmr.msra.gmra.mrb[40].mxu0 %vm60_vm0, %v2344_v33  ;;  %v2678_v33 = vld [vmem:[%s3607_s11] ss:$0 sm:$0xff] }
 0x9fb   :  { %v2406_v63 = vpop.f32.mrb[40].mxu0 }
 0x9fc   :  { %v2407_v46 = vadd.f32 %v2662_v62, %v2406_v63  ;;  %v2847_v55 = vpop.f32.mrb[41].mxu0 }
 0x9fd   :  { %v2409_v23 = vpop.f32.mrb[42].mxu0 }
 0x9fe   :  { %v2666_v1 = vmul.f32 -1.702, %v2407_v46  ;;  %v2410_v19 = vadd.f32 %v2662_v62, %v2409_v23  ;;  %v2848_v60 = vpop.f32.mrb[43].mxu0 }
 0xa00   :  { %v2417_v2 = vmul.f32 1.442695, %v2666_v1  ;;  %v2667_v58 = vmul.f32 -1.702, %v2410_v19 }
 0xa02   :  { %2952 = vpow2.f32 %v2417_v2  ;;  %v2419_v15 = vmul.f32 1.442695, %v2667_v58 }
 0xa04   :  { %2954 = vpow2.f32 %v2419_v15 }
 0xa0c   :  { %v2953_v61 = vpop.eup %2952 }
 0xa0d   :  { %v2421_v3 = vadd.f32 1.0, %v2953_v61 }
 0xa0e   :  { %v2955_v20 = vpop.eup %2954 }
 0xa0f   :  { %2956 = vrcp.f32 %v2421_v3  ;;  %v2422_v51 = vadd.f32 1.0, %v2955_v20 }
 0xa11   :  { %2958 = vrcp.f32 %v2422_v51 }
 0xa19   :  { %v2957_v54 = vpop.eup %2956 }
 0xa1a   :  { %v2427_v7 = vmul.f32 %v2957_v54, %v2407_v46 }
 0xa1b   :  { %v2959_v4 = vpop.eup %2958 }
 0xa1c   :  { %v2428_v8 = vmul.f32 %v2959_v4, %v2410_v19 }
 0xa1e   :  { %v2431_v29 = vpack.c.bf16 %v2428_v8, %v2427_v7 }
 0xa20   :  { %2866 = vmatmul.mubr.bf16.vlgmr.msra.gmra.mrb[32].mxu1 %v2431_v29 }
 0xaf3   :  { %v2530_v6 = vpop.f32.mrb[32].mxu1 }
 0xaf4   :  { %v2537_v42 = vadd.f32 %v2530_v6, %v2429_v5  ;;  %v2867_v9 = vpop.f32.mrb[33].mxu1 }
 0xaf5   :  { %v2533_v35 = vpop.f32.mrb[34].mxu1 }
 0xaf6   :  { %2539 = vst.msk [vmem:[#allocation3] sm:$0xff] %vm60_vm0, %v2537_v42  ;;  %v2538_v10 = vadd.f32 %v2533_v35, %v2430_v41  ;;  %v2868_v13 = vpop.f32.mrb[35].mxu1 }
 0xaf8   :  { %2540 = vst.msk [vmem:[#allocation3 + $0x8] sm:$0xff] %vm60_vm0, %v2538_v10 }
 0xafd   :  { %v2544_v11 = vld [vmem:[#allocation3] sm:$0xff] }
 0xafe   :  { %v2553_v36 = vadd.f32 %v2676_v14, %v2544_v11 }
 0xaff   :  { %v2545_v12 = vld [vmem:[#allocation3 + $0x8] sm:$0xff] }
 0xb00   :  { %v2557_v16 = vsel %vm60_vm0, %v2553_v36, 0.0  ;;  %v2554_v18 = vadd.f32 %v2676_v14, %v2545_v12 }
 0xb01   :  { %2558 = vadd.xlane.f32.xlu1 %v2557_v16 }
 0xb02   :  { %v2560_v21 = vsel %vm60_vm0, %v2554_v18, 0.0 }
 0xb03   :  { %2561 = vadd.xlane.f32.xlu0 %v2560_v21 }
 0xb8e   :  { %v2559_v43 = vpop.xlane.xlu1 %2558 }
 0xb8f   :  { %v2564_v17 = vmul.f32 0.03125, %v2559_v43 }
 0xb90   :  { %v2562_v22 = vpop.xlane.xlu0 %2561 }
 0xb91   :  { %v2566_v24 = vsub.f32 %v2553_v36, %v2564_v17  ;;  %v2565_v27 = vmul.f32 0.03125, %v2562_v22 }
 0xb93   :  { %v2567_v28 = vsub.f32 %v2554_v18, %v2565_v27  ;;  %v2568_v30 = vmul.f32 %v2566_v24, %v2566_v24 }
 0xb95   :  { %v2570_v31 = vsel %vm60_vm0, %v2568_v30, 0.0  ;;  %v2569_v32 = vmul.f32 %v2567_v28, %v2567_v28 }
 0xb96   :  { %2571 = vadd.xlane.f32.xlu1 %v2570_v31 }
 0xb97   :  { %v2573_v34 = vsel %vm60_vm0, %v2569_v32, 0.0 }
 0xb98   :  { %2574 = vadd.xlane.f32.xlu0 %v2573_v34 }
 0xc23   :  { %v2572_v37 = vpop.xlane.xlu1 %2571 }
 0xc24   :  { %v2576_v38 = vmul.f32 0.03125, %v2572_v37 }
 0xc25   :  { %v2575_v39 = vpop.xlane.xlu0 %2574 }
 0xc26   :  { %v2578_v47 = vadd.f32 1e-05, %v2576_v38  ;;  %v2577_v48 = vmul.f32 0.03125, %v2575_v39 }
 0xc28   :  { %2960 = vrsqrt.f32 %v2578_v47  ;;  %v2579_v40 = vadd.f32 1e-05, %v2577_v48 }
 0xc2a   :  { %2962 = vrsqrt.f32 %v2579_v40 }
 0xc32   :  { %v2961_v49 = vpop.eup %2960 }
 0xc33   :  { %v2582_v56 = vmul.f32 %v2961_v49, %v2566_v24 }
 0xc34   :  { %v2963_v52 = vpop.eup %2962 }
 0xc35   :  { %v2583_v50 = vmul.f32 %v2963_v52, %v2567_v28  ;;  %v2590_v53 = vmul.f32 %v2677_v45, %v2582_v56 }
 0xc37   :  { %v2591_v44 = vmul.f32 %v2677_v45, %v2583_v50  ;;  %v2598_v25 = vadd.f32 %v2678_v33, %v2590_v53 }
 0xc39   :  { %v2599_v26 = vadd.f32 %v2678_v33, %v2591_v44  ;;  %2600 = vst.msk [vmem:[#allocation4] sm:$0xff] %vm60_vm0, %v2598_v25 }
 0xc3b   :  { %2601 = vst.msk [vmem:[#allocation4 + $0x8] sm:$0xff] %vm60_vm0, %v2599_v26 }
 0xc3c   :  { %2977 = shalt.err (!%p2974_p4)
}
 0xc3d   :  { %s2978_s4 = scalar_lea.hbm %s3611_s15, 256 }
 0xc3e   :  { %p2979_p5 = scmp.ne.s32.totalorder %s3611_s15, %s2978_s4  ;;  %p2982_p6 = scmp.lt.u32.totalorder %s2978_s4, %s3611_s15 }
 0xc40   :  { %p2984_p7 = pnand %p2982_p6, %p2979_p5 }
 0xc42   :  { %2987 = shalt.err (!%p2984_p7)
}
 0xc43   :  { %s3003_s19 = smov 128  }
 0xc44   :  { %2613 = dma.vmem_to_hbm [thread:$0]  %s2608_s12, 256, %s3611_s15, [#allocation5], %s3003_s19, %s3003_s19, %s3000_s5  }
 0xc45   :  { %2988 = dma.done.wait [#allocation5], 256  }
 0xc46   :  { %2989 = vsyncadd [#allocation5], 4294967040 }
 0xc47   :  { %2617 = vsyncpa [#allocation5], 1 }

</bundles_post_ra>
